<compile_context>
chip_gen: v7x
topology: tpu7x:2x2x1
jax: 0.10.0
libtpu: 0.0.40
codegen_flags: <defaults>
</compile_context>

<pallas_src>
import numpy as np
import jax
import jax.numpy as jnp
from jax import lax
from jax.experimental import pallas as pl
from jax.experimental.pallas import tpu as pltpu

ONEHOT = 12          # len('0123456789+ ')
HIDDEN = 128         # hidden_size (Linear in_features hard-coded to 128 in the module)
MAX_DIGITS = 7       # decoder length = max_digits + 1 = 8
SEQ = 8              # encoder sequence length
BATCH = 1
T_DEC = MAX_DIGITS + 1
LANE = 128           # lane-padded Linear output width


def addition_lstm_kernel(
    # encoder-side operands (auto-DMA'd to VMEM before the body runs)
    x_ref,                              # (SEQ, ONEHOT)            f32
    wih_e_ref, whh_e_ref, b_e_ref,      # (ONEHOT,4H) bf16, (H,4H) bf16, (1,4H) f32
    # decoder / Linear operands left in HBM (memory_space=pl.ANY) -- manual DMA
    wih_d_hbm, whh_d_hbm, b_d_hbm,      # (H,4H) bf16, (H,4H) bf16, (1,4H) f32
    wlin_hbm, blin_hbm,                 # (H,LANE) bf16, (1,LANE) f32
    # output
    out_ref,                            # (T_DEC, LANE)            f32
    # scratch
    wih_d_buf, whh_d_buf, b_d_buf, wlin_buf, blin_buf, dma_sem,
):
    H = HIDDEN

    # ---- kick off decoder/Linear weight DMAs; they overlap with the encoder ------
    cp_wih_d = pltpu.make_async_copy(wih_d_hbm, wih_d_buf, dma_sem.at[0]); cp_wih_d.start()
    cp_whh_d = pltpu.make_async_copy(whh_d_hbm, whh_d_buf, dma_sem.at[1]); cp_whh_d.start()
    cp_b_d   = pltpu.make_async_copy(b_d_hbm,   b_d_buf,   dma_sem.at[2]); cp_b_d.start()
    cp_wlin  = pltpu.make_async_copy(wlin_hbm,  wlin_buf,  dma_sem.at[3]); cp_wlin.start()
    cp_blin  = pltpu.make_async_copy(blin_hbm,  blin_buf,  dma_sem.at[4]); cp_blin.start()

    def lstm_cell(gates, c=None):
        i = jax.nn.sigmoid(gates[:, 0 * H:1 * H])
        g = jnp.tanh(gates[:, 2 * H:3 * H])
        o = jax.nn.sigmoid(gates[:, 3 * H:4 * H])
        if c is None:                               # first step: c == 0, so f*c == 0
            c_new = i * g
        else:
            f = jax.nn.sigmoid(gates[:, 1 * H:2 * H])
            c_new = f * c + i * g
        return o * jnp.tanh(c_new), c_new

    # ---- encoder: hoisted input projection (all timesteps in one MXU call) -------
    x_bf = x_ref[...].astype(jnp.bfloat16)                                  # (SEQ, ONEHOT)
    xproj = jnp.dot(x_bf, wih_e_ref[...],
                    preferred_element_type=jnp.float32) + b_e_ref[...]      # (SEQ, 4H) f32

    h, c = lstm_cell(xproj[0:1, :])                 # t == 0: h == c == 0, skip h@W_hh
    for t in range(1, SEQ):                         # unrolled; whh_e read in-loop
        gates = xproj[t:t + 1, :] + jnp.dot(
            h.astype(jnp.bfloat16), whh_e_ref[...],
            preferred_element_type=jnp.float32)
        h, c = lstm_cell(gates, c)

    # ---- decoder: input is the (constant) expanded h_n, so project it once -------
    cp_wih_d.wait(); cp_whh_d.wait(); cp_b_d.wait()
    dec_xproj = (jnp.dot(h.astype(jnp.bfloat16), wih_d_buf[...],
                         preferred_element_type=jnp.float32)
                 + b_d_buf[...])                                            # (1, 4H) f32

    hd, cd = lstm_cell(dec_xproj)                   # t == 0: skip hd@W_hh
    h_list = [hd]
    for t in range(1, T_DEC):                       # unrolled; whh_d read in-loop
        gates = dec_xproj + jnp.dot(
            hd.astype(jnp.bfloat16), whh_d_buf[...],
            preferred_element_type=jnp.float32)
        hd, cd = lstm_cell(gates, cd)
        h_list.append(hd)
    hts = jnp.concatenate(h_list, axis=0)                                   # (T_DEC, H)

    # ---- Linear (bf16 operands, f32 accumulation, lane-padded) + softmax ---------
    # Padded lanes have bias -1e30 (f32) so they contribute exp(.) == 0 exactly.
    cp_wlin.wait(); cp_blin.wait()
    logits = (jnp.dot(hts.astype(jnp.bfloat16), wlin_buf[...],
                      preferred_element_type=jnp.float32)
              + blin_buf[...])                                              # (T_DEC, LANE)
    m = jnp.max(logits, axis=1, keepdims=True)
    e = jnp.exp(logits - m)
    denom = jnp.sum(e, axis=1, keepdims=True)
    out_ref[...] = e * pl.reciprocal(denom, approx=True)


@jax.jit
def addition_lstm_forward(x, params):
    """x: (batch=1, seq, ONEHOT) — same batch_first convention as the PyTorch module."""
    x2d = x.reshape(SEQ, ONEHOT).astype(jnp.float32)     # drop degenerate batch dim
    vmem = pl.BlockSpec(memory_space=pltpu.MemorySpace.VMEM)
    hbm = pl.BlockSpec(memory_space=pl.ANY)              # decoder weights: manual DMA
    out_pad = pl.pallas_call(
        addition_lstm_kernel,
        out_shape=jax.ShapeDtypeStruct((T_DEC, LANE), jnp.float32),
        in_specs=[vmem, vmem, vmem, vmem,                # x, encoder weights
                  hbm, hbm, hbm, hbm, hbm],              # decoder / Linear weights
        out_specs=vmem,
        scratch_shapes=[
            pltpu.VMEM((HIDDEN, 4 * HIDDEN), jnp.bfloat16),   # wih_d buffer
            pltpu.VMEM((HIDDEN, 4 * HIDDEN), jnp.bfloat16),   # whh_d buffer
            pltpu.VMEM((1, 4 * HIDDEN), jnp.float32),         # b_d buffer
            pltpu.VMEM((HIDDEN, LANE), jnp.bfloat16),         # wlin (padded) buffer
            pltpu.VMEM((1, LANE), jnp.float32),               # blin (padded) buffer
            pltpu.SemaphoreType.DMA((5,)),
        ],
    )(x2d,
      params["wih_e_t"], params["whh_e_t"], params["b_e"],
      params["wih_d_t"], params["whh_d_t"], params["b_d"],
      params["wlin_pad"], params["blin_pad"])
    return out_pad[:, :ONEHOT]


# --------------------------- parameter construction ---------------------------
def init_params(key):
    """Deterministic init mimicking PyTorch LSTM/Linear uniform(-1/sqrt(H), 1/sqrt(H))."""
    bound = 1.0 / np.sqrt(HIDDEN)
    ks = jax.random.split(key, 12)
    u = lambda k, shape: jax.random.uniform(k, shape, jnp.float32, -bound, bound)

    # PyTorch stores W_ih: (4H, in), W_hh: (4H, H); we pass transposed copies.
    wih_e = u(ks[0], (4 * HIDDEN, ONEHOT))
    whh_e = u(ks[1], (4 * HIDDEN, HIDDEN))
    b_e = u(ks[2], (4 * HIDDEN,)) + u(ks[3], (4 * HIDDEN,))      # b_ih + b_hh
    wih_d = u(ks[4], (4 * HIDDEN, HIDDEN))
    whh_d = u(ks[5], (4 * HIDDEN, HIDDEN))
    b_d = u(ks[6], (4 * HIDDEN,)) + u(ks[7], (4 * HIDDEN,))
    wlin = u(ks[8], (ONEHOT, HIDDEN))                            # Linear weight (out, in)
    blin = u(ks[9], (ONEHOT,))

    wlin_t = wlin.T                                              # (H, ONEHOT)
    wlin_pad = (jnp.zeros((HIDDEN, LANE), jnp.float32)
                .at[:, :ONEHOT].set(wlin_t)).astype(jnp.bfloat16)    # bf16 MXU operand
    blin_pad = jnp.full((1, LANE), -1e30, jnp.float32).at[0, :ONEHOT].set(blin)  # f32 bias

    return {
        # MXU operands in bf16 (f32 accumulation in-kernel), biases in f32.
        "wih_e_t": wih_e.T.astype(jnp.bfloat16),
        "whh_e_t": whh_e.T.astype(jnp.bfloat16),
        "b_e": b_e[None, :],
        "wih_d_t": wih_d.T.astype(jnp.bfloat16),
        "whh_d_t": whh_d.T.astype(jnp.bfloat16),
        "b_d": b_d[None, :],
        "wlin_t": wlin_t,
        "blin": blin[None, :],
        "wlin_pad": wlin_pad,
        "blin_pad": blin_pad,
    }


# ------------------------------ pure-JAX reference ----------------------------
def reference_forward(x, p):
    """Matches the kernel's numerics: bf16 matmul operands, f32 accumulation/cell math."""
    B = x.shape[0]
    H = HIDDEN

    def mm(a, w_bf16):
        return jnp.dot(a.astype(jnp.bfloat16), w_bf16, preferred_element_type=jnp.float32)

    def cell(x_proj, h, c, whh_t):
        gates = x_proj + mm(h, whh_t)
        i = jax.nn.sigmoid(gates[:, 0:H]); f = jax.nn.sigmoid(gates[:, H:2 * H])
        g = jnp.tanh(gates[:, 2 * H:3 * H]); o = jax.nn.sigmoid(gates[:, 3 * H:4 * H])
        c = f * c + i * g
        return o * jnp.tanh(c), c

    h = jnp.zeros((B, H), jnp.float32); c = jnp.zeros((B, H), jnp.float32)
    for t in range(x.shape[1]):
        xp = mm(x[:, t, :], p["wih_e_t"]) + p["b_e"]
        h, c = cell(xp, h, c, p["whh_e_t"])
    dec_xp = mm(h, p["wih_d_t"]) + p["b_d"]
    hd = jnp.zeros((B, H), jnp.float32); cd = jnp.zeros((B, H), jnp.float32)
    hts = []
    for _ in range(T_DEC):
        hd, cd = cell(dec_xp, hd, cd, p["whh_d_t"])
        hts.append(hd[0])
    hts = jnp.stack(hts)                                         # (T_DEC, H)
    logits = mm(hts, p["wlin_t"].astype(jnp.bfloat16)) + p["blin"]
    return jax.nn.softmax(logits, axis=1)


if __name__ == "__main__":
    key = jax.random.PRNGKey(0)
    k_param, k_x = jax.random.split(key)
    params = init_params(k_param)

    # One-hot encoded input: (batch=1, seq=8, onehot=12)
    idx = jax.random.randint(k_x, (BATCH, SEQ), 0, ONEHOT)
    x = jax.nn.one_hot(idx, ONEHOT, dtype=jnp.float32)

    out = addition_lstm_forward(x, params)
    out = jax.block_until_ready(out)

    ref = reference_forward(x, params)
    np.testing.assert_allclose(np.asarray(out), np.asarray(ref), rtol=2e-2, atol=3e-3)
    assert out.shape == (T_DEC, ONEHOT)

    print("KERNEL_OK")
</pallas_src>

<mosaic_0001>
module attributes {stable_mosaic.version = 11 : i64} {
  func.func @addition_lstm_kernel(%arg0: memref<8x12xf32, #tpu.memory_space<vmem>>, %arg1: memref<12x512xbf16, #tpu.memory_space<vmem>>, %arg2: memref<128x512xbf16, #tpu.memory_space<vmem>>, %arg3: memref<1x512xf32, #tpu.memory_space<vmem>>, %arg4: memref<128x512xbf16, #tpu.memory_space<any>>, %arg5: memref<128x512xbf16, #tpu.memory_space<any>>, %arg6: memref<1x512xf32, #tpu.memory_space<any>>, %arg7: memref<128x128xbf16, #tpu.memory_space<any>>, %arg8: memref<1x128xf32, #tpu.memory_space<any>>, %arg9: memref<8x128xf32, #tpu.memory_space<vmem>>, %arg10: memref<128x512xbf16, #tpu.memory_space<vmem>>, %arg11: memref<128x512xbf16, #tpu.memory_space<vmem>>, %arg12: memref<1x512xf32, #tpu.memory_space<vmem>>, %arg13: memref<128x128xbf16, #tpu.memory_space<vmem>>, %arg14: memref<1x128xf32, #tpu.memory_space<vmem>>, %arg15: memref<5x!tpu.dma_semaphore, #tpu.memory_space<semaphore_mem>>) attributes {dimension_semantics = [], scalar_prefetch = 0 : i64, scratch_operands = 6 : i64, tpu.core_type = #tpu.core_type<tc>} {
    %c0_i32 = arith.constant 0 : i32
    %0 = tpu.memref_slice %arg15[%c0_i32] : memref<5x!tpu.dma_semaphore, #tpu.memory_space<semaphore_mem>> -> memref<1x!tpu.dma_semaphore, #tpu.memory_space<semaphore_mem>>
    %1 = tpu.memref_squeeze %0 : memref<1x!tpu.dma_semaphore, #tpu.memory_space<semaphore_mem>> -> memref<!tpu.dma_semaphore, #tpu.memory_space<semaphore_mem>>
    tpu.enqueue_dma source(%arg4 : memref<128x512xbf16, #tpu.memory_space<any>>) target(%arg10 : memref<128x512xbf16, #tpu.memory_space<vmem>>) target_semaphore(%1 : memref<!tpu.dma_semaphore, #tpu.memory_space<semaphore_mem>>)
    %c1_i32 = arith.constant 1 : i32
    %2 = tpu.memref_slice %arg15[%c1_i32] : memref<5x!tpu.dma_semaphore, #tpu.memory_space<semaphore_mem>> -> memref<1x!tpu.dma_semaphore, #tpu.memory_space<semaphore_mem>>
    %3 = tpu.memref_squeeze %2 : memref<1x!tpu.dma_semaphore, #tpu.memory_space<semaphore_mem>> -> memref<!tpu.dma_semaphore, #tpu.memory_space<semaphore_mem>>
    tpu.enqueue_dma source(%arg5 : memref<128x512xbf16, #tpu.memory_space<any>>) target(%arg11 : memref<128x512xbf16, #tpu.memory_space<vmem>>) target_semaphore(%3 : memref<!tpu.dma_semaphore, #tpu.memory_space<semaphore_mem>>)
    %c2_i32 = arith.constant 2 : i32
    %4 = tpu.memref_slice %arg15[%c2_i32] : memref<5x!tpu.dma_semaphore, #tpu.memory_space<semaphore_mem>> -> memref<1x!tpu.dma_semaphore, #tpu.memory_space<semaphore_mem>>
    %5 = tpu.memref_squeeze %4 : memref<1x!tpu.dma_semaphore, #tpu.memory_space<semaphore_mem>> -> memref<!tpu.dma_semaphore, #tpu.memory_space<semaphore_mem>>
    tpu.enqueue_dma source(%arg6 : memref<1x512xf32, #tpu.memory_space<any>>) target(%arg12 : memref<1x512xf32, #tpu.memory_space<vmem>>) target_semaphore(%5 : memref<!tpu.dma_semaphore, #tpu.memory_space<semaphore_mem>>)
    %c3_i32 = arith.constant 3 : i32
    %6 = tpu.memref_slice %arg15[%c3_i32] : memref<5x!tpu.dma_semaphore, #tpu.memory_space<semaphore_mem>> -> memref<1x!tpu.dma_semaphore, #tpu.memory_space<semaphore_mem>>
    %7 = tpu.memref_squeeze %6 : memref<1x!tpu.dma_semaphore, #tpu.memory_space<semaphore_mem>> -> memref<!tpu.dma_semaphore, #tpu.memory_space<semaphore_mem>>
    tpu.enqueue_dma source(%arg7 : memref<128x128xbf16, #tpu.memory_space<any>>) target(%arg13 : memref<128x128xbf16, #tpu.memory_space<vmem>>) target_semaphore(%7 : memref<!tpu.dma_semaphore, #tpu.memory_space<semaphore_mem>>)
    %c4_i32 = arith.constant 4 : i32
    %8 = tpu.memref_slice %arg15[%c4_i32] : memref<5x!tpu.dma_semaphore, #tpu.memory_space<semaphore_mem>> -> memref<1x!tpu.dma_semaphore, #tpu.memory_space<semaphore_mem>>
    %9 = tpu.memref_squeeze %8 : memref<1x!tpu.dma_semaphore, #tpu.memory_space<semaphore_mem>> -> memref<!tpu.dma_semaphore, #tpu.memory_space<semaphore_mem>>
    tpu.enqueue_dma source(%arg8 : memref<1x128xf32, #tpu.memory_space<any>>) target(%arg14 : memref<1x128xf32, #tpu.memory_space<vmem>>) target_semaphore(%9 : memref<!tpu.dma_semaphore, #tpu.memory_space<semaphore_mem>>)
    %c0 = arith.constant 0 : index
    %c0_0 = arith.constant 0 : index
    %10 = vector.load %arg0[%c0, %c0_0] : memref<8x12xf32, #tpu.memory_space<vmem>>, vector<8x12xf32>
    %11 = arith.truncf %10 : vector<8x12xf32> to vector<8x12xbf16>
    %c0_1 = arith.constant 0 : index
    %c0_2 = arith.constant 0 : index
    %12 = vector.load %arg1[%c0_1, %c0_2] : memref<12x512xbf16, #tpu.memory_space<vmem>>, vector<12x512xbf16>
    %cst = arith.constant dense<0.000000e+00> : vector<8x512xf32>
    %13 = tpu.matmul %11, %12, %cst {dimension_numbers = #tpu.dot_dimension_numbers<[1], [0], [0], [1], [0, 0, 1, 1], [], []>} : vector<8x12xbf16>, vector<12x512xbf16>, vector<8x512xf32> -> vector<8x512xf32>
    %c0_3 = arith.constant 0 : index
    %c0_4 = arith.constant 0 : index
    %14 = vector.load %arg3[%c0_3, %c0_4] : memref<1x512xf32, #tpu.memory_space<vmem>>, vector<1x512xf32>
    %15 = vector.broadcast %14 : vector<1x512xf32> to vector<8x512xf32>
    %16 = arith.addf %13, %15 : vector<8x512xf32>
    %17 = vector.extract_strided_slice %16 {offsets = [0, 0], sizes = [1, 512], strides = [1, 1]} : vector<8x512xf32> to vector<1x512xf32>
    %18 = vector.extract_strided_slice %17 {offsets = [0, 0], sizes = [1, 128], strides = [1, 1]} : vector<1x512xf32> to vector<1x128xf32>
    %19 = arith.negf %18 : vector<1x128xf32>
    %20 = math.exp %19 : vector<1x128xf32>
    %cst_5 = arith.constant 1.000000e+00 : f32
    %21 = vector.broadcast %cst_5 : f32 to vector<1x128xf32>
    %22 = arith.addf %21, %20 : vector<1x128xf32>
    %23 = arith.divf %21, %22 : vector<1x128xf32>
    %24 = vector.extract_strided_slice %17 {offsets = [0, 256], sizes = [1, 128], strides = [1, 1]} : vector<1x512xf32> to vector<1x128xf32>
    %25 = math.tanh %24 : vector<1x128xf32>
    %26 = vector.extract_strided_slice %17 {offsets = [0, 384], sizes = [1, 128], strides = [1, 1]} : vector<1x512xf32> to vector<1x128xf32>
    %27 = arith.negf %26 : vector<1x128xf32>
    %28 = math.exp %27 : vector<1x128xf32>
    %cst_6 = arith.constant 1.000000e+00 : f32
    %29 = vector.broadcast %cst_6 : f32 to vector<1x128xf32>
    %30 = arith.addf %29, %28 : vector<1x128xf32>
    %31 = arith.divf %29, %30 : vector<1x128xf32>
    %32 = arith.mulf %23, %25 : vector<1x128xf32>
    %33 = math.tanh %32 : vector<1x128xf32>
    %34 = arith.mulf %31, %33 : vector<1x128xf32>
    %35 = vector.extract_strided_slice %16 {offsets = [1, 0], sizes = [1, 512], strides = [1, 1]} : vector<8x512xf32> to vector<1x512xf32>
    %36 = arith.truncf %34 : vector<1x128xf32> to vector<1x128xbf16>
    %c0_7 = arith.constant 0 : index
    %c0_8 = arith.constant 0 : index
    %37 = vector.load %arg2[%c0_7, %c0_8] : memref<128x512xbf16, #tpu.memory_space<vmem>>, vector<128x512xbf16>
    %cst_9 = arith.constant dense<0.000000e+00> : vector<1x512xf32>
    %38 = tpu.matmul %36, %37, %cst_9 {dimension_numbers = #tpu.dot_dimension_numbers<[1], [0], [0], [1], [0, 0, 1, 1], [], []>} : vector<1x128xbf16>, vector<128x512xbf16>, vector<1x512xf32> -> vector<1x512xf32>
    %39 = arith.addf %35, %38 : vector<1x512xf32>
    %40 = vector.extract_strided_slice %39 {offsets = [0, 0], sizes = [1, 128], strides = [1, 1]} : vector<1x512xf32> to vector<1x128xf32>
    %41 = arith.negf %40 : vector<1x128xf32>
    %42 = math.exp %41 : vector<1x128xf32>
    %cst_10 = arith.constant 1.000000e+00 : f32
    %43 = vector.broadcast %cst_10 : f32 to vector<1x128xf32>
    %44 = arith.addf %43, %42 : vector<1x128xf32>
    %45 = arith.divf %43, %44 : vector<1x128xf32>
    %46 = vector.extract_strided_slice %39 {offsets = [0, 256], sizes = [1, 128], strides = [1, 1]} : vector<1x512xf32> to vector<1x128xf32>
    %47 = math.tanh %46 : vector<1x128xf32>
    %48 = vector.extract_strided_slice %39 {offsets = [0, 384], sizes = [1, 128], strides = [1, 1]} : vector<1x512xf32> to vector<1x128xf32>
    %49 = arith.negf %48 : vector<1x128xf32>
    %50 = math.exp %49 : vector<1x128xf32>
    %cst_11 = arith.constant 1.000000e+00 : f32
    %51 = vector.broadcast %cst_11 : f32 to vector<1x128xf32>
    %52 = arith.addf %51, %50 : vector<1x128xf32>
    %53 = arith.divf %51, %52 : vector<1x128xf32>
    %54 = vector.extract_strided_slice %39 {offsets = [0, 128], sizes = [1, 128], strides = [1, 1]} : vector<1x512xf32> to vector<1x128xf32>
    %55 = arith.negf %54 : vector<1x128xf32>
    %56 = math.exp %55 : vector<1x128xf32>
    %cst_12 = arith.constant 1.000000e+00 : f32
    %57 = vector.broadcast %cst_12 : f32 to vector<1x128xf32>
    %58 = arith.addf %57, %56 : vector<1x128xf32>
    %59 = arith.divf %57, %58 : vector<1x128xf32>
    %60 = arith.mulf %59, %32 : vector<1x128xf32>
    %61 = arith.mulf %45, %47 : vector<1x128xf32>
    %62 = arith.addf %60, %61 : vector<1x128xf32>
    %63 = math.tanh %62 : vector<1x128xf32>
    %64 = arith.mulf %53, %63 : vector<1x128xf32>
    %65 = vector.extract_strided_slice %16 {offsets = [2, 0], sizes = [1, 512], strides = [1, 1]} : vector<8x512xf32> to vector<1x512xf32>
    %66 = arith.truncf %64 : vector<1x128xf32> to vector<1x128xbf16>
    %c0_13 = arith.constant 0 : index
    %c0_14 = arith.constant 0 : index
    %67 = vector.load %arg2[%c0_13, %c0_14] : memref<128x512xbf16, #tpu.memory_space<vmem>>, vector<128x512xbf16>
    %cst_15 = arith.constant dense<0.000000e+00> : vector<1x512xf32>
    %68 = tpu.matmul %66, %67, %cst_15 {dimension_numbers = #tpu.dot_dimension_numbers<[1], [0], [0], [1], [0, 0, 1, 1], [], []>} : vector<1x128xbf16>, vector<128x512xbf16>, vector<1x512xf32> -> vector<1x512xf32>
    %69 = arith.addf %65, %68 : vector<1x512xf32>
    %70 = vector.extract_strided_slice %69 {offsets = [0, 0], sizes = [1, 128], strides = [1, 1]} : vector<1x512xf32> to vector<1x128xf32>
    %71 = arith.negf %70 : vector<1x128xf32>
    %72 = math.exp %71 : vector<1x128xf32>
    %cst_16 = arith.constant 1.000000e+00 : f32
    %73 = vector.broadcast %cst_16 : f32 to vector<1x128xf32>
    %74 = arith.addf %73, %72 : vector<1x128xf32>
    %75 = arith.divf %73, %74 : vector<1x128xf32>
    %76 = vector.extract_strided_slice %69 {offsets = [0, 256], sizes = [1, 128], strides = [1, 1]} : vector<1x512xf32> to vector<1x128xf32>
    %77 = math.tanh %76 : vector<1x128xf32>
    %78 = vector.extract_strided_slice %69 {offsets = [0, 384], sizes = [1, 128], strides = [1, 1]} : vector<1x512xf32> to vector<1x128xf32>
    %79 = arith.negf %78 : vector<1x128xf32>
    %80 = math.exp %79 : vector<1x128xf32>
    %cst_17 = arith.constant 1.000000e+00 : f32
    %81 = vector.broadcast %cst_17 : f32 to vector<1x128xf32>
    %82 = arith.addf %81, %80 : vector<1x128xf32>
    %83 = arith.divf %81, %82 : vector<1x128xf32>
    %84 = vector.extract_strided_slice %69 {offsets = [0, 128], sizes = [1, 128], strides = [1, 1]} : vector<1x512xf32> to vector<1x128xf32>
    %85 = arith.negf %84 : vector<1x128xf32>
    %86 = math.exp %85 : vector<1x128xf32>
    %cst_18 = arith.constant 1.000000e+00 : f32
    %87 = vector.broadcast %cst_18 : f32 to vector<1x128xf32>
    %88 = arith.addf %87, %86 : vector<1x128xf32>
    %89 = arith.divf %87, %88 : vector<1x128xf32>
    %90 = arith.mulf %89, %62 : vector<1x128xf32>
    %91 = arith.mulf %75, %77 : vector<1x128xf32>
    %92 = arith.addf %90, %91 : vector<1x128xf32>
    %93 = math.tanh %92 : vector<1x128xf32>
    %94 = arith.mulf %83, %93 : vector<1x128xf32>
    %95 = vector.extract_strided_slice %16 {offsets = [3, 0], sizes = [1, 512], strides = [1, 1]} : vector<8x512xf32> to vector<1x512xf32>
    %96 = arith.truncf %94 : vector<1x128xf32> to vector<1x128xbf16>
    %c0_19 = arith.constant 0 : index
    %c0_20 = arith.constant 0 : index
    %97 = vector.load %arg2[%c0_19, %c0_20] : memref<128x512xbf16, #tpu.memory_space<vmem>>, vector<128x512xbf16>
    %cst_21 = arith.constant dense<0.000000e+00> : vector<1x512xf32>
    %98 = tpu.matmul %96, %97, %cst_21 {dimension_numbers = #tpu.dot_dimension_numbers<[1], [0], [0], [1], [0, 0, 1, 1], [], []>} : vector<1x128xbf16>, vector<128x512xbf16>, vector<1x512xf32> -> vector<1x512xf32>
    %99 = arith.addf %95, %98 : vector<1x512xf32>
    %100 = vector.extract_strided_slice %99 {offsets = [0, 0], sizes = [1, 128], strides = [1, 1]} : vector<1x512xf32> to vector<1x128xf32>
    %101 = arith.negf %100 : vector<1x128xf32>
    %102 = math.exp %101 : vector<1x128xf32>
    %cst_22 = arith.constant 1.000000e+00 : f32
    %103 = vector.broadcast %cst_22 : f32 to vector<1x128xf32>
    %104 = arith.addf %103, %102 : vector<1x128xf32>
    %105 = arith.divf %103, %104 : vector<1x128xf32>
    %106 = vector.extract_strided_slice %99 {offsets = [0, 256], sizes = [1, 128], strides = [1, 1]} : vector<1x512xf32> to vector<1x128xf32>
    %107 = math.tanh %106 : vector<1x128xf32>
    %108 = vector.extract_strided_slice %99 {offsets = [0, 384], sizes = [1, 128], strides = [1, 1]} : vector<1x512xf32> to vector<1x128xf32>
    %109 = arith.negf %108 : vector<1x128xf32>
    %110 = math.exp %109 : vector<1x128xf32>
    %cst_23 = arith.constant 1.000000e+00 : f32
    %111 = vector.broadcast %cst_23 : f32 to vector<1x128xf32>
    %112 = arith.addf %111, %110 : vector<1x128xf32>
    %113 = arith.divf %111, %112 : vector<1x128xf32>
    %114 = vector.extract_strided_slice %99 {offsets = [0, 128], sizes = [1, 128], strides = [1, 1]} : vector<1x512xf32> to vector<1x128xf32>
    %115 = arith.negf %114 : vector<1x128xf32>
    %116 = math.exp %115 : vector<1x128xf32>
    %cst_24 = arith.constant 1.000000e+00 : f32
    %117 = vector.broadcast %cst_24 : f32 to vector<1x128xf32>
    %118 = arith.addf %117, %116 : vector<1x128xf32>
    %119 = arith.divf %117, %118 : vector<1x128xf32>
    %120 = arith.mulf %119, %92 : vector<1x128xf32>
    %121 = arith.mulf %105, %107 : vector<1x128xf32>
    %122 = arith.addf %120, %121 : vector<1x128xf32>
    %123 = math.tanh %122 : vector<1x128xf32>
    %124 = arith.mulf %113, %123 : vector<1x128xf32>
    %125 = vector.extract_strided_slice %16 {offsets = [4, 0], sizes = [1, 512], strides = [1, 1]} : vector<8x512xf32> to vector<1x512xf32>
    %126 = arith.truncf %124 : vector<1x128xf32> to vector<1x128xbf16>
    %c0_25 = arith.constant 0 : index
    %c0_26 = arith.constant 0 : index
    %127 = vector.load %arg2[%c0_25, %c0_26] : memref<128x512xbf16, #tpu.memory_space<vmem>>, vector<128x512xbf16>
    %cst_27 = arith.constant dense<0.000000e+00> : vector<1x512xf32>
    %128 = tpu.matmul %126, %127, %cst_27 {dimension_numbers = #tpu.dot_dimension_numbers<[1], [0], [0], [1], [0, 0, 1, 1], [], []>} : vector<1x128xbf16>, vector<128x512xbf16>, vector<1x512xf32> -> vector<1x512xf32>
    %129 = arith.addf %125, %128 : vector<1x512xf32>
    %130 = vector.extract_strided_slice %129 {offsets = [0, 0], sizes = [1, 128], strides = [1, 1]} : vector<1x512xf32> to vector<1x128xf32>
    %131 = arith.negf %130 : vector<1x128xf32>
    %132 = math.exp %131 : vector<1x128xf32>
    %cst_28 = arith.constant 1.000000e+00 : f32
    %133 = vector.broadcast %cst_28 : f32 to vector<1x128xf32>
    %134 = arith.addf %133, %132 : vector<1x128xf32>
    %135 = arith.divf %133, %134 : vector<1x128xf32>
    %136 = vector.extract_strided_slice %129 {offsets = [0, 256], sizes = [1, 128], strides = [1, 1]} : vector<1x512xf32> to vector<1x128xf32>
    %137 = math.tanh %136 : vector<1x128xf32>
    %138 = vector.extract_strided_slice %129 {offsets = [0, 384], sizes = [1, 128], strides = [1, 1]} : vector<1x512xf32> to vector<1x128xf32>
    %139 = arith.negf %138 : vector<1x128xf32>
    %140 = math.exp %139 : vector<1x128xf32>
    %cst_29 = arith.constant 1.000000e+00 : f32
    %141 = vector.broadcast %cst_29 : f32 to vector<1x128xf32>
    %142 = arith.addf %141, %140 : vector<1x128xf32>
    %143 = arith.divf %141, %142 : vector<1x128xf32>
    %144 = vector.extract_strided_slice %129 {offsets = [0, 128], sizes = [1, 128], strides = [1, 1]} : vector<1x512xf32> to vector<1x128xf32>
    %145 = arith.negf %144 : vector<1x128xf32>
    %146 = math.exp %145 : vector<1x128xf32>
    %cst_30 = arith.constant 1.000000e+00 : f32
    %147 = vector.broadcast %cst_30 : f32 to vector<1x128xf32>
    %148 = arith.addf %147, %146 : vector<1x128xf32>
    %149 = arith.divf %147, %148 : vector<1x128xf32>
    %150 = arith.mulf %149, %122 : vector<1x128xf32>
    %151 = arith.mulf %135, %137 : vector<1x128xf32>
    %152 = arith.addf %150, %151 : vector<1x128xf32>
    %153 = math.tanh %152 : vector<1x128xf32>
    %154 = arith.mulf %143, %153 : vector<1x128xf32>
    %155 = vector.extract_strided_slice %16 {offsets = [5, 0], sizes = [1, 512], strides = [1, 1]} : vector<8x512xf32> to vector<1x512xf32>
    %156 = arith.truncf %154 : vector<1x128xf32> to vector<1x128xbf16>
    %c0_31 = arith.constant 0 : index
    %c0_32 = arith.constant 0 : index
    %157 = vector.load %arg2[%c0_31, %c0_32] : memref<128x512xbf16, #tpu.memory_space<vmem>>, vector<128x512xbf16>
    %cst_33 = arith.constant dense<0.000000e+00> : vector<1x512xf32>
    %158 = tpu.matmul %156, %157, %cst_33 {dimension_numbers = #tpu.dot_dimension_numbers<[1], [0], [0], [1], [0, 0, 1, 1], [], []>} : vector<1x128xbf16>, vector<128x512xbf16>, vector<1x512xf32> -> vector<1x512xf32>
    %159 = arith.addf %155, %158 : vector<1x512xf32>
    %160 = vector.extract_strided_slice %159 {offsets = [0, 0], sizes = [1, 128], strides = [1, 1]} : vector<1x512xf32> to vector<1x128xf32>
    %161 = arith.negf %160 : vector<1x128xf32>
    %162 = math.exp %161 : vector<1x128xf32>
    %cst_34 = arith.constant 1.000000e+00 : f32
    %163 = vector.broadcast %cst_34 : f32 to vector<1x128xf32>
    %164 = arith.addf %163, %162 : vector<1x128xf32>
    %165 = arith.divf %163, %164 : vector<1x128xf32>
    %166 = vector.extract_strided_slice %159 {offsets = [0, 256], sizes = [1, 128], strides = [1, 1]} : vector<1x512xf32> to vector<1x128xf32>
    %167 = math.tanh %166 : vector<1x128xf32>
    %168 = vector.extract_strided_slice %159 {offsets = [0, 384], sizes = [1, 128], strides = [1, 1]} : vector<1x512xf32> to vector<1x128xf32>
    %169 = arith.negf %168 : vector<1x128xf32>
    %170 = math.exp %169 : vector<1x128xf32>
    %cst_35 = arith.constant 1.000000e+00 : f32
    %171 = vector.broadcast %cst_35 : f32 to vector<1x128xf32>
    %172 = arith.addf %171, %170 : vector<1x128xf32>
    %173 = arith.divf %171, %172 : vector<1x128xf32>
    %174 = vector.extract_strided_slice %159 {offsets = [0, 128], sizes = [1, 128], strides = [1, 1]} : vector<1x512xf32> to vector<1x128xf32>
    %175 = arith.negf %174 : vector<1x128xf32>
    %176 = math.exp %175 : vector<1x128xf32>
    %cst_36 = arith.constant 1.000000e+00 : f32
    %177 = vector.broadcast %cst_36 : f32 to vector<1x128xf32>
    %178 = arith.addf %177, %176 : vector<1x128xf32>
    %179 = arith.divf %177, %178 : vector<1x128xf32>
    %180 = arith.mulf %179, %152 : vector<1x128xf32>
    %181 = arith.mulf %165, %167 : vector<1x128xf32>
    %182 = arith.addf %180, %181 : vector<1x128xf32>
    %183 = math.tanh %182 : vector<1x128xf32>
    %184 = arith.mulf %173, %183 : vector<1x128xf32>
    %185 = vector.extract_strided_slice %16 {offsets = [6, 0], sizes = [1, 512], strides = [1, 1]} : vector<8x512xf32> to vector<1x512xf32>
    %186 = arith.truncf %184 : vector<1x128xf32> to vector<1x128xbf16>
    %c0_37 = arith.constant 0 : index
    %c0_38 = arith.constant 0 : index
    %187 = vector.load %arg2[%c0_37, %c0_38] : memref<128x512xbf16, #tpu.memory_space<vmem>>, vector<128x512xbf16>
    %cst_39 = arith.constant dense<0.000000e+00> : vector<1x512xf32>
    %188 = tpu.matmul %186, %187, %cst_39 {dimension_numbers = #tpu.dot_dimension_numbers<[1], [0], [0], [1], [0, 0, 1, 1], [], []>} : vector<1x128xbf16>, vector<128x512xbf16>, vector<1x512xf32> -> vector<1x512xf32>
    %189 = arith.addf %185, %188 : vector<1x512xf32>
    %190 = vector.extract_strided_slice %189 {offsets = [0, 0], sizes = [1, 128], strides = [1, 1]} : vector<1x512xf32> to vector<1x128xf32>
    %191 = arith.negf %190 : vector<1x128xf32>
    %192 = math.exp %191 : vector<1x128xf32>
    %cst_40 = arith.constant 1.000000e+00 : f32
    %193 = vector.broadcast %cst_40 : f32 to vector<1x128xf32>
    %194 = arith.addf %193, %192 : vector<1x128xf32>
    %195 = arith.divf %193, %194 : vector<1x128xf32>
    %196 = vector.extract_strided_slice %189 {offsets = [0, 256], sizes = [1, 128], strides = [1, 1]} : vector<1x512xf32> to vector<1x128xf32>
    %197 = math.tanh %196 : vector<1x128xf32>
    %198 = vector.extract_strided_slice %189 {offsets = [0, 384], sizes = [1, 128], strides = [1, 1]} : vector<1x512xf32> to vector<1x128xf32>
    %199 = arith.negf %198 : vector<1x128xf32>
    %200 = math.exp %199 : vector<1x128xf32>
    %cst_41 = arith.constant 1.000000e+00 : f32
    %201 = vector.broadcast %cst_41 : f32 to vector<1x128xf32>
    %202 = arith.addf %201, %200 : vector<1x128xf32>
    %203 = arith.divf %201, %202 : vector<1x128xf32>
    %204 = vector.extract_strided_slice %189 {offsets = [0, 128], sizes = [1, 128], strides = [1, 1]} : vector<1x512xf32> to vector<1x128xf32>
    %205 = arith.negf %204 : vector<1x128xf32>
    %206 = math.exp %205 : vector<1x128xf32>
    %cst_42 = arith.constant 1.000000e+00 : f32
    %207 = vector.broadcast %cst_42 : f32 to vector<1x128xf32>
    %208 = arith.addf %207, %206 : vector<1x128xf32>
    %209 = arith.divf %207, %208 : vector<1x128xf32>
    %210 = arith.mulf %209, %182 : vector<1x128xf32>
    %211 = arith.mulf %195, %197 : vector<1x128xf32>
    %212 = arith.addf %210, %211 : vector<1x128xf32>
    %213 = math.tanh %212 : vector<1x128xf32>
    %214 = arith.mulf %203, %213 : vector<1x128xf32>
    %215 = vector.extract_strided_slice %16 {offsets = [7, 0], sizes = [1, 512], strides = [1, 1]} : vector<8x512xf32> to vector<1x512xf32>
    %216 = arith.truncf %214 : vector<1x128xf32> to vector<1x128xbf16>
    %c0_43 = arith.constant 0 : index
    %c0_44 = arith.constant 0 : index
    %217 = vector.load %arg2[%c0_43, %c0_44] : memref<128x512xbf16, #tpu.memory_space<vmem>>, vector<128x512xbf16>
    %cst_45 = arith.constant dense<0.000000e+00> : vector<1x512xf32>
    %218 = tpu.matmul %216, %217, %cst_45 {dimension_numbers = #tpu.dot_dimension_numbers<[1], [0], [0], [1], [0, 0, 1, 1], [], []>} : vector<1x128xbf16>, vector<128x512xbf16>, vector<1x512xf32> -> vector<1x512xf32>
    %219 = arith.addf %215, %218 : vector<1x512xf32>
    %220 = vector.extract_strided_slice %219 {offsets = [0, 0], sizes = [1, 128], strides = [1, 1]} : vector<1x512xf32> to vector<1x128xf32>
    %221 = arith.negf %220 : vector<1x128xf32>
    %222 = math.exp %221 : vector<1x128xf32>
    %cst_46 = arith.constant 1.000000e+00 : f32
    %223 = vector.broadcast %cst_46 : f32 to vector<1x128xf32>
    %224 = arith.addf %223, %222 : vector<1x128xf32>
    %225 = arith.divf %223, %224 : vector<1x128xf32>
    %226 = vector.extract_strided_slice %219 {offsets = [0, 256], sizes = [1, 128], strides = [1, 1]} : vector<1x512xf32> to vector<1x128xf32>
    %227 = math.tanh %226 : vector<1x128xf32>
    %228 = vector.extract_strided_slice %219 {offsets = [0, 384], sizes = [1, 128], strides = [1, 1]} : vector<1x512xf32> to vector<1x128xf32>
    %229 = arith.negf %228 : vector<1x128xf32>
    %230 = math.exp %229 : vector<1x128xf32>
    %cst_47 = arith.constant 1.000000e+00 : f32
    %231 = vector.broadcast %cst_47 : f32 to vector<1x128xf32>
    %232 = arith.addf %231, %230 : vector<1x128xf32>
    %233 = arith.divf %231, %232 : vector<1x128xf32>
    %234 = vector.extract_strided_slice %219 {offsets = [0, 128], sizes = [1, 128], strides = [1, 1]} : vector<1x512xf32> to vector<1x128xf32>
    %235 = arith.negf %234 : vector<1x128xf32>
    %236 = math.exp %235 : vector<1x128xf32>
    %cst_48 = arith.constant 1.000000e+00 : f32
    %237 = vector.broadcast %cst_48 : f32 to vector<1x128xf32>
    %238 = arith.addf %237, %236 : vector<1x128xf32>
    %239 = arith.divf %237, %238 : vector<1x128xf32>
    %240 = arith.mulf %239, %212 : vector<1x128xf32>
    %241 = arith.mulf %225, %227 : vector<1x128xf32>
    %242 = arith.addf %240, %241 : vector<1x128xf32>
    %243 = math.tanh %242 : vector<1x128xf32>
    %244 = arith.mulf %233, %243 : vector<1x128xf32>
    %c0_i32_49 = arith.constant 0 : i32
    %245 = tpu.memref_slice %arg15[%c0_i32_49] : memref<5x!tpu.dma_semaphore, #tpu.memory_space<semaphore_mem>> -> memref<1x!tpu.dma_semaphore, #tpu.memory_space<semaphore_mem>>
    %246 = tpu.memref_squeeze %245 : memref<1x!tpu.dma_semaphore, #tpu.memory_space<semaphore_mem>> -> memref<!tpu.dma_semaphore, #tpu.memory_space<semaphore_mem>>
    tpu.wait_dma2 semaphore(%246 : memref<!tpu.dma_semaphore, #tpu.memory_space<semaphore_mem>>) src(%arg4 : memref<128x512xbf16, #tpu.memory_space<any>>) dst(%arg10 : memref<128x512xbf16, #tpu.memory_space<vmem>>)
    %c1_i32_50 = arith.constant 1 : i32
    %247 = tpu.memref_slice %arg15[%c1_i32_50] : memref<5x!tpu.dma_semaphore, #tpu.memory_space<semaphore_mem>> -> memref<1x!tpu.dma_semaphore, #tpu.memory_space<semaphore_mem>>
    %248 = tpu.memref_squeeze %247 : memref<1x!tpu.dma_semaphore, #tpu.memory_space<semaphore_mem>> -> memref<!tpu.dma_semaphore, #tpu.memory_space<semaphore_mem>>
    tpu.wait_dma2 semaphore(%248 : memref<!tpu.dma_semaphore, #tpu.memory_space<semaphore_mem>>) src(%arg5 : memref<128x512xbf16, #tpu.memory_space<any>>) dst(%arg11 : memref<128x512xbf16, #tpu.memory_space<vmem>>)
    %c2_i32_51 = arith.constant 2 : i32
    %249 = tpu.memref_slice %arg15[%c2_i32_51] : memref<5x!tpu.dma_semaphore, #tpu.memory_space<semaphore_mem>> -> memref<1x!tpu.dma_semaphore, #tpu.memory_space<semaphore_mem>>
    %250 = tpu.memref_squeeze %249 : memref<1x!tpu.dma_semaphore, #tpu.memory_space<semaphore_mem>> -> memref<!tpu.dma_semaphore, #tpu.memory_space<semaphore_mem>>
    tpu.wait_dma2 semaphore(%250 : memref<!tpu.dma_semaphore, #tpu.memory_space<semaphore_mem>>) src(%arg6 : memref<1x512xf32, #tpu.memory_space<any>>) dst(%arg12 : memref<1x512xf32, #tpu.memory_space<vmem>>)
    %251 = arith.truncf %244 : vector<1x128xf32> to vector<1x128xbf16>
    %c0_52 = arith.constant 0 : index
    %c0_53 = arith.constant 0 : index
    %252 = vector.load %arg10[%c0_52, %c0_53] : memref<128x512xbf16, #tpu.memory_space<vmem>>, vector<128x512xbf16>
    %cst_54 = arith.constant dense<0.000000e+00> : vector<1x512xf32>
    %253 = tpu.matmul %251, %252, %cst_54 {dimension_numbers = #tpu.dot_dimension_numbers<[1], [0], [0], [1], [0, 0, 1, 1], [], []>} : vector<1x128xbf16>, vector<128x512xbf16>, vector<1x512xf32> -> vector<1x512xf32>
    %c0_55 = arith.constant 0 : index
    %c0_56 = arith.constant 0 : index
    %254 = vector.load %arg12[%c0_55, %c0_56] : memref<1x512xf32, #tpu.memory_space<vmem>>, vector<1x512xf32>
    %255 = arith.addf %253, %254 : vector<1x512xf32>
    %256 = vector.extract_strided_slice %255 {offsets = [0, 0], sizes = [1, 128], strides = [1, 1]} : vector<1x512xf32> to vector<1x128xf32>
    %257 = arith.negf %256 : vector<1x128xf32>
    %258 = math.exp %257 : vector<1x128xf32>
    %cst_57 = arith.constant 1.000000e+00 : f32
    %259 = vector.broadcast %cst_57 : f32 to vector<1x128xf32>
    %260 = arith.addf %259, %258 : vector<1x128xf32>
    %261 = arith.divf %259, %260 : vector<1x128xf32>
    %262 = vector.extract_strided_slice %255 {offsets = [0, 256], sizes = [1, 128], strides = [1, 1]} : vector<1x512xf32> to vector<1x128xf32>
    %263 = math.tanh %262 : vector<1x128xf32>
    %264 = vector.extract_strided_slice %255 {offsets = [0, 384], sizes = [1, 128], strides = [1, 1]} : vector<1x512xf32> to vector<1x128xf32>
    %265 = arith.negf %264 : vector<1x128xf32>
    %266 = math.exp %265 : vector<1x128xf32>
    %cst_58 = arith.constant 1.000000e+00 : f32
    %267 = vector.broadcast %cst_58 : f32 to vector<1x128xf32>
    %268 = arith.addf %267, %266 : vector<1x128xf32>
    %269 = arith.divf %267, %268 : vector<1x128xf32>
    %270 = arith.mulf %261, %263 : vector<1x128xf32>
    %271 = math.tanh %270 : vector<1x128xf32>
    %272 = arith.mulf %269, %271 : vector<1x128xf32>
    %273 = arith.truncf %272 : vector<1x128xf32> to vector<1x128xbf16>
    %c0_59 = arith.constant 0 : index
    %c0_60 = arith.constant 0 : index
    %274 = vector.load %arg11[%c0_59, %c0_60] : memref<128x512xbf16, #tpu.memory_space<vmem>>, vector<128x512xbf16>
    %cst_61 = arith.constant dense<0.000000e+00> : vector<1x512xf32>
    %275 = tpu.matmul %273, %274, %cst_61 {dimension_numbers = #tpu.dot_dimension_numbers<[1], [0], [0], [1], [0, 0, 1, 1], [], []>} : vector<1x128xbf16>, vector<128x512xbf16>, vector<1x512xf32> -> vector<1x512xf32>
    %276 = arith.addf %255, %275 : vector<1x512xf32>
    %277 = vector.extract_strided_slice %276 {offsets = [0, 0], sizes = [1, 128], strides = [1, 1]} : vector<1x512xf32> to vector<1x128xf32>
    %278 = arith.negf %277 : vector<1x128xf32>
    %279 = math.exp %278 : vector<1x128xf32>
    %cst_62 = arith.constant 1.000000e+00 : f32
    %280 = vector.broadcast %cst_62 : f32 to vector<1x128xf32>
    %281 = arith.addf %280, %279 : vector<1x128xf32>
    %282 = arith.divf %280, %281 : vector<1x128xf32>
    %283 = vector.extract_strided_slice %276 {offsets = [0, 256], sizes = [1, 128], strides = [1, 1]} : vector<1x512xf32> to vector<1x128xf32>
    %284 = math.tanh %283 : vector<1x128xf32>
    %285 = vector.extract_strided_slice %276 {offsets = [0, 384], sizes = [1, 128], strides = [1, 1]} : vector<1x512xf32> to vector<1x128xf32>
    %286 = arith.negf %285 : vector<1x128xf32>
    %287 = math.exp %286 : vector<1x128xf32>
    %cst_63 = arith.constant 1.000000e+00 : f32
    %288 = vector.broadcast %cst_63 : f32 to vector<1x128xf32>
    %289 = arith.addf %288, %287 : vector<1x128xf32>
    %290 = arith.divf %288, %289 : vector<1x128xf32>
    %291 = vector.extract_strided_slice %276 {offsets = [0, 128], sizes = [1, 128], strides = [1, 1]} : vector<1x512xf32> to vector<1x128xf32>
    %292 = arith.negf %291 : vector<1x128xf32>
    %293 = math.exp %292 : vector<1x128xf32>
    %cst_64 = arith.constant 1.000000e+00 : f32
    %294 = vector.broadcast %cst_64 : f32 to vector<1x128xf32>
    %295 = arith.addf %294, %293 : vector<1x128xf32>
    %296 = arith.divf %294, %295 : vector<1x128xf32>
    %297 = arith.mulf %296, %270 : vector<1x128xf32>
    %298 = arith.mulf %282, %284 : vector<1x128xf32>
    %299 = arith.addf %297, %298 : vector<1x128xf32>
    %300 = math.tanh %299 : vector<1x128xf32>
    %301 = arith.mulf %290, %300 : vector<1x128xf32>
    %302 = arith.truncf %301 : vector<1x128xf32> to vector<1x128xbf16>
    %c0_65 = arith.constant 0 : index
    %c0_66 = arith.constant 0 : index
    %303 = vector.load %arg11[%c0_65, %c0_66] : memref<128x512xbf16, #tpu.memory_space<vmem>>, vector<128x512xbf16>
    %cst_67 = arith.constant dense<0.000000e+00> : vector<1x512xf32>
    %304 = tpu.matmul %302, %303, %cst_67 {dimension_numbers = #tpu.dot_dimension_numbers<[1], [0], [0], [1], [0, 0, 1, 1], [], []>} : vector<1x128xbf16>, vector<128x512xbf16>, vector<1x512xf32> -> vector<1x512xf32>
    %305 = arith.addf %255, %304 : vector<1x512xf32>
    %306 = vector.extract_strided_slice %305 {offsets = [0, 0], sizes = [1, 128], strides = [1, 1]} : vector<1x512xf32> to vector<1x128xf32>
    %307 = arith.negf %306 : vector<1x128xf32>
    %308 = math.exp %307 : vector<1x128xf32>
    %cst_68 = arith.constant 1.000000e+00 : f32
    %309 = vector.broadcast %cst_68 : f32 to vector<1x128xf32>
    %310 = arith.addf %309, %308 : vector<1x128xf32>
    %311 = arith.divf %309, %310 : vector<1x128xf32>
    %312 = vector.extract_strided_slice %305 {offsets = [0, 256], sizes = [1, 128], strides = [1, 1]} : vector<1x512xf32> to vector<1x128xf32>
    %313 = math.tanh %312 : vector<1x128xf32>
    %314 = vector.extract_strided_slice %305 {offsets = [0, 384], sizes = [1, 128], strides = [1, 1]} : vector<1x512xf32> to vector<1x128xf32>
    %315 = arith.negf %314 : vector<1x128xf32>
    %316 = math.exp %315 : vector<1x128xf32>
    %cst_69 = arith.constant 1.000000e+00 : f32
    %317 = vector.broadcast %cst_69 : f32 to vector<1x128xf32>
    %318 = arith.addf %317, %316 : vector<1x128xf32>
    %319 = arith.divf %317, %318 : vector<1x128xf32>
    %320 = vector.extract_strided_slice %305 {offsets = [0, 128], sizes = [1, 128], strides = [1, 1]} : vector<1x512xf32> to vector<1x128xf32>
    %321 = arith.negf %320 : vector<1x128xf32>
    %322 = math.exp %321 : vector<1x128xf32>
    %cst_70 = arith.constant 1.000000e+00 : f32
    %323 = vector.broadcast %cst_70 : f32 to vector<1x128xf32>
    %324 = arith.addf %323, %322 : vector<1x128xf32>
    %325 = arith.divf %323, %324 : vector<1x128xf32>
    %326 = arith.mulf %325, %299 : vector<1x128xf32>
    %327 = arith.mulf %311, %313 : vector<1x128xf32>
    %328 = arith.addf %326, %327 : vector<1x128xf32>
    %329 = math.tanh %328 : vector<1x128xf32>
    %330 = arith.mulf %319, %329 : vector<1x128xf32>
    %331 = arith.truncf %330 : vector<1x128xf32> to vector<1x128xbf16>
    %c0_71 = arith.constant 0 : index
    %c0_72 = arith.constant 0 : index
    %332 = vector.load %arg11[%c0_71, %c0_72] : memref<128x512xbf16, #tpu.memory_space<vmem>>, vector<128x512xbf16>
    %cst_73 = arith.constant dense<0.000000e+00> : vector<1x512xf32>
    %333 = tpu.matmul %331, %332, %cst_73 {dimension_numbers = #tpu.dot_dimension_numbers<[1], [0], [0], [1], [0, 0, 1, 1], [], []>} : vector<1x128xbf16>, vector<128x512xbf16>, vector<1x512xf32> -> vector<1x512xf32>
    %334 = arith.addf %255, %333 : vector<1x512xf32>
    %335 = vector.extract_strided_slice %334 {offsets = [0, 0], sizes = [1, 128], strides = [1, 1]} : vector<1x512xf32> to vector<1x128xf32>
    %336 = arith.negf %335 : vector<1x128xf32>
    %337 = math.exp %336 : vector<1x128xf32>
    %cst_74 = arith.constant 1.000000e+00 : f32
    %338 = vector.broadcast %cst_74 : f32 to vector<1x128xf32>
    %339 = arith.addf %338, %337 : vector<1x128xf32>
    %340 = arith.divf %338, %339 : vector<1x128xf32>
    %341 = vector.extract_strided_slice %334 {offsets = [0, 256], sizes = [1, 128], strides = [1, 1]} : vector<1x512xf32> to vector<1x128xf32>
    %342 = math.tanh %341 : vector<1x128xf32>
    %343 = vector.extract_strided_slice %334 {offsets = [0, 384], sizes = [1, 128], strides = [1, 1]} : vector<1x512xf32> to vector<1x128xf32>
    %344 = arith.negf %343 : vector<1x128xf32>
    %345 = math.exp %344 : vector<1x128xf32>
    %cst_75 = arith.constant 1.000000e+00 : f32
    %346 = vector.broadcast %cst_75 : f32 to vector<1x128xf32>
    %347 = arith.addf %346, %345 : vector<1x128xf32>
    %348 = arith.divf %346, %347 : vector<1x128xf32>
    %349 = vector.extract_strided_slice %334 {offsets = [0, 128], sizes = [1, 128], strides = [1, 1]} : vector<1x512xf32> to vector<1x128xf32>
    %350 = arith.negf %349 : vector<1x128xf32>
    %351 = math.exp %350 : vector<1x128xf32>
    %cst_76 = arith.constant 1.000000e+00 : f32
    %352 = vector.broadcast %cst_76 : f32 to vector<1x128xf32>
    %353 = arith.addf %352, %351 : vector<1x128xf32>
    %354 = arith.divf %352, %353 : vector<1x128xf32>
    %355 = arith.mulf %354, %328 : vector<1x128xf32>
    %356 = arith.mulf %340, %342 : vector<1x128xf32>
    %357 = arith.addf %355, %356 : vector<1x128xf32>
    %358 = math.tanh %357 : vector<1x128xf32>
    %359 = arith.mulf %348, %358 : vector<1x128xf32>
    %360 = arith.truncf %359 : vector<1x128xf32> to vector<1x128xbf16>
    %c0_77 = arith.constant 0 : index
    %c0_78 = arith.constant 0 : index
    %361 = vector.load %arg11[%c0_77, %c0_78] : memref<128x512xbf16, #tpu.memory_space<vmem>>, vector<128x512xbf16>
    %cst_79 = arith.constant dense<0.000000e+00> : vector<1x512xf32>
    %362 = tpu.matmul %360, %361, %cst_79 {dimension_numbers = #tpu.dot_dimension_numbers<[1], [0], [0], [1], [0, 0, 1, 1], [], []>} : vector<1x128xbf16>, vector<128x512xbf16>, vector<1x512xf32> -> vector<1x512xf32>
    %363 = arith.addf %255, %362 : vector<1x512xf32>
    %364 = vector.extract_strided_slice %363 {offsets = [0, 0], sizes = [1, 128], strides = [1, 1]} : vector<1x512xf32> to vector<1x128xf32>
    %365 = arith.negf %364 : vector<1x128xf32>
    %366 = math.exp %365 : vector<1x128xf32>
    %cst_80 = arith.constant 1.000000e+00 : f32
    %367 = vector.broadcast %cst_80 : f32 to vector<1x128xf32>
    %368 = arith.addf %367, %366 : vector<1x128xf32>
    %369 = arith.divf %367, %368 : vector<1x128xf32>
    %370 = vector.extract_strided_slice %363 {offsets = [0, 256], sizes = [1, 128], strides = [1, 1]} : vector<1x512xf32> to vector<1x128xf32>
    %371 = math.tanh %370 : vector<1x128xf32>
    %372 = vector.extract_strided_slice %363 {offsets = [0, 384], sizes = [1, 128], strides = [1, 1]} : vector<1x512xf32> to vector<1x128xf32>
    %373 = arith.negf %372 : vector<1x128xf32>
    %374 = math.exp %373 : vector<1x128xf32>
    %cst_81 = arith.constant 1.000000e+00 : f32
    %375 = vector.broadcast %cst_81 : f32 to vector<1x128xf32>
    %376 = arith.addf %375, %374 : vector<1x128xf32>
    %377 = arith.divf %375, %376 : vector<1x128xf32>
    %378 = vector.extract_strided_slice %363 {offsets = [0, 128], sizes = [1, 128], strides = [1, 1]} : vector<1x512xf32> to vector<1x128xf32>
    %379 = arith.negf %378 : vector<1x128xf32>
    %380 = math.exp %379 : vector<1x128xf32>
    %cst_82 = arith.constant 1.000000e+00 : f32
    %381 = vector.broadcast %cst_82 : f32 to vector<1x128xf32>
    %382 = arith.addf %381, %380 : vector<1x128xf32>
    %383 = arith.divf %381, %382 : vector<1x128xf32>
    %384 = arith.mulf %383, %357 : vector<1x128xf32>
    %385 = arith.mulf %369, %371 : vector<1x128xf32>
    %386 = arith.addf %384, %385 : vector<1x128xf32>
    %387 = math.tanh %386 : vector<1x128xf32>
    %388 = arith.mulf %377, %387 : vector<1x128xf32>
    %389 = arith.truncf %388 : vector<1x128xf32> to vector<1x128xbf16>
    %c0_83 = arith.constant 0 : index
    %c0_84 = arith.constant 0 : index
    %390 = vector.load %arg11[%c0_83, %c0_84] : memref<128x512xbf16, #tpu.memory_space<vmem>>, vector<128x512xbf16>
    %cst_85 = arith.constant dense<0.000000e+00> : vector<1x512xf32>
    %391 = tpu.matmul %389, %390, %cst_85 {dimension_numbers = #tpu.dot_dimension_numbers<[1], [0], [0], [1], [0, 0, 1, 1], [], []>} : vector<1x128xbf16>, vector<128x512xbf16>, vector<1x512xf32> -> vector<1x512xf32>
    %392 = arith.addf %255, %391 : vector<1x512xf32>
    %393 = vector.extract_strided_slice %392 {offsets = [0, 0], sizes = [1, 128], strides = [1, 1]} : vector<1x512xf32> to vector<1x128xf32>
    %394 = arith.negf %393 : vector<1x128xf32>
    %395 = math.exp %394 : vector<1x128xf32>
    %cst_86 = arith.constant 1.000000e+00 : f32
    %396 = vector.broadcast %cst_86 : f32 to vector<1x128xf32>
    %397 = arith.addf %396, %395 : vector<1x128xf32>
    %398 = arith.divf %396, %397 : vector<1x128xf32>
    %399 = vector.extract_strided_slice %392 {offsets = [0, 256], sizes = [1, 128], strides = [1, 1]} : vector<1x512xf32> to vector<1x128xf32>
    %400 = math.tanh %399 : vector<1x128xf32>
    %401 = vector.extract_strided_slice %392 {offsets = [0, 384], sizes = [1, 128], strides = [1, 1]} : vector<1x512xf32> to vector<1x128xf32>
    %402 = arith.negf %401 : vector<1x128xf32>
    %403 = math.exp %402 : vector<1x128xf32>
    %cst_87 = arith.constant 1.000000e+00 : f32
    %404 = vector.broadcast %cst_87 : f32 to vector<1x128xf32>
    %405 = arith.addf %404, %403 : vector<1x128xf32>
    %406 = arith.divf %404, %405 : vector<1x128xf32>
    %407 = vector.extract_strided_slice %392 {offsets = [0, 128], sizes = [1, 128], strides = [1, 1]} : vector<1x512xf32> to vector<1x128xf32>
    %408 = arith.negf %407 : vector<1x128xf32>
    %409 = math.exp %408 : vector<1x128xf32>
    %cst_88 = arith.constant 1.000000e+00 : f32
    %410 = vector.broadcast %cst_88 : f32 to vector<1x128xf32>
    %411 = arith.addf %410, %409 : vector<1x128xf32>
    %412 = arith.divf %410, %411 : vector<1x128xf32>
    %413 = arith.mulf %412, %386 : vector<1x128xf32>
    %414 = arith.mulf %398, %400 : vector<1x128xf32>
    %415 = arith.addf %413, %414 : vector<1x128xf32>
    %416 = math.tanh %415 : vector<1x128xf32>
    %417 = arith.mulf %406, %416 : vector<1x128xf32>
    %418 = arith.truncf %417 : vector<1x128xf32> to vector<1x128xbf16>
    %c0_89 = arith.constant 0 : index
    %c0_90 = arith.constant 0 : index
    %419 = vector.load %arg11[%c0_89, %c0_90] : memref<128x512xbf16, #tpu.memory_space<vmem>>, vector<128x512xbf16>
    %cst_91 = arith.constant dense<0.000000e+00> : vector<1x512xf32>
    %420 = tpu.matmul %418, %419, %cst_91 {dimension_numbers = #tpu.dot_dimension_numbers<[1], [0], [0], [1], [0, 0, 1, 1], [], []>} : vector<1x128xbf16>, vector<128x512xbf16>, vector<1x512xf32> -> vector<1x512xf32>
    %421 = arith.addf %255, %420 : vector<1x512xf32>
    %422 = vector.extract_strided_slice %421 {offsets = [0, 0], sizes = [1, 128], strides = [1, 1]} : vector<1x512xf32> to vector<1x128xf32>
    %423 = arith.negf %422 : vector<1x128xf32>
    %424 = math.exp %423 : vector<1x128xf32>
    %cst_92 = arith.constant 1.000000e+00 : f32
    %425 = vector.broadcast %cst_92 : f32 to vector<1x128xf32>
    %426 = arith.addf %425, %424 : vector<1x128xf32>
    %427 = arith.divf %425, %426 : vector<1x128xf32>
    %428 = vector.extract_strided_slice %421 {offsets = [0, 256], sizes = [1, 128], strides = [1, 1]} : vector<1x512xf32> to vector<1x128xf32>
    %429 = math.tanh %428 : vector<1x128xf32>
    %430 = vector.extract_strided_slice %421 {offsets = [0, 384], sizes = [1, 128], strides = [1, 1]} : vector<1x512xf32> to vector<1x128xf32>
    %431 = arith.negf %430 : vector<1x128xf32>
    %432 = math.exp %431 : vector<1x128xf32>
    %cst_93 = arith.constant 1.000000e+00 : f32
    %433 = vector.broadcast %cst_93 : f32 to vector<1x128xf32>
    %434 = arith.addf %433, %432 : vector<1x128xf32>
    %435 = arith.divf %433, %434 : vector<1x128xf32>
    %436 = vector.extract_strided_slice %421 {offsets = [0, 128], sizes = [1, 128], strides = [1, 1]} : vector<1x512xf32> to vector<1x128xf32>
    %437 = arith.negf %436 : vector<1x128xf32>
    %438 = math.exp %437 : vector<1x128xf32>
    %cst_94 = arith.constant 1.000000e+00 : f32
    %439 = vector.broadcast %cst_94 : f32 to vector<1x128xf32>
    %440 = arith.addf %439, %438 : vector<1x128xf32>
    %441 = arith.divf %439, %440 : vector<1x128xf32>
    %442 = arith.mulf %441, %415 : vector<1x128xf32>
    %443 = arith.mulf %427, %429 : vector<1x128xf32>
    %444 = arith.addf %442, %443 : vector<1x128xf32>
    %445 = math.tanh %444 : vector<1x128xf32>
    %446 = arith.mulf %435, %445 : vector<1x128xf32>
    %447 = arith.truncf %446 : vector<1x128xf32> to vector<1x128xbf16>
    %c0_95 = arith.constant 0 : index
    %c0_96 = arith.constant 0 : index
    %448 = vector.load %arg11[%c0_95, %c0_96] : memref<128x512xbf16, #tpu.memory_space<vmem>>, vector<128x512xbf16>
    %cst_97 = arith.constant dense<0.000000e+00> : vector<1x512xf32>
    %449 = tpu.matmul %447, %448, %cst_97 {dimension_numbers = #tpu.dot_dimension_numbers<[1], [0], [0], [1], [0, 0, 1, 1], [], []>} : vector<1x128xbf16>, vector<128x512xbf16>, vector<1x512xf32> -> vector<1x512xf32>
    %450 = arith.addf %255, %449 : vector<1x512xf32>
    %451 = vector.extract_strided_slice %450 {offsets = [0, 0], sizes = [1, 128], strides = [1, 1]} : vector<1x512xf32> to vector<1x128xf32>
    %452 = arith.negf %451 : vector<1x128xf32>
    %453 = math.exp %452 : vector<1x128xf32>
    %cst_98 = arith.constant 1.000000e+00 : f32
    %454 = vector.broadcast %cst_98 : f32 to vector<1x128xf32>
    %455 = arith.addf %454, %453 : vector<1x128xf32>
    %456 = arith.divf %454, %455 : vector<1x128xf32>
    %457 = vector.extract_strided_slice %450 {offsets = [0, 256], sizes = [1, 128], strides = [1, 1]} : vector<1x512xf32> to vector<1x128xf32>
    %458 = math.tanh %457 : vector<1x128xf32>
    %459 = vector.extract_strided_slice %450 {offsets = [0, 384], sizes = [1, 128], strides = [1, 1]} : vector<1x512xf32> to vector<1x128xf32>
    %460 = arith.negf %459 : vector<1x128xf32>
    %461 = math.exp %460 : vector<1x128xf32>
    %cst_99 = arith.constant 1.000000e+00 : f32
    %462 = vector.broadcast %cst_99 : f32 to vector<1x128xf32>
    %463 = arith.addf %462, %461 : vector<1x128xf32>
    %464 = arith.divf %462, %463 : vector<1x128xf32>
    %465 = vector.extract_strided_slice %450 {offsets = [0, 128], sizes = [1, 128], strides = [1, 1]} : vector<1x512xf32> to vector<1x128xf32>
    %466 = arith.negf %465 : vector<1x128xf32>
    %467 = math.exp %466 : vector<1x128xf32>
    %cst_100 = arith.constant 1.000000e+00 : f32
    %468 = vector.broadcast %cst_100 : f32 to vector<1x128xf32>
    %469 = arith.addf %468, %467 : vector<1x128xf32>
    %470 = arith.divf %468, %469 : vector<1x128xf32>
    %471 = arith.mulf %470, %444 : vector<1x128xf32>
    %472 = arith.mulf %456, %458 : vector<1x128xf32>
    %473 = arith.addf %471, %472 : vector<1x128xf32>
    %474 = math.tanh %473 : vector<1x128xf32>
    %475 = arith.mulf %464, %474 : vector<1x128xf32>
    %476 = tpu.concatenate %272, %301, %330, %359, %388, %417, %446, %475 in 0 : vector<1x128xf32>, vector<1x128xf32>, vector<1x128xf32>, vector<1x128xf32>, vector<1x128xf32>, vector<1x128xf32>, vector<1x128xf32>, vector<1x128xf32> -> vector<8x128xf32>
    %c3_i32_101 = arith.constant 3 : i32
    %477 = tpu.memref_slice %arg15[%c3_i32_101] : memref<5x!tpu.dma_semaphore, #tpu.memory_space<semaphore_mem>> -> memref<1x!tpu.dma_semaphore, #tpu.memory_space<semaphore_mem>>
    %478 = tpu.memref_squeeze %477 : memref<1x!tpu.dma_semaphore, #tpu.memory_space<semaphore_mem>> -> memref<!tpu.dma_semaphore, #tpu.memory_space<semaphore_mem>>
    tpu.wait_dma2 semaphore(%478 : memref<!tpu.dma_semaphore, #tpu.memory_space<semaphore_mem>>) src(%arg7 : memref<128x128xbf16, #tpu.memory_space<any>>) dst(%arg13 : memref<128x128xbf16, #tpu.memory_space<vmem>>)
    %c4_i32_102 = arith.constant 4 : i32
    %479 = tpu.memref_slice %arg15[%c4_i32_102] : memref<5x!tpu.dma_semaphore, #tpu.memory_space<semaphore_mem>> -> memref<1x!tpu.dma_semaphore, #tpu.memory_space<semaphore_mem>>
    %480 = tpu.memref_squeeze %479 : memref<1x!tpu.dma_semaphore, #tpu.memory_space<semaphore_mem>> -> memref<!tpu.dma_semaphore, #tpu.memory_space<semaphore_mem>>
    tpu.wait_dma2 semaphore(%480 : memref<!tpu.dma_semaphore, #tpu.memory_space<semaphore_mem>>) src(%arg8 : memref<1x128xf32, #tpu.memory_space<any>>) dst(%arg14 : memref<1x128xf32, #tpu.memory_space<vmem>>)
    %481 = arith.truncf %476 : vector<8x128xf32> to vector<8x128xbf16>
    %c0_103 = arith.constant 0 : index
    %c0_104 = arith.constant 0 : index
    %482 = vector.load %arg13[%c0_103, %c0_104] : memref<128x128xbf16, #tpu.memory_space<vmem>>, vector<128x128xbf16>
    %cst_105 = arith.constant dense<0.000000e+00> : vector<8x128xf32>
    %483 = tpu.matmul %481, %482, %cst_105 {dimension_numbers = #tpu.dot_dimension_numbers<[1], [0], [0], [1], [0, 0, 1, 1], [], []>} : vector<8x128xbf16>, vector<128x128xbf16>, vector<8x128xf32> -> vector<8x128xf32>
    %c0_106 = arith.constant 0 : index
    %c0_107 = arith.constant 0 : index
    %484 = vector.load %arg14[%c0_106, %c0_107] : memref<1x128xf32, #tpu.memory_space<vmem>>, vector<1x128xf32>
    %485 = vector.broadcast %484 : vector<1x128xf32> to vector<8x128xf32>
    %486 = arith.addf %483, %485 : vector<8x128xf32>
    %cst_108 = arith.constant dense<0xFF800000> : vector<8xf32>
    %487 = vector.multi_reduction <maximumf>, %486, %cst_108 [1] : vector<8x128xf32> to vector<8xf32>
    %488 = vector.shape_cast %487 : vector<8xf32> to vector<8x1xf32>
    %489 = vector.broadcast %488 : vector<8x1xf32> to vector<8x128xf32>
    %490 = arith.subf %486, %489 : vector<8x128xf32>
    %491 = math.exp %490 : vector<8x128xf32>
    %cst_109 = arith.constant dense<0.000000e+00> : vector<8xf32>
    %492 = vector.multi_reduction <add>, %491, %cst_109 [1] : vector<8x128xf32> to vector<8xf32>
    %493 = vector.shape_cast %492 : vector<8xf32> to vector<8x1xf32>
    %494 = tpu.reciprocal %493 {approx = true} : vector<8x1xf32> -> vector<8x1xf32>
    %495 = vector.broadcast %494 : vector<8x1xf32> to vector<8x128xf32>
    %496 = arith.mulf %491, %495 : vector<8x128xf32>
    %c0_110 = arith.constant 0 : index
    %c0_111 = arith.constant 0 : index
    %497 = vector.load %arg9[%c0_110, %c0_111] : memref<8x128xf32, #tpu.memory_space<vmem>>, vector<8x128xf32>
    tpu.vector_store %arg9[%c0_110, %c0_111], %496 {strides = array<i32>} : memref<8x128xf32, #tpu.memory_space<vmem>>, vector<8x128xf32>,
    return
  }
}

</mosaic_0001>

<bundles_post_ra>
// kernel: addition_lstm_forward.1
= control target key start
LH: loop header
LB: loop body
LE: loop exit
PB: predicated region body
PF: predicated region fallthrough
CT: control target
= control target key end

     0   :  { %14 = vsyncpa [#allocation9], 0  ;;  %s4170_s0 = inlined_call_operand.hbm [shape: f32[8,12], index: 0, kind: input, shape index: {}]   ;;  %s4171_s1 = inlined_call_operand.hbm [shape: bf16[12,512], index: 1, kind: input, shape index: {}]   ;;  %s4172_s2 = inlined_call_operand.hbm [shape: bf16[128,512], index: 2, kind: input, shape index: {}]   ;;  %s4173_s3 = inlined_call_operand.vmem [shape: f32[1,512], index: 3, kind: input, shape index: {}]   ;;  %s4174_s4 = inlined_call_operand.hbm [shape: bf16[128,512], index: 4, kind: input, shape index: {}]   ;;  %s4175_s5 = inlined_call_operand.hbm [shape: bf16[128,512], index: 5, kind: input, shape index: {}]   ;;  %s4176_s6 = inlined_call_operand.hbm [shape: f32[1,512], index: 6, kind: input, shape index: {}]   ;;  %s4177_s7 = inlined_call_operand.hbm [shape: bf16[128,128], index: 7, kind: input, shape index: {}]   ;;  %s4178_s8 = inlined_call_operand.vmem [shape: f32[1,128], index: 8, kind: input, shape index: {}]   ;;  %s4179_s9 = inlined_call_operand.hbm [shape: f32[8,128], index: 9, kind: output, shape index: {}]  }
   0x1   :  { %15 = vsyncpa [#allocation12], 0 }
   0x2   :  { %16 = vsyncpa [#allocation10], 0  ;;  %s3207_s30 = smov [#allocation11]   ;;  %s3059_s13 = scalar_lea.hbm %s4171_s1, 512 }
   0x3   :  { %s32_s10 = sshll.u32 %s3207_s30, 4  ;;  %p3060_p0 = scmp.ne.s32.totalorder %s4171_s1, %s3059_s13  ;;  %s33_s10 = int_to_ptr.vmem [resolvable:$true] %s32_s10 }
   0x4   :  { %p3063_p1 = scmp.lt.u32.totalorder %s3059_s13, %s4171_s1 }
   0x6   :  { %p3065_p2 = pnand %p3063_p1, %p3060_p0 }
   0x8   :  { %3068 = shalt.err (!%p3065_p2)
}
   0x9   :  { %s3069_s18 = scalar_lea.vmem %s33_s10, 512  ;;  %p3074_p4 = scmp.lt.s32.totalorder %s33_s10, %s33_s10 }
   0xa   :  { %p3070_p3 = scmp.ne.s32.totalorder %s33_s10, %s3069_s18  ;;  %p3075_p5 = scmp.lt.s32.totalorder %s3069_s18, %s3069_s18 }
   0xc   :  { %p3076_p6 = por %p3075_p5, %p3074_p4 }
   0xe   :  { %p3077_p7 = pnand %p3076_p6, %p3070_p3 }
  0x10   :  { %3080 = shalt.err (!%p3077_p7)
}
  0x11   :  { %s3208_s19 = smov 256   ;;  %s3209_s20 = smov 16  }
  0x12   :  { %38 = dma.hbm_to_vmem [thread:$0]  %s4171_s1, 512, %s33_s10, [#allocation12], %s3208_s19, %s3208_s19, %s3209_s20  }
  0x13   :  { %s3210_s23 = smov [#allocation8]   ;;  %s3211_s25 = smov [#allocation13]  }
  0x14   :  { %s23_s24 = sshll.u32 %s3210_s23, 4  ;;  %s44_s26 = sshll.u32 %s3211_s25, 4  ;;  %s24_s24 = int_to_ptr.vmem [resolvable:$true] %s23_s24  ;;  %s45_s26 = int_to_ptr.vmem [resolvable:$true] %s44_s26 }
  0x15   :  { %s3081_s29 = scalar_lea.hbm %s4170_s0, 128 }
  0x16   :  { %p3082_p8 = scmp.ne.s32.totalorder %s4170_s0, %s3081_s29  ;;  %p3085_p9 = scmp.lt.u32.totalorder %s3081_s29, %s4170_s0 }
  0x18   :  { %p3087_p10 = pnand %p3085_p9, %p3082_p8 }
  0x1a   :  { %3090 = shalt.err (!%p3087_p10)
}
  0x1b   :  { %s3091_s1 = scalar_lea.vmem %s24_s24, 128  ;;  %p3096_p12 = scmp.lt.s32.totalorder %s24_s24, %s24_s24 }
  0x1c   :  { %p3092_p11 = scmp.ne.s32.totalorder %s24_s24, %s3091_s1  ;;  %p3097_p13 = scmp.lt.s32.totalorder %s3091_s1, %s3091_s1 }
  0x1e   :  { %p3098_p0 = por %p3097_p13, %p3096_p12 }
  0x20   :  { %p3099_p1 = pnand %p3098_p0, %p3092_p11 }
  0x22   :  { %3102 = shalt.err (!%p3099_p1)
}
  0x23   :  { %26 = dma.hbm_to_vmem [thread:$0]  %s4170_s0, 128, %s24_s24, [#allocation9]  }
  0x24   :  { %s3103_s17 = scalar_lea.hbm %s4172_s2, 4096 }
  0x25   :  { %p3104_p2 = scmp.ne.s32.totalorder %s4172_s2, %s3103_s17  ;;  %p3107_p3 = scmp.lt.u32.totalorder %s3103_s17, %s4172_s2 }
  0x27   :  { %p3109_p4 = pnand %p3107_p3, %p3104_p2 }
  0x29   :  { %3112 = shalt.err (!%p3109_p4)
}
  0x2a   :  { %s3113_s25 = scalar_lea.vmem %s45_s26, 4096  ;;  %p3118_p6 = scmp.lt.s32.totalorder %s45_s26, %s45_s26 }
  0x2b   :  { %p3114_p5 = scmp.ne.s32.totalorder %s45_s26, %s3113_s25  ;;  %p3119_p7 = scmp.lt.s32.totalorder %s3113_s25, %s3113_s25 }
  0x2d   :  { %p3120_p8 = por %p3119_p7, %p3118_p6 }
  0x2f   :  { %p3121_p9 = pnand %p3120_p8, %p3114_p5 }
  0x31   :  { %3124 = shalt.err (!%p3121_p9)
}
  0x32   :  { %50 = dma.hbm_to_vmem [thread:$0]  %s4172_s2, 4096, %s45_s26, [#allocation12], %s3208_s19, %s3208_s19, %s3209_s20  }
  0x33   :  { %3191 = dma.done.wait [#allocation9], 128  }
  0x34   :  { %3192 = vsyncadd [#allocation9], 4294967168 }
  0x35   :  { %3193 = dma.done.wait [#allocation12], 4608  }
  0x36   :  { %3194 = vsyncadd [#allocation12], 4294962688  ;;  %s67_s27 = sld [smem:[#allocation0]]   ;;  %91 = sst [smem:[#allocation16 + $0x6]] %s3208_s19 }
  0x37   :  { %s3212_s28 = smov [#allocation2]   ;;  %s3213_s30 = smov 512  }
  0x38   :  { %s75_s29 = sshll.u32 %s3212_s28, 4  ;;  %79 = sst [smem:[#allocation16]] %s3213_s30  ;;  %s76_s29 = int_to_ptr.vmem [resolvable:$true] %s75_s29 }
  0x39   :  { %81 = sst [smem:[#allocation16 + $0x1]] %s3213_s30  ;;  %s3214_s11 = smov 4  }
  0x3a   :  { %83 = sst [smem:[#allocation16 + $0x2]] %s3214_s11  ;;  %s3215_s12 = smov 64  }
  0x3b   :  { %85 = sst [smem:[#allocation16 + $0x3]] %s3215_s12  ;;  %s3216_s1 = smov 128  }
  0x3c   :  { %s2600_s13 = sshll.u32 %s67_s27, 26  ;;  %87 = sst [smem:[#allocation16 + $0x4]] %s3216_s1 }
  0x3d   :  { %s2601_s2 = sadd.s32 134217728, %s2600_s13  ;;  %s3217_s20 = smov 2  }
  0x3e   :  { %89 = sst [smem:[#allocation16 + $0x5]] %s3217_s20  ;;  %s3218_s26 = smov [#allocation7]  }
  0x3f   :  { %93 = sst [smem:[#allocation16 + $0x7]] %s3215_s12  ;;  %s3219_s10 = smov [#allocation15]  }
  0x40   :  { %95 = sst [smem:[#allocation16 + $0x8]] %s3214_s11  ;;  %s3220_s16 = smov [#allocation3]  }
  0x41   :  { %97 = dma.general %s4174_s4, 4096, %s76_s29, %s3218_s26, %s3219_s10, [#allocation16], %s2601_s2, 0  }
  0x42   :  { %114 = sst [smem:[#allocation18]] %s3213_s30  ;;  %s110_s17 = sshll.u32 %s3220_s16, 4  ;;  %s111_s17 = int_to_ptr.vmem [resolvable:$true] %s110_s17 }
  0x43   :  { %116 = sst [smem:[#allocation18 + $0x1]] %s3213_s30  ;;  %s3221_s18 = smov [#allocation4]  }
  0x44   :  { %118 = sst [smem:[#allocation18 + $0x2]] %s3214_s11  ;;  %s141_s21 = sshll.u32 %s3221_s18, 4  ;;  %s142_s21 = int_to_ptr.vmem [resolvable:$true] %s141_s21 }
  0x45   :  { %120 = sst [smem:[#allocation18 + $0x3]] %s3215_s12  ;;  %s3222_s22 = smov [#allocation7 + $0x1]  }
  0x46   :  { %122 = sst [smem:[#allocation18 + $0x4]] %s3216_s1  ;;  %s3223_s23 = smov [#allocation17]  }
  0x47   :  { %124 = sst [smem:[#allocation18 + $0x5]] %s3217_s20  ;;  %s3125_s27 = scalar_lea.hbm %s4176_s6, 64 }
  0x48   :  { %126 = sst [smem:[#allocation18 + $0x6]] %s3208_s19  ;;  %p3126_p10 = scmp.ne.s32.totalorder %s4176_s6, %s3125_s27 }
  0x49   :  { %128 = sst [smem:[#allocation18 + $0x7]] %s3215_s12  ;;  %p3129_p11 = scmp.lt.u32.totalorder %s3125_s27, %s4176_s6 }
  0x4a   :  { %130 = sst [smem:[#allocation18 + $0x8]] %s3214_s11 }
  0x4b   :  { %132 = dma.general %s4175_s5, 4096, %s111_s17, %s3222_s22, %s3223_s23, [#allocation18], %s2601_s2, 0  }
  0x4c   :  { %p3131_p12 = pnand %p3129_p11, %p3126_p10 }
  0x4e   :  { %3134 = shalt.err (!%p3131_p12)  }
  0x4f   :  { %s3135_s11 = scalar_lea.vmem %s142_s21, 64  ;;  %p3140_p0 = scmp.lt.s32.totalorder %s142_s21, %s142_s21 }
  0x50   :  { %p3136_p13 = scmp.ne.s32.totalorder %s142_s21, %s3135_s11  ;;  %p3141_p1 = scmp.lt.s32.totalorder %s3135_s11, %s3135_s11 }
  0x52   :  { %p3142_p2 = por %p3141_p1, %p3140_p0 }
  0x54   :  { %p3143_p3 = pnand %p3142_p2, %p3136_p13 }
  0x56   :  { %3146 = shalt.err (!%p3143_p3)  }
  0x57   :  { %144 = dma.hbm_to_vmem [thread:$0]  %s4176_s6, 64, %s142_s21, [#allocation7 + $0x2] }
  0x58   :  { %s3224_s13 = smov [#allocation5]   ;;  %s3147_s26 = scalar_lea.hbm %s4177_s7, 1024 }
  0x59   :  { %s153_s1 = sshll.u32 %s3224_s13, 4  ;;  %p3148_p4 = scmp.ne.s32.totalorder %s4177_s7, %s3147_s26  ;;  %s154_s1 = int_to_ptr.vmem [resolvable:$true] %s153_s1 }
  0x5a   :  { %p3151_p5 = scmp.lt.u32.totalorder %s3147_s26, %s4177_s7 }
  0x5c   :  { %p3153_p6 = pnand %p3151_p5, %p3148_p4 }
  0x5e   :  { %3156 = shalt.err (!%p3153_p6)  }
  0x5f   :  { %s3157_s17 = scalar_lea.vmem %s154_s1, 1024  ;;  %p3162_p8 = scmp.lt.s32.totalorder %s154_s1, %s154_s1 }
  0x60   :  { %p3158_p7 = scmp.ne.s32.totalorder %s154_s1, %s3157_s17  ;;  %p3163_p9 = scmp.lt.s32.totalorder %s3157_s17, %s3157_s17 }
  0x62   :  { %p3164_p10 = por %p3163_p9, %p3162_p8 }
  0x64   :  { %p3165_p11 = pnand %p3164_p10, %p3158_p7 }
  0x66   :  { %3168 = shalt.err (!%p3165_p11)  }
  0x67   :  { %156 = dma.hbm_to_vmem [thread:$0]  %s4177_s7, 1024, %s154_s1, [#allocation7 + $0x3]  ;;  %v175_v0 = vld [vmem:[%s4178_s8] sm:$0x1] }
  0x68   :  { %176 = vst [vmem:[#allocation6] sm:$0x1] %v175_v0 }
  0x69   :  { %201 = vsyncadd [#allocation7 + $0x4], 16  ;;  %vm250_vm0 = vcmask 1045504   ;;  %v2747_v1 = vld [vmem:[#allocation11 + $0x4] ss:$16 sps:$4 sm:$0x3f]   ;;  %v210_v42 = vlaneseq }
  0x6a   :  { %v2749_v2 = vld [vmem:[#allocation11] ss:$16 sps:$4 sm:$0x3f]   ;;  %v202_v3 = vld [vmem:[#allocation8] sm:$0xff]  ;;  %2608 = vmatprep.subr.msk.bf16.mxu1 %vm250_vm0, %v2747_v1  ;;  %v3225_v5 = vmov 0   ;;  %vm246_vm1 = vcmask 97280  }
  0x6b   :  { %v252_v4 = vsel %vm250_vm0, %v2749_v2, 0  ;;  %295 = vmatprep.mubr.bf16.mxu1 %v3225_v5  ;;  %v203_v6 = vpack.c.bf16 %v202_v3, %v202_v3  ;;  %v2750_v7 = vld [vmem:[#allocation11 + $0xc] ss:$16 sps:$4 sm:$0x3f]   ;;  %586 = vmatprep.mubr.bf16.mxu0 %v3225_v5  ;;  %v3364_v10 = vld [vmem:[#allocation13 + $0x4] ss:$16 sps:$4 sm:$0xff]  }
  0x6c   :  { %264 = vmatpush1.bf16.msra.mxu1 %v252_v4  ;;  %v2752_v8 = vld [vmem:[#allocation11 + $0x8] ss:$16 sps:$4 sm:$0x3f]   ;;  %v3366_v11 = vld [vmem:[#allocation13 + $0xc] ss:$16 sps:$4 sm:$0xff]   ;;  %554 = vmatprep.subr.bf16.mxu0 %v3364_v10  ;;  %v3462_v43 = vshrl.u32 %v210_v42, 7 }
  0x6d   :  { %2610 = vmatprep.subr.msk.bf16.mxu1 %vm250_vm0, %v2750_v7  ;;  %v258_v9 = vsel %vm250_vm0, %v2752_v8, 0  ;;  %v3368_v12 = vld [vmem:[#allocation13] ss:$16 sps:$4 sm:$0xff]   ;;  %v3370_v13 = vld [vmem:[#allocation13 + $0x8] ss:$16 sps:$4 sm:$0xff]  }
  0x6e   :  { %v3372_v14 = vld [vmem:[#allocation13 + $0x24] ss:$16 sps:$4 sm:$0xff]   ;;  %v3374_v15 = vld [vmem:[#allocation13 + $0x2c] ss:$16 sps:$4 sm:$0xff]   ;;  %555 = vmatpush1.bf16.msra.mxu0 %v3368_v12  ;;  %v3380_v16 = vld [vmem:[#allocation13 + $0x20] ss:$16 sps:$4 sm:$0xff]  }
  0x6f   :  { %2609 = vmatmul.mubr.msk.bf16.vlgmr.msra.gmra.mrb[0].mxu1 %vm246_vm1, %v203_v6  ;;  %v3382_v17 = vld [vmem:[#allocation13 + $0x28] ss:$16 sps:$4 sm:$0xff]   ;;  %556 = vmatprep.subr.bf16.mxu0 %v3372_v14  ;;  %v3386_v18 = vld [vmem:[#allocation13 + $0x44] ss:$16 sps:$4 sm:$0xff]   ;;  %v3388_v19 = vld [vmem:[#allocation13 + $0x4c] ss:$16 sps:$4 sm:$0xff]  }
  0x70   :  { %305 = vmatpush1.bf16.msra.mxu1 %v258_v9  ;;  %336 = vmatprep.mubr.bf16.mxu1 %v3225_v5  ;;  %v3392_v20 = vld [vmem:[#allocation13 + $0x40] ss:$16 sps:$4 sm:$0xff]   ;;  %v3394_v21 = vld [vmem:[#allocation13 + $0x48] ss:$16 sps:$4 sm:$0xff]   ;;  %v3398_v22 = vld [vmem:[#allocation13 + $0x64] ss:$16 sps:$4 sm:$0xff]  }
  0x71   :  { %595 = vmatprep.subr.bf16.mxu1 %v3366_v11  ;;  %v3400_v23 = vld [vmem:[#allocation13 + $0x6c] ss:$16 sps:$4 sm:$0xff]   ;;  %v3404_v24 = vld [vmem:[#allocation13 + $0x60] ss:$16 sps:$4 sm:$0xff]   ;;  %v3406_v25 = vld [vmem:[#allocation13 + $0x68] ss:$16 sps:$4 sm:$0xff]  }
  0x72   :  { %557 = vmatpush1.bf16.msra.mxu0 %v3380_v16  ;;  %v3410_v26 = vld [vmem:[#allocation13 + $0x84] ss:$16 sps:$4 sm:$0xff]   ;;  %v3412_v27 = vld [vmem:[#allocation13 + $0x8c] ss:$16 sps:$4 sm:$0xff]   ;;  %v3416_v28 = vld [vmem:[#allocation13 + $0x80] ss:$16 sps:$4 sm:$0xff]  }
  0x73   :  { %558 = vmatprep.subr.bf16.mxu0 %v3386_v18  ;;  %v3418_v29 = vld [vmem:[#allocation13 + $0x88] ss:$16 sps:$4 sm:$0xff]   ;;  %v3422_v30 = vld [vmem:[#allocation13 + $0xa4] ss:$16 sps:$4 sm:$0xff]   ;;  %v3424_v31 = vld [vmem:[#allocation13 + $0xac] ss:$16 sps:$4 sm:$0xff]  }
  0x74   :  { %v3428_v32 = vld [vmem:[#allocation13 + $0xa0] ss:$16 sps:$4 sm:$0xff]   ;;  %v3430_v33 = vld [vmem:[#allocation13 + $0xa8] ss:$16 sps:$4 sm:$0xff]   ;;  %v3434_v34 = vld [vmem:[#allocation13 + $0xc4] ss:$16 sps:$4 sm:$0xff]  }
  0x75   :  { %v3436_v35 = vld [vmem:[#allocation13 + $0xcc] ss:$16 sps:$4 sm:$0xff]   ;;  %v3440_v36 = vld [vmem:[#allocation13 + $0xc0] ss:$16 sps:$4 sm:$0xff]   ;;  %v3442_v37 = vld [vmem:[#allocation13 + $0xc8] ss:$16 sps:$4 sm:$0xff]  }
  0x76   :  { %559 = vmatpush1.bf16.msra.mxu0 %v3392_v20  ;;  %v3446_v38 = vld [vmem:[#allocation13 + $0xe4] ss:$16 sps:$4 sm:$0xff]   ;;  %v3448_v39 = vld [vmem:[#allocation13 + $0xec] ss:$16 sps:$4 sm:$0xff]   ;;  %v3452_v40 = vld [vmem:[#allocation13 + $0xe0] ss:$16 sps:$4 sm:$0xff]  }
  0x77   :  { %2611 = vmatmul.mubr.msk.bf16.vlgmr.msra.gmra.mrb[4].mxu1 %vm246_vm1, %v203_v6  ;;  %560 = vmatprep.subr.bf16.mxu0 %v3398_v22  ;;  %v3454_v41 = vld [vmem:[#allocation13 + $0xe8] ss:$16 sps:$4 sm:$0xff]   ;;  %v212_v44 = vsub.s32 0, %v3462_v43  ;;  %v3468_v45 = vld [vmem:[%s4173_s3] sm:$0xf]  ;;  %v224_v51 = vsub.s32 3, %v3462_v43 }
  0x78   :  { %627 = vmatprep.mubr.bf16.mxu1 %v3225_v5  ;;  %596 = vmatpush1.bf16.msra.mxu1 %v3370_v13  ;;  %v220_v54 = vsub.s32 2, %v3462_v43 }
  0x79   :  { %597 = vmatprep.subr.bf16.mxu1 %v3374_v15  ;;  %v213_v46 = vrot.slane %v3468_v45, %v212_v44  ;;  %v225_v55 = vrot.slane %v3468_v45, %v224_v51 }
  0x7a   :  { %561 = vmatpush1.bf16.msra.mxu0 %v3404_v24  ;;  %v221_v57 = vrot.slane %v3468_v45, %v220_v54 }
  0x7b   :  { %562 = vmatprep.subr.bf16.mxu0 %v3410_v26 }
  0x7c   :  { %598 = vmatpush1.bf16.msra.mxu1 %v3382_v17 }
  0x7d   :  { %599 = vmatprep.subr.bf16.mxu1 %v3388_v19 }
  0x7e   :  { %563 = vmatpush1.bf16.msra.mxu0 %v3416_v28 }
  0x7f   :  { %564 = vmatprep.subr.bf16.mxu0 %v3422_v30 }
  0x80   :  { %600 = vmatpush1.bf16.msra.mxu1 %v3394_v21 }
  0x81   :  { %601 = vmatprep.subr.bf16.mxu1 %v3400_v23 }
  0x82   :  { %565 = vmatpush1.bf16.msra.mxu0 %v3428_v32 }
  0x83   :  { %566 = vmatprep.subr.bf16.mxu0 %v3434_v34 }
  0x84   :  { %602 = vmatpush1.bf16.msra.mxu1 %v3406_v25 }
  0x85   :  { %603 = vmatprep.subr.bf16.mxu1 %v3412_v27 }
  0x86   :  { %567 = vmatpush1.bf16.msra.mxu0 %v3440_v36 }
  0x87   :  { %568 = vmatprep.subr.bf16.mxu0 %v3446_v38 }
  0x88   :  { %604 = vmatpush1.bf16.msra.mxu1 %v3418_v29 }
  0x89   :  { %605 = vmatprep.subr.bf16.mxu1 %v3424_v31 }
  0x8a   :  { %569 = vmatpush1.bf16.msra.mxu0 %v3452_v40 }
  0x8b   :  { %684 = vmatprep.subr.bf16.mxu0 %v3364_v10 }
  0x8c   :  { %606 = vmatpush1.bf16.msra.mxu1 %v3430_v33 }
  0x8d   :  { %607 = vmatprep.subr.bf16.mxu1 %v3436_v35 }
  0x90   :  { %608 = vmatpush1.bf16.msra.mxu1 %v3442_v37 }
  0x91   :  { %609 = vmatprep.subr.bf16.mxu1 %v3448_v39 }
  0x94   :  { %610 = vmatpush1.bf16.msra.mxu1 %v3454_v41 }
  0x95   :  { %725 = vmatprep.subr.bf16.mxu1 %v3366_v11 }
 0x142   :  { %v297_v47 = vpop.f32.mrb[0].mxu1 }
 0x143   :  { %v3473_v48 = vadd.f32 %v297_v47, %v213_v46  ;;  %v3475_v49 = vpop.f32.mrb[1].mxu1  ;;  %v216_v47 = vsub.s32 1, %v3462_v43 }
 0x144   :  { %v301_v50 = vpop.f32.mrb[2].mxu1 }
 0x145   :  { %v302_v52 = vpop.f32.mrb[3].mxu1  ;;  %v2612_v53 = vmul.f32 -1.442695, %v3473_v48  ;;  %v217_v50 = vrot.slane %v3468_v45, %v216_v47 }
 0x147   :  { %2801 = vpow2.f32 %v2612_v53 }
 0x14a   :  { %v338_v56 = vpop.f32.mrb[4].mxu1 }
 0x14b   :  { %v340_v58 = vpop.f32.mrb[5].mxu1  ;;  %v3489_v63 = vadd.f32 %v338_v56, %v221_v57 }
 0x14c   :  { %v3486_v59 = vadd.f32 %v340_v58, %v225_v55  ;;  %v342_v60 = vpop.f32.mrb[6].mxu1  ;;  %v3534_v58 = vadd.f32 %v3475_v49, %v217_v50 }
 0x14d   :  { %v343_v61 = vpop.f32.mrb[7].mxu1 }
 0x14e   :  { %v2613_v62 = vmul.f32 -1.442695, %v3486_v59 }
 0x150   :  { %2803 = vpow2.f32 %v2613_v62 }
 0x151   :  { %v2802_v0 = vpop.eup %2801  ;;  %2805 = vtanh.f32 %v3489_v63 }
 0x152   :  { %v348_v1 = vadd.f32 1.0, %v2802_v0 }
 0x154   :  { %2807 = vrcp.f32 %v348_v1 }
 0x15a   :  { %v2804_v2 = vpop.eup %2803 }
 0x15b   :  { %v355_v3 = vadd.f32 1.0, %v2804_v2  ;;  %v2806_v4 = vpop.eup %2805 }
 0x15d   :  { %2809 = vrcp.f32 %v355_v3 }
 0x15e   :  { %v2808_v6 = vpop.eup %2807 }
 0x15f   :  { %v3492_v7 = vmul.f32 %v2808_v6, %v2806_v4 }
 0x161   :  { %2811 = vtanh.f32 %v3492_v7 }
 0x167   :  { %v2810_v8 = vpop.eup %2809 }
 0x16b   :  { %v2812_v9 = vpop.eup %2811 }
 0x16c   :  { %v360_v42 = vmul.f32 %v2812_v9, %v2810_v8 }
 0x16e   :  { %v361_v46 = vpack.c.bf16 %v360_v42, %v360_v42 }
 0x170   :  { %587 = vmatmul.mubr.bf16.vlgmr.msra.gmra.mrb[0].mxu0 %v361_v46  ;;  %628 = vmatmul.mubr.bf16.vlgmr.msra.gmra.mrb[8].mxu1 %v361_v46 }
 0x171   :  { %685 = vmatpush1.bf16.msra.mxu0 %v3368_v12  ;;  %726 = vmatpush1.bf16.msra.mxu1 %v3370_v13 }
 0x172   :  { %686 = vmatprep.subr.bf16.mxu0 %v3372_v14  ;;  %727 = vmatprep.subr.bf16.mxu1 %v3374_v15 }
 0x173   :  { %716 = vmatprep.mubr.bf16.mxu0 %v3225_v5  ;;  %757 = vmatprep.mubr.bf16.mxu1 %v3225_v5 }
 0x175   :  { %687 = vmatpush1.bf16.msra.mxu0 %v3380_v16  ;;  %728 = vmatpush1.bf16.msra.mxu1 %v3382_v17 }
 0x176   :  { %688 = vmatprep.subr.bf16.mxu0 %v3386_v18  ;;  %729 = vmatprep.subr.bf16.mxu1 %v3388_v19 }
 0x179   :  { %689 = vmatpush1.bf16.msra.mxu0 %v3392_v20  ;;  %730 = vmatpush1.bf16.msra.mxu1 %v3394_v21 }
 0x17a   :  { %690 = vmatprep.subr.bf16.mxu0 %v3398_v22  ;;  %731 = vmatprep.subr.bf16.mxu1 %v3400_v23 }
 0x17d   :  { %691 = vmatpush1.bf16.msra.mxu0 %v3404_v24  ;;  %732 = vmatpush1.bf16.msra.mxu1 %v3406_v25 }
 0x17e   :  { %692 = vmatprep.subr.bf16.mxu0 %v3410_v26  ;;  %733 = vmatprep.subr.bf16.mxu1 %v3412_v27 }
 0x181   :  { %693 = vmatpush1.bf16.msra.mxu0 %v3416_v28  ;;  %734 = vmatpush1.bf16.msra.mxu1 %v3418_v29 }
 0x182   :  { %694 = vmatprep.subr.bf16.mxu0 %v3422_v30  ;;  %735 = vmatprep.subr.bf16.mxu1 %v3424_v31 }
 0x185   :  { %695 = vmatpush1.bf16.msra.mxu0 %v3428_v32  ;;  %736 = vmatpush1.bf16.msra.mxu1 %v3430_v33 }
 0x186   :  { %696 = vmatprep.subr.bf16.mxu0 %v3434_v34  ;;  %737 = vmatprep.subr.bf16.mxu1 %v3436_v35 }
 0x189   :  { %697 = vmatpush1.bf16.msra.mxu0 %v3440_v36  ;;  %738 = vmatpush1.bf16.msra.mxu1 %v3442_v37 }
 0x18a   :  { %698 = vmatprep.subr.bf16.mxu0 %v3446_v38  ;;  %739 = vmatprep.subr.bf16.mxu1 %v3448_v39 }
 0x18d   :  { %699 = vmatpush1.bf16.msra.mxu0 %v3452_v40  ;;  %740 = vmatpush1.bf16.msra.mxu1 %v3454_v41 }
 0x18e   :  { %813 = vmatprep.subr.bf16.mxu0 %v3364_v10  ;;  %854 = vmatprep.subr.bf16.mxu1 %v3366_v11 }
 0x243   :  { %v588_v52 = vpop.f32.mrb[0].mxu0  ;;  %v629_v53 = vpop.f32.mrb[8].mxu1 }
 0x244   :  { %v640_v55 = vrot.slane %v588_v52, 7  ;;  %v590_v56 = vpop.f32.mrb[1].mxu0  ;;  %v631_v57 = vpop.f32.mrb[9].mxu1  ;;  %v642_v9 = vrot.slane %v629_v53, 7 }
 0x245   :  { %v641_v60 = vrot.slane %v590_v56, 7  ;;  %v592_v61 = vpop.f32.mrb[2].mxu0  ;;  %v633_v62 = vpop.f32.mrb[10].mxu1  ;;  %v643_v45 = vrot.slane %v631_v57, 7  ;;  %v672_v57 = vrot.slane %v3492_v7, 7 }
 0x246   :  { %v648_v0 = vadd.f32 %v640_v55, %v3473_v48  ;;  %v593_v1 = vpop.f32.mrb[3].mxu0  ;;  %v634_v2 = vpop.f32.mrb[11].mxu1  ;;  %v650_v49 = vadd.f32 %v642_v9, %v3489_v63 }
 0x247   :  { %v649_v3 = vadd.f32 %v641_v60, %v3534_v58  ;;  %v651_v8 = vadd.f32 %v643_v45, %v3486_v59 }
 0x248   :  { %v2646_v4 = vmul.f32 -1.442695, %v648_v0 }
 0x249   :  { %v2648_v6 = vmul.f32 -1.442695, %v649_v3  ;;  %v2647_v42 = vmul.f32 -1.442695, %v651_v8 }
 0x24a   :  { %2813 = vpow2.f32 %v2646_v4 }
 0x24b   :  { %2815 = vpow2.f32 %v2648_v6 }
 0x24c   :  { %2817 = vpow2.f32 %v2647_v42 }
 0x24d   :  { %2819 = vtanh.f32 %v650_v49 }
 0x254   :  { %v2814_v46 = vpop.eup %2813 }
 0x255   :  { %v2816_v50 = vpop.eup %2815  ;;  %v655_v52 = vadd.f32 1.0, %v2814_v46 }
 0x256   :  { %v668_v55 = vadd.f32 1.0, %v2816_v50  ;;  %v2818_v56 = vpop.eup %2817 }
 0x257   :  { %2821 = vrcp.f32 %v655_v52  ;;  %v2820_v60 = vpop.eup %2819  ;;  %v662_v1 = vadd.f32 1.0, %v2818_v56 }
 0x258   :  { %2823 = vrcp.f32 %v668_v55 }
 0x259   :  { %2825 = vrcp.f32 %v662_v1 }
 0x261   :  { %v2822_v61 = vpop.eup %2821 }
 0x262   :  { %v2824_v62 = vpop.eup %2823  ;;  %v675_v0 = vmul.f32 %v2822_v61, %v2820_v60 }
 0x263   :  { %v674_v53 = vmul.f32 %v2824_v62, %v672_v57  ;;  %v2826_v3 = vpop.eup %2825 }
 0x265   :  { %v3541_v2 = vadd.f32 %v675_v0, %v674_v53 }
 0x267   :  { %2827 = vtanh.f32 %v3541_v2 }
 0x271   :  { %v2828_v4 = vpop.eup %2827 }
 0x272   :  { %v678_v6 = vmul.f32 %v2828_v4, %v2826_v3 }
 0x274   :  { %v679_v45 = vpack.c.bf16 %v678_v6, %v678_v6 }
 0x276   :  { %v681_v8 = vshrl.u32 %v679_v45, 16 }
 0x278   :  { %717 = vmatmul.mubr.bf16.vlgmr.msra.gmra.mrb[4].mxu0 %v681_v8  ;;  %758 = vmatmul.mubr.bf16.vlgmr.msra.gmra.mrb[12].mxu1 %v681_v8 }
 0x279   :  { %814 = vmatpush1.bf16.msra.mxu0 %v3368_v12  ;;  %855 = vmatpush1.bf16.msra.mxu1 %v3370_v13 }
 0x27a   :  { %815 = vmatprep.subr.bf16.mxu0 %v3372_v14  ;;  %856 = vmatprep.subr.bf16.mxu1 %v3374_v15 }
 0x27b   :  { %845 = vmatprep.mubr.bf16.mxu0 %v3225_v5  ;;  %886 = vmatprep.mubr.bf16.mxu1 %v3225_v5 }
 0x27d   :  { %816 = vmatpush1.bf16.msra.mxu0 %v3380_v16  ;;  %857 = vmatpush1.bf16.msra.mxu1 %v3382_v17 }
 0x27e   :  { %817 = vmatprep.subr.bf16.mxu0 %v3386_v18  ;;  %858 = vmatprep.subr.bf16.mxu1 %v3388_v19 }
 0x281   :  { %818 = vmatpush1.bf16.msra.mxu0 %v3392_v20  ;;  %859 = vmatpush1.bf16.msra.mxu1 %v3394_v21 }
 0x282   :  { %819 = vmatprep.subr.bf16.mxu0 %v3398_v22  ;;  %860 = vmatprep.subr.bf16.mxu1 %v3400_v23 }
 0x285   :  { %820 = vmatpush1.bf16.msra.mxu0 %v3404_v24  ;;  %861 = vmatpush1.bf16.msra.mxu1 %v3406_v25 }
 0x286   :  { %821 = vmatprep.subr.bf16.mxu0 %v3410_v26  ;;  %862 = vmatprep.subr.bf16.mxu1 %v3412_v27 }
 0x289   :  { %822 = vmatpush1.bf16.msra.mxu0 %v3416_v28  ;;  %863 = vmatpush1.bf16.msra.mxu1 %v3418_v29 }
 0x28a   :  { %823 = vmatprep.subr.bf16.mxu0 %v3422_v30  ;;  %864 = vmatprep.subr.bf16.mxu1 %v3424_v31 }
 0x28d   :  { %824 = vmatpush1.bf16.msra.mxu0 %v3428_v32  ;;  %865 = vmatpush1.bf16.msra.mxu1 %v3430_v33 }
 0x28e   :  { %825 = vmatprep.subr.bf16.mxu0 %v3434_v34  ;;  %866 = vmatprep.subr.bf16.mxu1 %v3436_v35 }
 0x291   :  { %826 = vmatpush1.bf16.msra.mxu0 %v3440_v36  ;;  %867 = vmatpush1.bf16.msra.mxu1 %v3442_v37 }
 0x292   :  { %827 = vmatprep.subr.bf16.mxu0 %v3446_v38  ;;  %868 = vmatprep.subr.bf16.mxu1 %v3448_v39 }
 0x295   :  { %828 = vmatpush1.bf16.msra.mxu0 %v3452_v40  ;;  %869 = vmatpush1.bf16.msra.mxu1 %v3454_v41 }
 0x296   :  { %944 = vmatprep.subr.bf16.mxu0 %v3364_v10  ;;  %985 = vmatprep.subr.bf16.mxu1 %v3366_v11 }
 0x34b   :  { %v718_v7 = vpop.f32.mrb[4].mxu0  ;;  %v759_v9 = vpop.f32.mrb[12].mxu1 }
 0x34c   :  { %v770_v42 = vrot.slane %v718_v7, 6  ;;  %v720_v49 = vpop.f32.mrb[5].mxu0  ;;  %v761_v46 = vpop.f32.mrb[13].mxu1  ;;  %v772_v3 = vrot.slane %v759_v9, 6 }
 0x34d   :  { %v771_v50 = vrot.slane %v720_v49, 6  ;;  %v722_v52 = vpop.f32.mrb[6].mxu0  ;;  %v763_v55 = vpop.f32.mrb[14].mxu1  ;;  %v773_v1 = vrot.slane %v761_v46, 6  ;;  %v802_v46 = vrot.slane %v3541_v2, 7 }
 0x34e   :  { %v778_v56 = vadd.f32 %v770_v42, %v3473_v48  ;;  %v723_v60 = vpop.f32.mrb[7].mxu0  ;;  %v764_v61 = vpop.f32.mrb[15].mxu1  ;;  %v780_v6 = vadd.f32 %v772_v3, %v3489_v63 }
 0x34f   :  { %v779_v57 = vadd.f32 %v771_v50, %v3534_v58  ;;  %v781_v53 = vadd.f32 %v773_v1, %v3486_v59 }
 0x350   :  { %v2649_v62 = vmul.f32 -1.442695, %v778_v56 }
 0x351   :  { %v2651_v0 = vmul.f32 -1.442695, %v779_v57  ;;  %v2650_v4 = vmul.f32 -1.442695, %v781_v53 }
 0x352   :  { %2829 = vpow2.f32 %v2649_v62 }
 0x353   :  { %2831 = vpow2.f32 %v2651_v0 }
 0x354   :  { %2833 = vpow2.f32 %v2650_v4 }
 0x355   :  { %2835 = vtanh.f32 %v780_v6 }
 0x35c   :  { %v2830_v45 = vpop.eup %2829 }
 0x35d   :  { %v2832_v8 = vpop.eup %2831  ;;  %v785_v7 = vadd.f32 1.0, %v2830_v45 }
 0x35e   :  { %v798_v42 = vadd.f32 1.0, %v2832_v8  ;;  %v2834_v49 = vpop.eup %2833 }
 0x35f   :  { %2837 = vrcp.f32 %v785_v7  ;;  %v2836_v50 = vpop.eup %2835  ;;  %v792_v60 = vadd.f32 1.0, %v2834_v49 }
 0x360   :  { %2839 = vrcp.f32 %v798_v42 }
 0x361   :  { %2841 = vrcp.f32 %v792_v60 }
 0x369   :  { %v2838_v52 = vpop.eup %2837 }
 0x36a   :  { %v2840_v55 = vpop.eup %2839  ;;  %v805_v56 = vmul.f32 %v2838_v52, %v2836_v50 }
 0x36b   :  { %v804_v9 = vmul.f32 %v2840_v55, %v802_v46  ;;  %v2842_v57 = vpop.eup %2841 }
 0x36d   :  { %v3583_v61 = vadd.f32 %v805_v56, %v804_v9 }
 0x36f   :  { %2843 = vtanh.f32 %v3583_v61 }
 0x379   :  { %v2844_v62 = vpop.eup %2843 }
 0x37a   :  { %v808_v0 = vmul.f32 %v2844_v62, %v2842_v57 }
 0x37c   :  { %v809_v1 = vpack.c.bf16 %v808_v0, %v808_v0 }
 0x37e   :  { %v811_v53 = vrot.slane %v809_v1, 1 }
 0x380   :  { %846 = vmatmul.mubr.bf16.vlgmr.msra.gmra.mrb[8].mxu0 %v811_v53  ;;  %887 = vmatmul.mubr.bf16.vlgmr.msra.gmra.mrb[16].mxu1 %v811_v53 }
 0x381   :  { %945 = vmatpush1.bf16.msra.mxu0 %v3368_v12  ;;  %986 = vmatpush1.bf16.msra.mxu1 %v3370_v13 }
 0x382   :  { %946 = vmatprep.subr.bf16.mxu0 %v3372_v14  ;;  %987 = vmatprep.subr.bf16.mxu1 %v3374_v15 }
 0x383   :  { %976 = vmatprep.mubr.bf16.mxu0 %v3225_v5  ;;  %1017 = vmatprep.mubr.bf16.mxu1 %v3225_v5 }
 0x385   :  { %947 = vmatpush1.bf16.msra.mxu0 %v3380_v16  ;;  %988 = vmatpush1.bf16.msra.mxu1 %v3382_v17 }
 0x386   :  { %948 = vmatprep.subr.bf16.mxu0 %v3386_v18  ;;  %989 = vmatprep.subr.bf16.mxu1 %v3388_v19 }
 0x389   :  { %949 = vmatpush1.bf16.msra.mxu0 %v3392_v20  ;;  %990 = vmatpush1.bf16.msra.mxu1 %v3394_v21 }
 0x38a   :  { %950 = vmatprep.subr.bf16.mxu0 %v3398_v22  ;;  %991 = vmatprep.subr.bf16.mxu1 %v3400_v23 }
 0x38d   :  { %951 = vmatpush1.bf16.msra.mxu0 %v3404_v24  ;;  %992 = vmatpush1.bf16.msra.mxu1 %v3406_v25 }
 0x38e   :  { %952 = vmatprep.subr.bf16.mxu0 %v3410_v26  ;;  %993 = vmatprep.subr.bf16.mxu1 %v3412_v27 }
 0x391   :  { %953 = vmatpush1.bf16.msra.mxu0 %v3416_v28  ;;  %994 = vmatpush1.bf16.msra.mxu1 %v3418_v29 }
 0x392   :  { %954 = vmatprep.subr.bf16.mxu0 %v3422_v30  ;;  %995 = vmatprep.subr.bf16.mxu1 %v3424_v31 }
 0x395   :  { %955 = vmatpush1.bf16.msra.mxu0 %v3428_v32  ;;  %996 = vmatpush1.bf16.msra.mxu1 %v3430_v33 }
 0x396   :  { %956 = vmatprep.subr.bf16.mxu0 %v3434_v34  ;;  %997 = vmatprep.subr.bf16.mxu1 %v3436_v35 }
 0x399   :  { %957 = vmatpush1.bf16.msra.mxu0 %v3440_v36  ;;  %998 = vmatpush1.bf16.msra.mxu1 %v3442_v37 }
 0x39a   :  { %958 = vmatprep.subr.bf16.mxu0 %v3446_v38  ;;  %999 = vmatprep.subr.bf16.mxu1 %v3448_v39 }
 0x39d   :  { %959 = vmatpush1.bf16.msra.mxu0 %v3452_v40  ;;  %1000 = vmatpush1.bf16.msra.mxu1 %v3454_v41 }
 0x39e   :  { %1073 = vmatprep.subr.bf16.mxu0 %v3364_v10  ;;  %1114 = vmatprep.subr.bf16.mxu1 %v3366_v11 }
 0x453   :  { %v847_v2 = vpop.f32.mrb[8].mxu0  ;;  %v888_v3 = vpop.f32.mrb[16].mxu1 }
 0x454   :  { %v899_v4 = vrot.slane %v847_v2, 5  ;;  %v849_v6 = vpop.f32.mrb[9].mxu0  ;;  %v890_v45 = vpop.f32.mrb[17].mxu1  ;;  %v901_v57 = vrot.slane %v888_v3, 5 }
 0x455   :  { %v900_v8 = vrot.slane %v849_v6, 5  ;;  %v851_v7 = vpop.f32.mrb[10].mxu0  ;;  %v892_v42 = vpop.f32.mrb[18].mxu1  ;;  %v902_v60 = vrot.slane %v890_v45, 5  ;;  %v931_v45 = vrot.slane %v3583_v61, 7 }
 0x456   :  { %v907_v49 = vadd.f32 %v899_v4, %v3473_v48  ;;  %v852_v50 = vpop.f32.mrb[11].mxu0  ;;  %v893_v52 = vpop.f32.mrb[19].mxu1  ;;  %v909_v0 = vadd.f32 %v901_v57, %v3489_v63 }
 0x457   :  { %v908_v46 = vadd.f32 %v900_v8, %v3534_v58  ;;  %v910_v9 = vadd.f32 %v902_v60, %v3486_v59 }
 0x458   :  { %v2652_v55 = vmul.f32 -1.442695, %v907_v49 }
 0x459   :  { %v2654_v56 = vmul.f32 -1.442695, %v908_v46  ;;  %v2653_v62 = vmul.f32 -1.442695, %v910_v9 }
 0x45a   :  { %2845 = vpow2.f32 %v2652_v55 }
 0x45b   :  { %2847 = vpow2.f32 %v2654_v56 }
 0x45c   :  { %2849 = vpow2.f32 %v2653_v62 }
 0x45d   :  { %2851 = vtanh.f32 %v909_v0 }
 0x464   :  { %v2846_v1 = vpop.eup %2845 }
 0x465   :  { %v2848_v53 = vpop.eup %2847  ;;  %v914_v2 = vadd.f32 1.0, %v2846_v1 }
 0x466   :  { %v927_v4 = vadd.f32 1.0, %v2848_v53  ;;  %v2850_v6 = vpop.eup %2849 }
 0x467   :  { %2853 = vrcp.f32 %v914_v2  ;;  %v2852_v8 = vpop.eup %2851  ;;  %v921_v50 = vadd.f32 1.0, %v2850_v6 }
 0x468   :  { %2855 = vrcp.f32 %v927_v4 }
 0x469   :  { %2857 = vrcp.f32 %v921_v50 }
 0x471   :  { %v2854_v7 = vpop.eup %2853 }
 0x472   :  { %v2856_v42 = vpop.eup %2855  ;;  %v934_v49 = vmul.f32 %v2854_v7, %v2852_v8 }
 0x473   :  { %v933_v3 = vmul.f32 %v2856_v42, %v931_v45  ;;  %v2858_v46 = vpop.eup %2857 }
 0x475   :  { %v3625_v52 = vadd.f32 %v934_v49, %v933_v3 }
 0x477   :  { %2859 = vtanh.f32 %v3625_v52 }
 0x481   :  { %v2860_v55 = vpop.eup %2859 }
 0x482   :  { %v937_v56 = vmul.f32 %v2860_v55, %v2858_v46 }
 0x484   :  { %v938_v60 = vpack.c.bf16 %v937_v56, %v937_v56 }
 0x486   :  { %v940_v9 = vshrl.u32 %v938_v60, 16 }
 0x488   :  { %v942_v57 = vrot.slane %v940_v9, 1 }
 0x48a   :  { %977 = vmatmul.mubr.bf16.vlgmr.msra.gmra.mrb[12].mxu0 %v942_v57  ;;  %1018 = vmatmul.mubr.bf16.vlgmr.msra.gmra.mrb[20].mxu1 %v942_v57 }
 0x48b   :  { %1074 = vmatpush1.bf16.msra.mxu0 %v3368_v12  ;;  %1115 = vmatpush1.bf16.msra.mxu1 %v3370_v13 }
 0x48c   :  { %1075 = vmatprep.subr.bf16.mxu0 %v3372_v14  ;;  %1116 = vmatprep.subr.bf16.mxu1 %v3374_v15 }
 0x48d   :  { %1105 = vmatprep.mubr.bf16.mxu0 %v3225_v5  ;;  %1146 = vmatprep.mubr.bf16.mxu1 %v3225_v5 }
 0x48f   :  { %1076 = vmatpush1.bf16.msra.mxu0 %v3380_v16  ;;  %1117 = vmatpush1.bf16.msra.mxu1 %v3382_v17 }
 0x490   :  { %1077 = vmatprep.subr.bf16.mxu0 %v3386_v18  ;;  %1118 = vmatprep.subr.bf16.mxu1 %v3388_v19 }
 0x493   :  { %1078 = vmatpush1.bf16.msra.mxu0 %v3392_v20  ;;  %1119 = vmatpush1.bf16.msra.mxu1 %v3394_v21 }
 0x494   :  { %1079 = vmatprep.subr.bf16.mxu0 %v3398_v22  ;;  %1120 = vmatprep.subr.bf16.mxu1 %v3400_v23 }
 0x497   :  { %1080 = vmatpush1.bf16.msra.mxu0 %v3404_v24  ;;  %1121 = vmatpush1.bf16.msra.mxu1 %v3406_v25 }
 0x498   :  { %1081 = vmatprep.subr.bf16.mxu0 %v3410_v26  ;;  %1122 = vmatprep.subr.bf16.mxu1 %v3412_v27 }
 0x49b   :  { %1082 = vmatpush1.bf16.msra.mxu0 %v3416_v28  ;;  %1123 = vmatpush1.bf16.msra.mxu1 %v3418_v29 }
 0x49c   :  { %1083 = vmatprep.subr.bf16.mxu0 %v3422_v30  ;;  %1124 = vmatprep.subr.bf16.mxu1 %v3424_v31 }
 0x49f   :  { %1084 = vmatpush1.bf16.msra.mxu0 %v3428_v32  ;;  %1125 = vmatpush1.bf16.msra.mxu1 %v3430_v33 }
 0x4a0   :  { %1085 = vmatprep.subr.bf16.mxu0 %v3434_v34  ;;  %1126 = vmatprep.subr.bf16.mxu1 %v3436_v35 }
 0x4a3   :  { %1086 = vmatpush1.bf16.msra.mxu0 %v3440_v36  ;;  %1127 = vmatpush1.bf16.msra.mxu1 %v3442_v37 }
 0x4a4   :  { %1087 = vmatprep.subr.bf16.mxu0 %v3446_v38  ;;  %1128 = vmatprep.subr.bf16.mxu1 %v3448_v39 }
 0x4a7   :  { %1088 = vmatpush1.bf16.msra.mxu0 %v3452_v40  ;;  %1129 = vmatpush1.bf16.msra.mxu1 %v3454_v41 }
 0x4a8   :  { %1204 = vmatprep.subr.bf16.mxu0 %v3364_v10  ;;  %1245 = vmatprep.subr.bf16.mxu1 %v3366_v11 }
 0x55d   :  { %v978_v61 = vpop.f32.mrb[12].mxu0  ;;  %v1019_v62 = vpop.f32.mrb[20].mxu1 }
 0x55e   :  { %v1030_v0 = vrot.slane %v978_v61, 4  ;;  %v980_v1 = vpop.f32.mrb[13].mxu0  ;;  %v1021_v53 = vpop.f32.mrb[21].mxu1  ;;  %v1032_v55 = vrot.slane %v1019_v62, 4 }
 0x55f   :  { %v1031_v2 = vrot.slane %v980_v1, 4  ;;  %v982_v4 = vpop.f32.mrb[14].mxu0  ;;  %v1023_v6 = vpop.f32.mrb[22].mxu1  ;;  %v1033_v3 = vrot.slane %v1021_v53, 4  ;;  %v1062_v53 = vrot.slane %v3625_v52, 7 }
 0x560   :  { %v1038_v8 = vadd.f32 %v1030_v0, %v3473_v48  ;;  %v983_v7 = vpop.f32.mrb[15].mxu0  ;;  %v1024_v45 = vpop.f32.mrb[23].mxu1  ;;  %v1040_v60 = vadd.f32 %v1032_v55, %v3489_v63 }
 0x561   :  { %v1039_v42 = vadd.f32 %v1031_v2, %v3534_v58  ;;  %v1041_v46 = vadd.f32 %v1033_v3, %v3486_v59 }
 0x562   :  { %v2655_v49 = vmul.f32 -1.442695, %v1038_v8 }
 0x563   :  { %v2657_v50 = vmul.f32 -1.442695, %v1039_v42  ;;  %v2656_v56 = vmul.f32 -1.442695, %v1041_v46 }
 0x564   :  { %2861 = vpow2.f32 %v2655_v49 }
 0x565   :  { %2863 = vpow2.f32 %v2657_v50 }
 0x566   :  { %2865 = vpow2.f32 %v2656_v56 }
 0x567   :  { %2867 = vtanh.f32 %v1040_v60 }
 0x56e   :  { %v2862_v9 = vpop.eup %2861 }
 0x56f   :  { %v2864_v57 = vpop.eup %2863  ;;  %v1045_v61 = vadd.f32 1.0, %v2862_v9 }
 0x570   :  { %v1058_v0 = vadd.f32 1.0, %v2864_v57  ;;  %v2866_v1 = vpop.eup %2865 }
 0x571   :  { %2869 = vrcp.f32 %v1045_v61  ;;  %v2868_v2 = vpop.eup %2867  ;;  %v1052_v7 = vadd.f32 1.0, %v2866_v1 }
 0x572   :  { %2871 = vrcp.f32 %v1058_v0 }
 0x573   :  { %2873 = vrcp.f32 %v1052_v7 }
 0x57b   :  { %v2870_v4 = vpop.eup %2869 }
 0x57c   :  { %v2872_v6 = vpop.eup %2871  ;;  %v1065_v8 = vmul.f32 %v2870_v4, %v2868_v2 }
 0x57d   :  { %v1064_v62 = vmul.f32 %v2872_v6, %v1062_v53  ;;  %v2874_v42 = vpop.eup %2873 }
 0x57f   :  { %v3667_v45 = vadd.f32 %v1065_v8, %v1064_v62 }
 0x581   :  { %2875 = vtanh.f32 %v3667_v45 }
 0x58b   :  { %v2876_v49 = vpop.eup %2875 }
 0x58c   :  { %v1068_v50 = vmul.f32 %v2876_v49, %v2874_v42 }
 0x58e   :  { %v1069_v3 = vpack.c.bf16 %v1068_v50, %v1068_v50  ;;  %v1191_v50 = vrot.slane %v3667_v45, 7  ;;  %v2926_v45 = vld [vmem:[#allocation13 + $0x8] ss:$16 sps:$4 sm:$0xff]  }
 0x590   :  { %v1071_v46 = vrot.slane %v1069_v3, 2 }
 0x592   :  { %1106 = vmatmul.mubr.bf16.vlgmr.msra.gmra.mrb[16].mxu0 %v1071_v46  ;;  %1147 = vmatmul.mubr.bf16.vlgmr.msra.gmra.mrb[24].mxu1 %v1071_v46 }
 0x593   :  { %1205 = vmatpush1.bf16.msra.mxu0 %v3368_v12  ;;  %1246 = vmatpush1.bf16.msra.mxu1 %v3370_v13 }
 0x594   :  { %1206 = vmatprep.subr.bf16.mxu0 %v3372_v14  ;;  %1247 = vmatprep.subr.bf16.mxu1 %v3374_v15 }
 0x595   :  { %1236 = vmatprep.mubr.bf16.mxu0 %v3225_v5  ;;  %1277 = vmatprep.mubr.bf16.mxu1 %v3225_v5 }
 0x597   :  { %1207 = vmatpush1.bf16.msra.mxu0 %v3380_v16  ;;  %1248 = vmatpush1.bf16.msra.mxu1 %v3382_v17 }
 0x598   :  { %1208 = vmatprep.subr.bf16.mxu0 %v3386_v18  ;;  %1249 = vmatprep.subr.bf16.mxu1 %v3388_v19 }
 0x59b   :  { %1209 = vmatpush1.bf16.msra.mxu0 %v3392_v20  ;;  %1250 = vmatpush1.bf16.msra.mxu1 %v3394_v21 }
 0x59c   :  { %1210 = vmatprep.subr.bf16.mxu0 %v3398_v22  ;;  %1251 = vmatprep.subr.bf16.mxu1 %v3400_v23 }
 0x59f   :  { %1211 = vmatpush1.bf16.msra.mxu0 %v3404_v24  ;;  %1252 = vmatpush1.bf16.msra.mxu1 %v3406_v25 }
 0x5a0   :  { %1212 = vmatprep.subr.bf16.mxu0 %v3410_v26  ;;  %1253 = vmatprep.subr.bf16.mxu1 %v3412_v27 }
 0x5a3   :  { %1213 = vmatpush1.bf16.msra.mxu0 %v3416_v28  ;;  %1254 = vmatpush1.bf16.msra.mxu1 %v3418_v29 }
 0x5a4   :  { %1214 = vmatprep.subr.bf16.mxu0 %v3422_v30  ;;  %1255 = vmatprep.subr.bf16.mxu1 %v3424_v31 }
 0x5a7   :  { %1215 = vmatpush1.bf16.msra.mxu0 %v3428_v32  ;;  %1256 = vmatpush1.bf16.msra.mxu1 %v3430_v33 }
 0x5a8   :  { %1216 = vmatprep.subr.bf16.mxu0 %v3434_v34  ;;  %1257 = vmatprep.subr.bf16.mxu1 %v3436_v35 }
 0x5ab   :  { %1217 = vmatpush1.bf16.msra.mxu0 %v3440_v36  ;;  %1258 = vmatpush1.bf16.msra.mxu1 %v3442_v37 }
 0x5ac   :  { %1218 = vmatprep.subr.bf16.mxu0 %v3446_v38  ;;  %1259 = vmatprep.subr.bf16.mxu1 %v3448_v39 }
 0x5af   :  { %1219 = vmatpush1.bf16.msra.mxu0 %v3452_v40  ;;  %1260 = vmatpush1.bf16.msra.mxu1 %v3454_v41 }
 0x5b0   :  { %1333 = vmatprep.subr.bf16.mxu0 %v3364_v10  ;;  %1374 = vmatprep.subr.bf16.mxu1 %v3366_v11 }
 0x665   :  { %v1107_v12 = vpop.f32.mrb[16].mxu0  ;;  %v1148_v13 = vpop.f32.mrb[24].mxu1 }
 0x666   :  { %v1159_v14 = vrot.slane %v1107_v12, 3  ;;  %v1109_v15 = vpop.f32.mrb[17].mxu0  ;;  %v1150_v16 = vpop.f32.mrb[25].mxu1  ;;  %v1161_v11 = vrot.slane %v1148_v13, 3 }
 0x667   :  { %v1160_v17 = vrot.slane %v1109_v15, 3  ;;  %v1111_v52 = vpop.f32.mrb[18].mxu0  ;;  %v1152_v55 = vpop.f32.mrb[26].mxu1  ;;  %v1162_v1 = vrot.slane %v1150_v16, 3 }
 0x668   :  { %v1167_v56 = vadd.f32 %v1159_v14, %v3473_v48  ;;  %v1112_v60 = vpop.f32.mrb[19].mxu0  ;;  %v1153_v9 = vpop.f32.mrb[27].mxu1  ;;  %v1169_v4 = vadd.f32 %v1161_v11, %v3489_v63 }
 0x669   :  { %v1168_v57 = vadd.f32 %v1160_v17, %v3534_v58  ;;  %v1170_v10 = vadd.f32 %v1162_v1, %v3486_v59  ;;  %v2925_v60 = vld [vmem:[#allocation13] ss:$16 sps:$4 sm:$0xff]   ;;  %v2927_v9 = vld [vmem:[#allocation13 + $0x24] ss:$16 sps:$4 sm:$0xff]  }
 0x66a   :  { %v2658_v61 = vmul.f32 -1.442695, %v1167_v56 }
 0x66b   :  { %v2660_v0 = vmul.f32 -1.442695, %v1168_v57  ;;  %v2659_v2 = vmul.f32 -1.442695, %v1170_v10  ;;  %v2928_v57 = vld [vmem:[#allocation13 + $0x2c] ss:$16 sps:$4 sm:$0xff]  }
 0x66c   :  { %2877 = vpow2.f32 %v2658_v61  ;;  %v2929_v61 = vld [vmem:[#allocation13 + $0x20] ss:$16 sps:$4 sm:$0xff]  }
 0x66d   :  { %2879 = vpow2.f32 %v2660_v0  ;;  %v2930_v0 = vld [vmem:[#allocation13 + $0x28] ss:$16 sps:$4 sm:$0xff]  }
 0x66e   :  { %2881 = vpow2.f32 %v2659_v2 }
 0x66f   :  { %2883 = vtanh.f32 %v1169_v4 }
 0x676   :  { %v2878_v53 = vpop.eup %2877 }
 0x677   :  { %v2880_v6 = vpop.eup %2879  ;;  %v1174_v8 = vadd.f32 1.0, %v2878_v53 }
 0x678   :  { %v1187_v7 = vadd.f32 1.0, %v2880_v6  ;;  %v2882_v62 = vpop.eup %2881 }
 0x679   :  { %2885 = vrcp.f32 %v1174_v8  ;;  %v2884_v42 = vpop.eup %2883  ;;  %v1181_v12 = vadd.f32 1.0, %v2882_v62 }
 0x67a   :  { %2887 = vrcp.f32 %v1187_v7 }
 0x67b   :  { %2889 = vrcp.f32 %v1181_v12 }
 0x683   :  { %v2886_v49 = vpop.eup %2885 }
 0x684   :  { %v2888_v3 = vpop.eup %2887  ;;  %v1194_v46 = vmul.f32 %v2886_v49, %v2884_v42 }
 0x685   :  { %v1193_v13 = vmul.f32 %v2888_v3, %v1191_v50  ;;  %v2890_v15 = vpop.eup %2889 }
 0x687   :  { %v3709_v14 = vadd.f32 %v1194_v46, %v1193_v13 }
 0x689   :  { %2891 = vtanh.f32 %v3709_v14  ;;  %v1322_v11 = vrot.slane %v3709_v14, 7 }
 0x693   :  { %v2892_v16 = vpop.eup %2891 }
 0x694   :  { %v1197_v17 = vmul.f32 %v2892_v16, %v2890_v15 }
 0x696   :  { %v1198_v52 = vpack.c.bf16 %v1197_v17, %v1197_v17 }
 0x698   :  { %v1200_v55 = vshrl.u32 %v1198_v52, 16 }
 0x69a   :  { %v1202_v56 = vrot.slane %v1200_v55, 2 }
 0x69c   :  { %1237 = vmatmul.mubr.bf16.vlgmr.msra.gmra.mrb[20].mxu0 %v1202_v56  ;;  %1278 = vmatmul.mubr.bf16.vlgmr.msra.gmra.mrb[28].mxu1 %v1202_v56 }
 0x69d   :  { %1334 = vmatpush1.bf16.msra.mxu0 %v2925_v60  ;;  %1375 = vmatpush1.bf16.msra.mxu1 %v2926_v45 }
 0x69e   :  { %1335 = vmatprep.subr.bf16.mxu0 %v2927_v9  ;;  %1376 = vmatprep.subr.bf16.mxu1 %v2928_v57 }
 0x69f   :  { %1365 = vmatprep.mubr.bf16.mxu0 %v3225_v5  ;;  %1406 = vmatprep.mubr.bf16.mxu1 %v3225_v5 }
 0x6a1   :  { %1336 = vmatpush1.bf16.msra.mxu0 %v2929_v61  ;;  %1377 = vmatpush1.bf16.msra.mxu1 %v2930_v0 }
 0x6a2   :  { %1337 = vmatprep.subr.bf16.mxu0 %v3386_v18  ;;  %1378 = vmatprep.subr.bf16.mxu1 %v3388_v19 }
 0x6a5   :  { %1338 = vmatpush1.bf16.msra.mxu0 %v3392_v20  ;;  %1379 = vmatpush1.bf16.msra.mxu1 %v3394_v21 }
 0x6a6   :  { %1339 = vmatprep.subr.bf16.mxu0 %v3398_v22  ;;  %1380 = vmatprep.subr.bf16.mxu1 %v3400_v23 }
 0x6a9   :  { %1340 = vmatpush1.bf16.msra.mxu0 %v3404_v24  ;;  %1381 = vmatpush1.bf16.msra.mxu1 %v3406_v25 }
 0x6aa   :  { %1341 = vmatprep.subr.bf16.mxu0 %v3410_v26  ;;  %1382 = vmatprep.subr.bf16.mxu1 %v3412_v27 }
 0x6ad   :  { %1342 = vmatpush1.bf16.msra.mxu0 %v3416_v28  ;;  %1383 = vmatpush1.bf16.msra.mxu1 %v3418_v29 }
 0x6ae   :  { %1343 = vmatprep.subr.bf16.mxu0 %v3422_v30  ;;  %1384 = vmatprep.subr.bf16.mxu1 %v3424_v31 }
 0x6b1   :  { %1344 = vmatpush1.bf16.msra.mxu0 %v3428_v32  ;;  %1385 = vmatpush1.bf16.msra.mxu1 %v3430_v33 }
 0x6b2   :  { %1345 = vmatprep.subr.bf16.mxu0 %v3434_v34  ;;  %1386 = vmatprep.subr.bf16.mxu1 %v3436_v35 }
 0x6b5   :  { %1346 = vmatpush1.bf16.msra.mxu0 %v3440_v36  ;;  %1387 = vmatpush1.bf16.msra.mxu1 %v3442_v37 }
 0x6b6   :  { %1347 = vmatprep.subr.bf16.mxu0 %v3446_v38  ;;  %1388 = vmatprep.subr.bf16.mxu1 %v3448_v39 }
 0x6b9   :  { %1348 = vmatpush1.bf16.msra.mxu0 %v3452_v40  ;;  %1389 = vmatpush1.bf16.msra.mxu1 %v3454_v41 }
 0x76f   :  { %v1238_v18 = vpop.f32.mrb[20].mxu0  ;;  %v1279_v19 = vpop.f32.mrb[28].mxu1 }
 0x770   :  { %v1290_v20 = vrot.slane %v1238_v18, 2  ;;  %v1240_v21 = vpop.f32.mrb[21].mxu0  ;;  %v1281_v22 = vpop.f32.mrb[29].mxu1  ;;  %v1292_v34 = vrot.slane %v1279_v19, 2 }
 0x771   :  { %v1291_v23 = vrot.slane %v1240_v21, 2  ;;  %v1242_v24 = vpop.f32.mrb[22].mxu0  ;;  %v1283_v25 = vpop.f32.mrb[30].mxu1  ;;  %v1293_v32 = vrot.slane %v1281_v22, 2 }
 0x772   :  { %v1298_v26 = vadd.f32 %v1290_v20, %v3473_v48  ;;  %v1243_v27 = vpop.f32.mrb[23].mxu0  ;;  %v1284_v28 = vpop.f32.mrb[31].mxu1  ;;  %v1300_v36 = vadd.f32 %v1292_v34, %v3489_v63 }
 0x773   :  { %v1299_v29 = vadd.f32 %v1291_v23, %v3534_v58  ;;  %v1301_v33 = vadd.f32 %v1293_v32, %v3486_v59 }
 0x774   :  { %v2661_v30 = vmul.f32 -1.442695, %v1298_v26 }
 0x775   :  { %v2663_v31 = vmul.f32 -1.442695, %v1299_v29  ;;  %v2662_v35 = vmul.f32 -1.442695, %v1301_v33 }
 0x776   :  { %2893 = vpow2.f32 %v2661_v30 }
 0x777   :  { %2895 = vpow2.f32 %v2663_v31 }
 0x778   :  { %2897 = vpow2.f32 %v2662_v35 }
 0x779   :  { %2899 = vtanh.f32 %v1300_v36 }
 0x780   :  { %v2894_v37 = vpop.eup %2893 }
 0x781   :  { %v2896_v38 = vpop.eup %2895  ;;  %v1305_v39 = vadd.f32 1.0, %v2894_v37 }
 0x782   :  { %v1318_v40 = vadd.f32 1.0, %v2896_v38  ;;  %v2898_v41 = vpop.eup %2897 }
 0x783   :  { %2901 = vrcp.f32 %v1305_v39  ;;  %v2900_v1 = vpop.eup %2899  ;;  %v1312_v53 = vadd.f32 1.0, %v2898_v41 }
 0x784   :  { %2903 = vrcp.f32 %v1318_v40 }
 0x785   :  { %2905 = vrcp.f32 %v1312_v53 }
 0x78d   :  { %v2902_v10 = vpop.eup %2901 }
 0x78e   :  { %v2904_v2 = vpop.eup %2903  ;;  %v1325_v4 = vmul.f32 %v2902_v10, %v2900_v1 }
 0x78f   :  { %v1324_v6 = vmul.f32 %v2904_v2, %v1322_v11  ;;  %v2906_v7 = vpop.eup %2905 }
 0x791   :  { %v1326_v8 = vadd.f32 %v1325_v4, %v1324_v6 }
 0x793   :  { %2907 = vtanh.f32 %v1326_v8  ;;  %v1451_v25 = vrot.slane %v1326_v8, 7 }
 0x79d   :  { %v2908_v62 = vpop.eup %2907 }
 0x79e   :  { %v1328_v42 = vmul.f32 %v2908_v62, %v2906_v7 }
 0x7a0   :  { %v1329_v49 = vpack.c.bf16 %v1328_v42, %v1328_v42 }
 0x7a2   :  { %v1331_v50 = vrot.slane %v1329_v49, 3 }
 0x7a4   :  { %1366 = vmatmul.mubr.bf16.vlgmr.msra.gmra.mrb[24].mxu0 %v1331_v50  ;;  %1407 = vmatmul.mubr.bf16.vlgmr.msra.gmra.mrb[32].mxu1 %v1331_v50 }
 0x877   :  { %v1367_v3 = vpop.f32.mrb[24].mxu0  ;;  %v1408_v46 = vpop.f32.mrb[32].mxu1 }
 0x878   :  { %v1419_v12 = vrot.slane %v1367_v3, 1  ;;  %v1369_v13 = vpop.f32.mrb[25].mxu0  ;;  %v1410_v15 = vpop.f32.mrb[33].mxu1  ;;  %v1421_v0 = vrot.slane %v1408_v46, 1 }
 0x879   :  { %v1420_v14 = vrot.slane %v1369_v13, 1  ;;  %v1371_v16 = vpop.f32.mrb[26].mxu0  ;;  %v1412_v17 = vpop.f32.mrb[34].mxu1  ;;  %v1422_v57 = vrot.slane %v1410_v15, 1 }
 0x87a   :  { %v1427_v52 = vadd.f32 %v1419_v12, %v3473_v48  ;;  %v1372_v55 = vpop.f32.mrb[27].mxu0  ;;  %v1413_v56 = vpop.f32.mrb[35].mxu1  ;;  %v1429_v19 = vadd.f32 %v1421_v0, %v3489_v63 }
 0x87b   :  { %v1428_v60 = vadd.f32 %v1420_v14, %v3534_v58  ;;  %v1430_v61 = vadd.f32 %v1422_v57, %v3486_v59 }
 0x87c   :  { %v2664_v45 = vmul.f32 -1.442695, %v1427_v52 }
 0x87d   :  { %v2666_v9 = vmul.f32 -1.442695, %v1428_v60  ;;  %v2665_v18 = vmul.f32 -1.442695, %v1430_v61 }
 0x87e   :  { %2909 = vpow2.f32 %v2664_v45 }
 0x87f   :  { %2911 = vpow2.f32 %v2666_v9 }
 0x880   :  { %2913 = vpow2.f32 %v2665_v18 }
 0x881   :  { %2915 = vtanh.f32 %v1429_v19 }
 0x888   :  { %v2910_v20 = vpop.eup %2909 }
 0x889   :  { %v2912_v21 = vpop.eup %2911  ;;  %v1434_v22 = vadd.f32 1.0, %v2910_v20 }
 0x88a   :  { %v1447_v48 = vadd.f32 1.0, %v2912_v21  ;;  %v2914_v58 = vpop.eup %2913 }
 0x88b   :  { %2917 = vrcp.f32 %v1434_v22  ;;  %v2916_v23 = vpop.eup %2915  ;;  %v1441_v28 = vadd.f32 1.0, %v2914_v58 }
 0x88c   :  { %2919 = vrcp.f32 %v1447_v48 }
 0x88d   :  { %2921 = vrcp.f32 %v1441_v28 }
 0x895   :  { %v2918_v24 = vpop.eup %2917 }
 0x896   :  { %v2920_v26 = vpop.eup %2919  ;;  %v1454_v27 = vmul.f32 %v2918_v24, %v2916_v23 }
 0x897   :  { %v1453_v59 = vmul.f32 %v2920_v26, %v1451_v25  ;;  %v2922_v63 = vpop.eup %2921 }
 0x899   :  { %v1455_v29 = vadd.f32 %v1454_v27, %v1453_v59 }
 0x89b   :  { %2923 = vtanh.f32 %v1455_v29 }
 0x8a5   :  { %v2924_v30 = vpop.eup %2923 }
 0x8a6   :  { %v3747_v31 = vmul.f32 %v2924_v30, %v2922_v63 }
 0x8a7   :  { %3195 = dma.done.wait [#allocation7], 4096 }
 0x8a8   :  { %3196 = vsyncadd [#allocation7], 4294963200 }
 0x8a9   :  { %3197 = dma.done.wait [#allocation7 + $0x1], 4096 }
 0x8aa   :  { %3198 = vsyncadd [#allocation7 + $0x1], 4294963200 }
 0x8ab   :  { %3199 = dma.done.wait [#allocation7 + $0x2], 64 }
 0x8ac   :  { %3200 = vsyncadd [#allocation7 + $0x2], 4294967232  ;;  %1559 = vmatprep.mubr.bf16.mxu0 %v3225_v5  ;;  %1600 = vmatprep.mubr.bf16.mxu1 %v3225_v5  ;;  %v1469_v32 = vld [vmem:[#allocation2 + $0x8] sm:$0xff]  ;;  %v1468_v33 = vld [vmem:[#allocation2] sm:$0xff]  ;;  %v1467_v12 = vpack.c.bf16 %v3747_v31, %v3747_v31  ;;  %vm2455_vm2 = vcmask 1040384   ;;  %vm2457_vm3 = vcmask 1041408  }
 0x8ad   :  { %v1473_v34 = vld [vmem:[#allocation2 + $0x28] sm:$0xff]  ;;  %1527 = vmatprep.subr.bf16.mxu0 %v1469_v32  ;;  %v1471_v35 = vld [vmem:[#allocation2 + $0x18] sm:$0xff]  ;;  %v1470_v36 = vld [vmem:[#allocation2 + $0x10] sm:$0xff]  ;;  %vm2459_vm4 = vcmask 1042432   ;;  %vm2461_vm5 = vcmask 1043456   ;;  %vm2463_vm6 = vcmask 1044480  }
 0x8ae   :  { %1528 = vmatpush1.bf16.msra.mxu0 %v1468_v33  ;;  %v1472_v37 = vld [vmem:[#allocation2 + $0x20] sm:$0xff]  ;;  %1568 = vmatprep.subr.bf16.mxu1 %v1471_v35  ;;  %v1475_v38 = vld [vmem:[#allocation2 + $0x38] sm:$0xff]  ;;  %v1477_v39 = vld [vmem:[#allocation2 + $0x48] sm:$0xff]  ;;  %v1502_v16 = vshrl.u32 %v1467_v12, 16  ;;  %vm2466_vm7 = vcmask 1046528  }
 0x8af   :  { %1529 = vmatprep.subr.bf16.mxu0 %v1473_v34  ;;  %1569 = vmatpush1.bf16.msra.mxu1 %v1470_v36  ;;  %v1474_v40 = vld [vmem:[#allocation2 + $0x30] sm:$0xff]  ;;  %v1479_v41 = vld [vmem:[#allocation2 + $0x58] sm:$0xff]  ;;  %v1476_v1 = vld [vmem:[#allocation2 + $0x40] sm:$0xff] }
 0x8b0   :  { %1570 = vmatprep.subr.bf16.mxu1 %v1475_v38  ;;  %v1481_v10 = vld [vmem:[#allocation2 + $0x68] sm:$0xff]  ;;  %v1478_v11 = vld [vmem:[#allocation2 + $0x50] sm:$0xff]  ;;  %v1483_v2 = vld [vmem:[#allocation2 + $0x78] sm:$0xff]  ;;  %v1504_v56 = vrot.slane %v1502_v16, 3 }
 0x8b1   :  { %v1480_v4 = vld [vmem:[#allocation2 + $0x60] sm:$0xff]  ;;  %v1485_v53 = vld [vmem:[#allocation2 + $0x88] sm:$0xff]  ;;  %v1482_v6 = vld [vmem:[#allocation2 + $0x70] sm:$0xff] }
 0x8b2   :  { %1530 = vmatpush1.bf16.msra.mxu0 %v1472_v37  ;;  %v1487_v8 = vld [vmem:[#allocation2 + $0x98] sm:$0xff]  ;;  %v1484_v7 = vld [vmem:[#allocation2 + $0x80] sm:$0xff]  ;;  %v1489_v62 = vld [vmem:[#allocation2 + $0xa8] sm:$0xff] }
 0x8b3   :  { %1531 = vmatprep.subr.bf16.mxu0 %v1477_v39  ;;  %1571 = vmatpush1.bf16.msra.mxu1 %v1474_v40  ;;  %v1486_v42 = vld [vmem:[#allocation2 + $0x90] sm:$0xff]  ;;  %v1491_v49 = vld [vmem:[#allocation2 + $0xb8] sm:$0xff]  ;;  %v1488_v50 = vld [vmem:[#allocation2 + $0xa0] sm:$0xff] }
 0x8b4   :  { %1572 = vmatprep.subr.bf16.mxu1 %v1479_v41  ;;  %v1493_v3 = vld [vmem:[#allocation2 + $0xc8] sm:$0xff]  ;;  %v1490_v46 = vld [vmem:[#allocation2 + $0xb0] sm:$0xff]  ;;  %v1495_v13 = vld [vmem:[#allocation2 + $0xd8] sm:$0xff] }
 0x8b5   :  { %v1492_v15 = vld [vmem:[#allocation2 + $0xc0] sm:$0xff]  ;;  %v1497_v14 = vld [vmem:[#allocation2 + $0xe8] sm:$0xff]  ;;  %v1494_v17 = vld [vmem:[#allocation2 + $0xd0] sm:$0xff] }
 0x8b6   :  { %1532 = vmatpush1.bf16.msra.mxu0 %v1476_v1  ;;  %v1499_v52 = vld [vmem:[#allocation2 + $0xf8] sm:$0xff]  ;;  %v1496_v55 = vld [vmem:[#allocation2 + $0xe0] sm:$0xff]  ;;  %v1498_v60 = vld [vmem:[#allocation2 + $0xf0] sm:$0xff] }
 0x8b7   :  { %1533 = vmatprep.subr.bf16.mxu0 %v1481_v10  ;;  %1573 = vmatpush1.bf16.msra.mxu1 %v1478_v11  ;;  %v3755_v45 = vld [vmem:[#allocation3 + $0x8] sm:$0xff]  ;;  %v3757_v9 = vld [vmem:[#allocation3 + $0x18] sm:$0xff]  ;;  %v3759_v57 = vld [vmem:[#allocation3] sm:$0xff] }
 0x8b8   :  { %1574 = vmatprep.subr.bf16.mxu1 %v1483_v2  ;;  %v3763_v61 = vld [vmem:[#allocation3 + $0x10] sm:$0xff]  ;;  %v3765_v0 = vld [vmem:[#allocation3 + $0x28] sm:$0xff]  ;;  %v3767_v18 = vld [vmem:[#allocation3 + $0x38] sm:$0xff] }
 0x8b9   :  { %v3773_v19 = vld [vmem:[#allocation3 + $0x20] sm:$0xff]  ;;  %v3775_v20 = vld [vmem:[#allocation3 + $0x30] sm:$0xff]  ;;  %v3777_v21 = vld [vmem:[#allocation3 + $0x48] sm:$0xff] }
 0x8ba   :  { %1534 = vmatpush1.bf16.msra.mxu0 %v1480_v4  ;;  %v3779_v22 = vld [vmem:[#allocation3 + $0x58] sm:$0xff]  ;;  %v3785_v48 = vld [vmem:[#allocation3 + $0x40] sm:$0xff]  ;;  %v3787_v58 = vld [vmem:[#allocation3 + $0x50] sm:$0xff] }
 0x8bb   :  { %1535 = vmatprep.subr.bf16.mxu0 %v1485_v53  ;;  %1575 = vmatpush1.bf16.msra.mxu1 %v1482_v6  ;;  %v3789_v23 = vld [vmem:[#allocation3 + $0x68] sm:$0xff]  ;;  %v3791_v24 = vld [vmem:[#allocation3 + $0x78] sm:$0xff]  ;;  %v3797_v25 = vld [vmem:[#allocation3 + $0x60] sm:$0xff] }
 0x8bc   :  { %1576 = vmatprep.subr.bf16.mxu1 %v1487_v8  ;;  %v3799_v26 = vld [vmem:[#allocation3 + $0x70] sm:$0xff]  ;;  %v3801_v27 = vld [vmem:[#allocation3 + $0x88] sm:$0xff]  ;;  %v3803_v28 = vld [vmem:[#allocation3 + $0x98] sm:$0xff] }
 0x8bd   :  { %v3809_v59 = vld [vmem:[#allocation3 + $0x80] sm:$0xff]  ;;  %v3811_v29 = vld [vmem:[#allocation3 + $0x90] sm:$0xff]  ;;  %v3813_v63 = vld [vmem:[#allocation3 + $0xa8] sm:$0xff] }
 0x8be   :  { %1536 = vmatpush1.bf16.msra.mxu0 %v1484_v7  ;;  %v3815_v30 = vld [vmem:[#allocation3 + $0xb8] sm:$0xff]  ;;  %v3821_v31 = vld [vmem:[#allocation3 + $0xa0] sm:$0xff]  ;;  %v3823_v32 = vld [vmem:[#allocation3 + $0xb0] sm:$0xff] }
 0x8bf   :  { %1537 = vmatprep.subr.bf16.mxu0 %v1489_v62  ;;  %1577 = vmatpush1.bf16.msra.mxu1 %v1486_v42  ;;  %v3825_v33 = vld [vmem:[#allocation3 + $0xc8] sm:$0xff]  ;;  %v3827_v34 = vld [vmem:[#allocation3 + $0xd8] sm:$0xff]  ;;  %v3833_v35 = vld [vmem:[#allocation3 + $0xc0] sm:$0xff] }
 0x8c0   :  { %1578 = vmatprep.subr.bf16.mxu1 %v1491_v49  ;;  %v3835_v36 = vld [vmem:[#allocation3 + $0xd0] sm:$0xff]  ;;  %v3837_v37 = vld [vmem:[#allocation3 + $0xe8] sm:$0xff]  ;;  %v3839_v38 = vld [vmem:[#allocation3 + $0xf8] sm:$0xff] }
 0x8c1   :  { %v3845_v39 = vld [vmem:[#allocation3 + $0xe0] sm:$0xff]  ;;  %v3847_v40 = vld [vmem:[#allocation3 + $0xf0] sm:$0xff] }
 0x8c2   :  { %1538 = vmatpush1.bf16.msra.mxu0 %v1488_v50  ;;  %v3853_v41 = vld [vmem:[#allocation4] sm:$0xf] }
 0x8c3   :  { %1539 = vmatprep.subr.bf16.mxu0 %v1493_v3  ;;  %1579 = vmatpush1.bf16.msra.mxu1 %v1490_v46  ;;  %v1510_v1 = vrot.slane %v3853_v41, %v212_v44  ;;  %v1522_v11 = vrot.slane %v3853_v41, %v224_v51  ;;  %v1518_v51 = vrot.slane %v3853_v41, %v220_v54 }
 0x8c4   :  { %1580 = vmatprep.subr.bf16.mxu1 %v1495_v13 }
 0x8c6   :  { %1540 = vmatpush1.bf16.msra.mxu0 %v1492_v15 }
 0x8c7   :  { %1541 = vmatprep.subr.bf16.mxu0 %v1497_v14  ;;  %1581 = vmatpush1.bf16.msra.mxu1 %v1494_v17 }
 0x8c8   :  { %1582 = vmatprep.subr.bf16.mxu1 %v1499_v52 }
 0x8ca   :  { %1542 = vmatpush1.bf16.msra.mxu0 %v1496_v55 }
 0x8cb   :  { %1583 = vmatpush1.bf16.msra.mxu1 %v1498_v60  ;;  %1658 = vmatprep.subr.bf16.mxu0 %v3755_v45  ;;  %v1514_v60 = vrot.slane %v3853_v41, %v216_v47 }
 0x8cc   :  { %1699 = vmatprep.subr.bf16.mxu1 %v3757_v9 }
 0x8cd   :  { %1560 = vmatmul.mubr.bf16.vlgmr.msra.gmra.mrb[28].mxu0 %v1504_v56 }
 0x8ce   :  { %1690 = vmatprep.mubr.bf16.mxu0 %v3225_v5  ;;  %1601 = vmatmul.mubr.bf16.vlgmr.msra.gmra.mrb[36].mxu1 %v1504_v56 }
 0x8cf   :  { %1731 = vmatprep.mubr.bf16.mxu1 %v3225_v5  ;;  %1659 = vmatpush1.bf16.msra.mxu0 %v3759_v57 }
 0x8d0   :  { %1700 = vmatpush1.bf16.msra.mxu1 %v3763_v61  ;;  %1660 = vmatprep.subr.bf16.mxu0 %v3765_v0 }
 0x8d1   :  { %1701 = vmatprep.subr.bf16.mxu1 %v3767_v18 }
 0x8d3   :  { %1661 = vmatpush1.bf16.msra.mxu0 %v3773_v19 }
 0x8d4   :  { %1702 = vmatpush1.bf16.msra.mxu1 %v3775_v20  ;;  %1662 = vmatprep.subr.bf16.mxu0 %v3777_v21 }
 0x8d5   :  { %1703 = vmatprep.subr.bf16.mxu1 %v3779_v22 }
 0x8d7   :  { %1663 = vmatpush1.bf16.msra.mxu0 %v3785_v48 }
 0x8d8   :  { %1704 = vmatpush1.bf16.msra.mxu1 %v3787_v58  ;;  %1664 = vmatprep.subr.bf16.mxu0 %v3789_v23 }
 0x8d9   :  { %1705 = vmatprep.subr.bf16.mxu1 %v3791_v24 }
 0x8db   :  { %1665 = vmatpush1.bf16.msra.mxu0 %v3797_v25 }
 0x8dc   :  { %1706 = vmatpush1.bf16.msra.mxu1 %v3799_v26  ;;  %1666 = vmatprep.subr.bf16.mxu0 %v3801_v27 }
 0x8dd   :  { %1707 = vmatprep.subr.bf16.mxu1 %v3803_v28 }
 0x8df   :  { %1667 = vmatpush1.bf16.msra.mxu0 %v3809_v59 }
 0x8e0   :  { %1708 = vmatpush1.bf16.msra.mxu1 %v3811_v29  ;;  %1668 = vmatprep.subr.bf16.mxu0 %v3813_v63 }
 0x8e1   :  { %1709 = vmatprep.subr.bf16.mxu1 %v3815_v30 }
 0x8e3   :  { %1669 = vmatpush1.bf16.msra.mxu0 %v3821_v31 }
 0x8e4   :  { %1710 = vmatpush1.bf16.msra.mxu1 %v3823_v32  ;;  %1670 = vmatprep.subr.bf16.mxu0 %v3825_v33 }
 0x8e5   :  { %1711 = vmatprep.subr.bf16.mxu1 %v3827_v34 }
 0x8e7   :  { %1671 = vmatpush1.bf16.msra.mxu0 %v3833_v35 }
 0x8e8   :  { %1712 = vmatpush1.bf16.msra.mxu1 %v3835_v36  ;;  %1672 = vmatprep.subr.bf16.mxu0 %v3837_v37 }
 0x8e9   :  { %1713 = vmatprep.subr.bf16.mxu1 %v3839_v38 }
 0x8eb   :  { %1673 = vmatpush1.bf16.msra.mxu0 %v3845_v39 }
 0x8ec   :  { %1714 = vmatpush1.bf16.msra.mxu1 %v3847_v40  ;;  %1769 = vmatprep.subr.bf16.mxu0 %v3755_v45 }
 0x8ed   :  { %1810 = vmatprep.subr.bf16.mxu1 %v3757_v9 }
 0x9a0   :  { %v1561_v10 = vpop.f32.mrb[28].mxu0 }
 0x9a1   :  { %v3861_v2 = vadd.f32 %v1561_v10, %v1510_v1  ;;  %v3863_v4 = vpop.f32.mrb[29].mxu0  ;;  %v1602_v6 = vpop.f32.mrb[36].mxu1 }
 0x9a2   :  { %v1565_v53 = vpop.f32.mrb[30].mxu0  ;;  %v1604_v62 = vpop.f32.mrb[37].mxu1  ;;  %v3872_v3 = vadd.f32 %v1602_v6, %v1518_v51  ;;  %v3920_v1 = vadd.f32 %v3863_v4, %v1514_v60 }
 0x9a3   :  { %v2667_v8 = vmul.f32 -1.442695, %v3861_v2  ;;  %v1566_v7 = vpop.f32.mrb[31].mxu0  ;;  %v3866_v42 = vadd.f32 %v1604_v62, %v1522_v11  ;;  %v1606_v49 = vpop.f32.mrb[38].mxu1 }
 0x9a4   :  { %v1607_v44 = vpop.f32.mrb[39].mxu1 }
 0x9a5   :  { %2931 = vpow2.f32 %v2667_v8  ;;  %v2668_v50 = vmul.f32 -1.442695, %v3866_v42 }
 0x9a7   :  { %2933 = vpow2.f32 %v2668_v50 }
 0x9a8   :  { %2935 = vtanh.f32 %v3872_v3 }
 0x9af   :  { %v2932_v46 = vpop.eup %2931 }
 0x9b0   :  { %v1612_v12 = vadd.f32 1.0, %v2932_v46 }
 0x9b1   :  { %v2934_v13 = vpop.eup %2933 }
 0x9b2   :  { %2937 = vrcp.f32 %v1612_v12  ;;  %v1619_v15 = vadd.f32 1.0, %v2934_v13  ;;  %v2936_v14 = vpop.eup %2935 }
 0x9b4   :  { %2939 = vrcp.f32 %v1619_v15 }
 0x9bc   :  { %v2938_v16 = vpop.eup %2937 }
 0x9bd   :  { %v3875_v17 = vmul.f32 %v2938_v16, %v2936_v14 }
 0x9be   :  { %v2940_v52 = vpop.eup %2939 }
 0x9bf   :  { %2941 = vtanh.f32 %v3875_v17 }
 0x9c9   :  { %v2942_v55 = vpop.eup %2941 }
 0x9ca   :  { %v3878_v54 = vmul.f32 %v2942_v55, %v2940_v52 }
 0x9cc   :  { %v1625_v56 = vpack.c.bf16 %v3878_v54, %v3878_v54 }
 0x9ce   :  { %1691 = vmatmul.mubr.bf16.vlgmr.msra.gmra.mrb[32].mxu0 %v1625_v56  ;;  %1732 = vmatmul.mubr.bf16.vlgmr.msra.gmra.mrb[40].mxu1 %v1625_v56 }
 0x9cf   :  { %1770 = vmatpush1.bf16.msra.mxu0 %v3759_v57  ;;  %1811 = vmatpush1.bf16.msra.mxu1 %v3763_v61 }
 0x9d0   :  { %1771 = vmatprep.subr.bf16.mxu0 %v3765_v0  ;;  %1812 = vmatprep.subr.bf16.mxu1 %v3767_v18 }
 0x9d1   :  { %1801 = vmatprep.mubr.bf16.mxu0 %v3225_v5  ;;  %1842 = vmatprep.mubr.bf16.mxu1 %v3225_v5 }
 0x9d3   :  { %1772 = vmatpush1.bf16.msra.mxu0 %v3773_v19  ;;  %1813 = vmatpush1.bf16.msra.mxu1 %v3775_v20 }
 0x9d4   :  { %1773 = vmatprep.subr.bf16.mxu0 %v3777_v21  ;;  %1814 = vmatprep.subr.bf16.mxu1 %v3779_v22 }
 0x9d7   :  { %1774 = vmatpush1.bf16.msra.mxu0 %v3785_v48  ;;  %1815 = vmatpush1.bf16.msra.mxu1 %v3787_v58 }
 0x9d8   :  { %1775 = vmatprep.subr.bf16.mxu0 %v3789_v23  ;;  %1816 = vmatprep.subr.bf16.mxu1 %v3791_v24 }
 0x9db   :  { %1776 = vmatpush1.bf16.msra.mxu0 %v3797_v25  ;;  %1817 = vmatpush1.bf16.msra.mxu1 %v3799_v26 }
 0x9dc   :  { %1777 = vmatprep.subr.bf16.mxu0 %v3801_v27  ;;  %1818 = vmatprep.subr.bf16.mxu1 %v3803_v28 }
 0x9df   :  { %1778 = vmatpush1.bf16.msra.mxu0 %v3809_v59  ;;  %1819 = vmatpush1.bf16.msra.mxu1 %v3811_v29 }
 0x9e0   :  { %1779 = vmatprep.subr.bf16.mxu0 %v3813_v63  ;;  %1820 = vmatprep.subr.bf16.mxu1 %v3815_v30 }
 0x9e3   :  { %1780 = vmatpush1.bf16.msra.mxu0 %v3821_v31  ;;  %1821 = vmatpush1.bf16.msra.mxu1 %v3823_v32 }
 0x9e4   :  { %1781 = vmatprep.subr.bf16.mxu0 %v3825_v33  ;;  %1822 = vmatprep.subr.bf16.mxu1 %v3827_v34 }
 0x9e7   :  { %1782 = vmatpush1.bf16.msra.mxu0 %v3833_v35  ;;  %1823 = vmatpush1.bf16.msra.mxu1 %v3835_v36 }
 0x9e8   :  { %1783 = vmatprep.subr.bf16.mxu0 %v3837_v37  ;;  %1824 = vmatprep.subr.bf16.mxu1 %v3839_v38 }
 0x9eb   :  { %1784 = vmatpush1.bf16.msra.mxu0 %v3845_v39  ;;  %1825 = vmatpush1.bf16.msra.mxu1 %v3847_v40 }
 0x9ec   :  { %1880 = vmatprep.subr.bf16.mxu0 %v3755_v45  ;;  %1921 = vmatprep.subr.bf16.mxu1 %v3757_v9 }
 0xaa1   :  { %v1692_v10 = vpop.f32.mrb[32].mxu0  ;;  %v1733_v11 = vpop.f32.mrb[40].mxu1 }
 0xaa2   :  { %v1740_v53 = vadd.f32 %v1692_v10, %v3861_v2  ;;  %v1694_v6 = vpop.f32.mrb[33].mxu0  ;;  %v1735_v8 = vpop.f32.mrb[41].mxu1  ;;  %v1742_v41 = vadd.f32 %v1733_v11, %v3872_v3 }
 0xaa3   :  { %v1741_v7 = vadd.f32 %v1694_v6, %v3920_v1  ;;  %v1696_v62 = vpop.f32.mrb[34].mxu0  ;;  %v1737_v49 = vpop.f32.mrb[42].mxu1  ;;  %v1743_v43 = vadd.f32 %v1735_v8, %v3866_v42 }
 0xaa4   :  { %v2669_v44 = vmul.f32 -1.442695, %v1740_v53  ;;  %v1697_v50 = vpop.f32.mrb[35].mxu0  ;;  %v1738_v51 = vpop.f32.mrb[43].mxu1 }
 0xaa5   :  { %v2671_v46 = vmul.f32 -1.442695, %v1741_v7  ;;  %v2670_v47 = vmul.f32 -1.442695, %v1743_v43 }
 0xaa6   :  { %2943 = vpow2.f32 %v2669_v44 }
 0xaa7   :  { %2945 = vpow2.f32 %v2671_v46 }
 0xaa8   :  { %2947 = vpow2.f32 %v2670_v47 }
 0xaa9   :  { %2949 = vtanh.f32 %v1742_v41 }
 0xab0   :  { %v2944_v4 = vpop.eup %2943 }
 0xab1   :  { %v2946_v12 = vpop.eup %2945  ;;  %v1747_v13 = vadd.f32 1.0, %v2944_v4 }
 0xab2   :  { %v1760_v15 = vadd.f32 1.0, %v2946_v12  ;;  %v2948_v14 = vpop.eup %2947 }
 0xab3   :  { %2951 = vrcp.f32 %v1747_v13  ;;  %v2950_v16 = vpop.eup %2949  ;;  %v1754_v60 = vadd.f32 1.0, %v2948_v14 }
 0xab4   :  { %2953 = vrcp.f32 %v1760_v15 }
 0xab5   :  { %2955 = vrcp.f32 %v1754_v60 }
 0xabd   :  { %v2952_v52 = vpop.eup %2951 }
 0xabe   :  { %v2954_v55 = vpop.eup %2953  ;;  %v1764_v56 = vmul.f32 %v2952_v52, %v2950_v16 }
 0xabf   :  { %v1763_v10 = vmul.f32 %v2954_v55, %v3875_v17  ;;  %v2956_v11 = vpop.eup %2955 }
 0xac1   :  { %v3927_v53 = vadd.f32 %v1764_v56, %v1763_v10 }
 0xac3   :  { %2957 = vtanh.f32 %v3927_v53 }
 0xacd   :  { %v2958_v6 = vpop.eup %2957 }
 0xace   :  { %v3930_v8 = vmul.f32 %v2958_v6, %v2956_v11 }
 0xad0   :  { %v1768_v7 = vpack.c.bf16 %v3930_v8, %v3930_v8 }
 0xad2   :  { %1802 = vmatmul.mubr.bf16.vlgmr.msra.gmra.mrb[36].mxu0 %v1768_v7  ;;  %1843 = vmatmul.mubr.bf16.vlgmr.msra.gmra.mrb[44].mxu1 %v1768_v7 }
 0xad3   :  { %1881 = vmatpush1.bf16.msra.mxu0 %v3759_v57  ;;  %1922 = vmatpush1.bf16.msra.mxu1 %v3763_v61 }
 0xad4   :  { %1882 = vmatprep.subr.bf16.mxu0 %v3765_v0  ;;  %1923 = vmatprep.subr.bf16.mxu1 %v3767_v18 }
 0xad5   :  { %1912 = vmatprep.mubr.bf16.mxu0 %v3225_v5  ;;  %1953 = vmatprep.mubr.bf16.mxu1 %v3225_v5 }
 0xad7   :  { %1883 = vmatpush1.bf16.msra.mxu0 %v3773_v19  ;;  %1924 = vmatpush1.bf16.msra.mxu1 %v3775_v20 }
 0xad8   :  { %1884 = vmatprep.subr.bf16.mxu0 %v3777_v21  ;;  %1925 = vmatprep.subr.bf16.mxu1 %v3779_v22 }
 0xadb   :  { %1885 = vmatpush1.bf16.msra.mxu0 %v3785_v48  ;;  %1926 = vmatpush1.bf16.msra.mxu1 %v3787_v58 }
 0xadc   :  { %1886 = vmatprep.subr.bf16.mxu0 %v3789_v23  ;;  %1927 = vmatprep.subr.bf16.mxu1 %v3791_v24 }
 0xadf   :  { %1887 = vmatpush1.bf16.msra.mxu0 %v3797_v25  ;;  %1928 = vmatpush1.bf16.msra.mxu1 %v3799_v26 }
 0xae0   :  { %1888 = vmatprep.subr.bf16.mxu0 %v3801_v27  ;;  %1929 = vmatprep.subr.bf16.mxu1 %v3803_v28 }
 0xae3   :  { %1889 = vmatpush1.bf16.msra.mxu0 %v3809_v59  ;;  %1930 = vmatpush1.bf16.msra.mxu1 %v3811_v29 }
 0xae4   :  { %1890 = vmatprep.subr.bf16.mxu0 %v3813_v63  ;;  %1931 = vmatprep.subr.bf16.mxu1 %v3815_v30 }
 0xae7   :  { %1891 = vmatpush1.bf16.msra.mxu0 %v3821_v31  ;;  %1932 = vmatpush1.bf16.msra.mxu1 %v3823_v32 }
 0xae8   :  { %1892 = vmatprep.subr.bf16.mxu0 %v3825_v33  ;;  %1933 = vmatprep.subr.bf16.mxu1 %v3827_v34 }
 0xaeb   :  { %1893 = vmatpush1.bf16.msra.mxu0 %v3833_v35  ;;  %1934 = vmatpush1.bf16.msra.mxu1 %v3835_v36 }
 0xaec   :  { %1894 = vmatprep.subr.bf16.mxu0 %v3837_v37  ;;  %1935 = vmatprep.subr.bf16.mxu1 %v3839_v38 }
 0xaef   :  { %1895 = vmatpush1.bf16.msra.mxu0 %v3845_v39  ;;  %1936 = vmatpush1.bf16.msra.mxu1 %v3847_v40 }
 0xaf0   :  { %1991 = vmatprep.subr.bf16.mxu0 %v3755_v45  ;;  %2032 = vmatprep.subr.bf16.mxu1 %v3757_v9 }
 0xba5   :  { %v1803_v17 = vpop.f32.mrb[36].mxu0  ;;  %v1844_v62 = vpop.f32.mrb[44].mxu1 }
 0xba6   :  { %v1851_v49 = vadd.f32 %v1803_v17, %v3861_v2  ;;  %v1805_v44 = vpop.f32.mrb[37].mxu0  ;;  %v1846_v50 = vpop.f32.mrb[45].mxu1  ;;  %v1853_v14 = vadd.f32 %v1844_v62, %v3872_v3 }
 0xba7   :  { %v1852_v51 = vadd.f32 %v1805_v44, %v3920_v1  ;;  %v1807_v46 = vpop.f32.mrb[38].mxu0  ;;  %v1848_v43 = vpop.f32.mrb[46].mxu1  ;;  %v1854_v13 = vadd.f32 %v1846_v50, %v3866_v42 }
 0xba8   :  { %v2672_v47 = vmul.f32 -1.442695, %v1851_v49  ;;  %v1808_v41 = vpop.f32.mrb[39].mxu0  ;;  %v1849_v4 = vpop.f32.mrb[47].mxu1 }
 0xba9   :  { %v2674_v12 = vmul.f32 -1.442695, %v1852_v51  ;;  %v2673_v15 = vmul.f32 -1.442695, %v1854_v13  ;;  %v2435_v51 = vrot.slane %v3930_v8, 7 }
 0xbaa   :  { %2959 = vpow2.f32 %v2672_v47 }
 0xbab   :  { %2961 = vpow2.f32 %v2674_v12  ;;  %v2456_v41 = vsel %vm2455_vm2, %v3878_v54, %v2435_v51 }
 0xbac   :  { %2963 = vpow2.f32 %v2673_v15 }
 0xbad   :  { %2965 = vtanh.f32 %v1853_v14 }
 0xbb4   :  { %v2960_v16 = vpop.eup %2959 }
 0xbb5   :  { %v2962_v52 = vpop.eup %2961  ;;  %v1858_v55 = vadd.f32 1.0, %v2960_v16 }
 0xbb6   :  { %v1871_v56 = vadd.f32 1.0, %v2962_v52  ;;  %v2964_v60 = vpop.eup %2963 }
 0xbb7   :  { %2967 = vrcp.f32 %v1858_v55  ;;  %v2966_v10 = vpop.eup %2965  ;;  %v1865_v17 = vadd.f32 1.0, %v2964_v60 }
 0xbb8   :  { %2969 = vrcp.f32 %v1871_v56 }
 0xbb9   :  { %2971 = vrcp.f32 %v1865_v17 }
 0xbc1   :  { %v2968_v11 = vpop.eup %2967 }
 0xbc2   :  { %v2970_v6 = vpop.eup %2969  ;;  %v1875_v7 = vmul.f32 %v2968_v11, %v2966_v10 }
 0xbc3   :  { %v1874_v49 = vmul.f32 %v2970_v6, %v3927_v53  ;;  %v2972_v62 = vpop.eup %2971 }
 0xbc5   :  { %v3973_v44 = vadd.f32 %v1875_v7, %v1874_v49 }
 0xbc7   :  { %2973 = vtanh.f32 %v3973_v44 }
 0xbd1   :  { %v2974_v50 = vpop.eup %2973 }
 0xbd2   :  { %v1878_v46 = vmul.f32 %v2974_v50, %v2972_v62 }
 0xbd4   :  { %v1879_v43 = vpack.c.bf16 %v1878_v46, %v1878_v46  ;;  %v2438_v47 = vrot.slane %v1878_v46, 6 }
 0xbd6   :  { %1913 = vmatmul.mubr.bf16.vlgmr.msra.gmra.mrb[40].mxu0 %v1879_v43  ;;  %v3978_v4 = vsel %vm2457_vm3, %v2456_v41, %v2438_v47  ;;  %1954 = vmatmul.mubr.bf16.vlgmr.msra.gmra.mrb[48].mxu1 %v1879_v43 }
 0xbd7   :  { %1992 = vmatpush1.bf16.msra.mxu0 %v3759_v57  ;;  %2033 = vmatpush1.bf16.msra.mxu1 %v3763_v61 }
 0xbd8   :  { %1993 = vmatprep.subr.bf16.mxu0 %v3765_v0  ;;  %2034 = vmatprep.subr.bf16.mxu1 %v3767_v18 }
 0xbd9   :  { %2023 = vmatprep.mubr.bf16.mxu0 %v3225_v5  ;;  %2064 = vmatprep.mubr.bf16.mxu1 %v3225_v5 }
 0xbdb   :  { %1994 = vmatpush1.bf16.msra.mxu0 %v3773_v19  ;;  %2035 = vmatpush1.bf16.msra.mxu1 %v3775_v20 }
 0xbdc   :  { %1995 = vmatprep.subr.bf16.mxu0 %v3777_v21  ;;  %2036 = vmatprep.subr.bf16.mxu1 %v3779_v22 }
 0xbdf   :  { %1996 = vmatpush1.bf16.msra.mxu0 %v3785_v48  ;;  %2037 = vmatpush1.bf16.msra.mxu1 %v3787_v58 }
 0xbe0   :  { %1997 = vmatprep.subr.bf16.mxu0 %v3789_v23  ;;  %2038 = vmatprep.subr.bf16.mxu1 %v3791_v24 }
 0xbe3   :  { %1998 = vmatpush1.bf16.msra.mxu0 %v3797_v25  ;;  %2039 = vmatpush1.bf16.msra.mxu1 %v3799_v26 }
 0xbe4   :  { %1999 = vmatprep.subr.bf16.mxu0 %v3801_v27  ;;  %2040 = vmatprep.subr.bf16.mxu1 %v3803_v28 }
 0xbe7   :  { %2000 = vmatpush1.bf16.msra.mxu0 %v3809_v59  ;;  %2041 = vmatpush1.bf16.msra.mxu1 %v3811_v29 }
 0xbe8   :  { %2001 = vmatprep.subr.bf16.mxu0 %v3813_v63  ;;  %2042 = vmatprep.subr.bf16.mxu1 %v3815_v30 }
 0xbeb   :  { %2002 = vmatpush1.bf16.msra.mxu0 %v3821_v31  ;;  %2043 = vmatpush1.bf16.msra.mxu1 %v3823_v32 }
 0xbec   :  { %2003 = vmatprep.subr.bf16.mxu0 %v3825_v33  ;;  %2044 = vmatprep.subr.bf16.mxu1 %v3827_v34 }
 0xbef   :  { %2004 = vmatpush1.bf16.msra.mxu0 %v3833_v35  ;;  %2045 = vmatpush1.bf16.msra.mxu1 %v3835_v36 }
 0xbf0   :  { %2005 = vmatprep.subr.bf16.mxu0 %v3837_v37  ;;  %2046 = vmatprep.subr.bf16.mxu1 %v3839_v38 }
 0xbf3   :  { %2006 = vmatpush1.bf16.msra.mxu0 %v3845_v39  ;;  %2047 = vmatpush1.bf16.msra.mxu1 %v3847_v40 }
 0xbf4   :  { %2102 = vmatprep.subr.bf16.mxu0 %v3755_v45  ;;  %2143 = vmatprep.subr.bf16.mxu1 %v3757_v9 }
 0xca9   :  { %v1914_v54 = vpop.f32.mrb[40].mxu0  ;;  %v1955_v53 = vpop.f32.mrb[48].mxu1 }
 0xcaa   :  { %v1962_v8 = vadd.f32 %v1914_v54, %v3861_v2  ;;  %v1916_v12 = vpop.f32.mrb[41].mxu0  ;;  %v1957_v13 = vpop.f32.mrb[49].mxu1  ;;  %v1964_v6 = vadd.f32 %v1955_v53, %v3872_v3 }
 0xcab   :  { %v1963_v15 = vadd.f32 %v1916_v12, %v3920_v1  ;;  %v1918_v14 = vpop.f32.mrb[42].mxu0  ;;  %v1959_v16 = vpop.f32.mrb[50].mxu1  ;;  %v1965_v10 = vadd.f32 %v1957_v13, %v3866_v42 }
 0xcac   :  { %v2675_v52 = vmul.f32 -1.442695, %v1962_v8  ;;  %v1919_v55 = vpop.f32.mrb[43].mxu0  ;;  %v1960_v56 = vpop.f32.mrb[51].mxu1 }
 0xcad   :  { %v2677_v60 = vmul.f32 -1.442695, %v1963_v15  ;;  %v2676_v11 = vmul.f32 -1.442695, %v1965_v10 }
 0xcae   :  { %2975 = vpow2.f32 %v2675_v52 }
 0xcaf   :  { %2977 = vpow2.f32 %v2677_v60 }
 0xcb0   :  { %2979 = vpow2.f32 %v2676_v11 }
 0xcb1   :  { %2981 = vtanh.f32 %v1964_v6 }
 0xcb8   :  { %v2976_v7 = vpop.eup %2975 }
 0xcb9   :  { %v2978_v17 = vpop.eup %2977  ;;  %v1969_v49 = vadd.f32 1.0, %v2976_v7 }
 0xcba   :  { %v1982_v62 = vadd.f32 1.0, %v2978_v17  ;;  %v2980_v50 = vpop.eup %2979 }
 0xcbb   :  { %2983 = vrcp.f32 %v1969_v49  ;;  %v2982_v51 = vpop.eup %2981  ;;  %v1976_v41 = vadd.f32 1.0, %v2980_v50 }
 0xcbc   :  { %2985 = vrcp.f32 %v1982_v62 }
 0xcbd   :  { %2987 = vrcp.f32 %v1976_v41 }
 0xcc5   :  { %v2984_v46 = vpop.eup %2983 }
 0xcc6   :  { %v2986_v43 = vpop.eup %2985  ;;  %v1986_v47 = vmul.f32 %v2984_v46, %v2982_v51 }
 0xcc7   :  { %v1985_v54 = vmul.f32 %v2986_v43, %v3973_v44  ;;  %v2988_v53 = vpop.eup %2987 }
 0xcc9   :  { %v4019_v8 = vadd.f32 %v1986_v47, %v1985_v54 }
 0xccb   :  { %2989 = vtanh.f32 %v4019_v8 }
 0xcd5   :  { %v2990_v12 = vpop.eup %2989 }
 0xcd6   :  { %v1989_v13 = vmul.f32 %v2990_v12, %v2988_v53 }
 0xcd8   :  { %v1990_v15 = vpack.c.bf16 %v1989_v13, %v1989_v13  ;;  %v2441_v14 = vrot.slane %v1989_v13, 5 }
 0xcda   :  { %2024 = vmatmul.mubr.bf16.vlgmr.msra.gmra.mrb[44].mxu0 %v1990_v15  ;;  %v4023_v16 = vsel %vm2459_vm4, %v3978_v4, %v2441_v14  ;;  %2065 = vmatmul.mubr.bf16.vlgmr.msra.gmra.mrb[52].mxu1 %v1990_v15 }
 0xcdb   :  { %2103 = vmatpush1.bf16.msra.mxu0 %v3759_v57  ;;  %2144 = vmatpush1.bf16.msra.mxu1 %v3763_v61 }
 0xcdc   :  { %2104 = vmatprep.subr.bf16.mxu0 %v3765_v0  ;;  %2145 = vmatprep.subr.bf16.mxu1 %v3767_v18 }
 0xcdd   :  { %2134 = vmatprep.mubr.bf16.mxu0 %v3225_v5  ;;  %2175 = vmatprep.mubr.bf16.mxu1 %v3225_v5 }
 0xcdf   :  { %2105 = vmatpush1.bf16.msra.mxu0 %v3773_v19  ;;  %2146 = vmatpush1.bf16.msra.mxu1 %v3775_v20 }
 0xce0   :  { %2106 = vmatprep.subr.bf16.mxu0 %v3777_v21  ;;  %2147 = vmatprep.subr.bf16.mxu1 %v3779_v22 }
 0xce3   :  { %2107 = vmatpush1.bf16.msra.mxu0 %v3785_v48  ;;  %2148 = vmatpush1.bf16.msra.mxu1 %v3787_v58 }
 0xce4   :  { %2108 = vmatprep.subr.bf16.mxu0 %v3789_v23  ;;  %2149 = vmatprep.subr.bf16.mxu1 %v3791_v24 }
 0xce7   :  { %2109 = vmatpush1.bf16.msra.mxu0 %v3797_v25  ;;  %2150 = vmatpush1.bf16.msra.mxu1 %v3799_v26 }
 0xce8   :  { %2110 = vmatprep.subr.bf16.mxu0 %v3801_v27  ;;  %2151 = vmatprep.subr.bf16.mxu1 %v3803_v28 }
 0xceb   :  { %2111 = vmatpush1.bf16.msra.mxu0 %v3809_v59  ;;  %2152 = vmatpush1.bf16.msra.mxu1 %v3811_v29 }
 0xcec   :  { %2112 = vmatprep.subr.bf16.mxu0 %v3813_v63  ;;  %2153 = vmatprep.subr.bf16.mxu1 %v3815_v30 }
 0xcef   :  { %2113 = vmatpush1.bf16.msra.mxu0 %v3821_v31  ;;  %2154 = vmatpush1.bf16.msra.mxu1 %v3823_v32 }
 0xcf0   :  { %2114 = vmatprep.subr.bf16.mxu0 %v3825_v33  ;;  %2155 = vmatprep.subr.bf16.mxu1 %v3827_v34 }
 0xcf3   :  { %2115 = vmatpush1.bf16.msra.mxu0 %v3833_v35  ;;  %2156 = vmatpush1.bf16.msra.mxu1 %v3835_v36 }
 0xcf4   :  { %2116 = vmatprep.subr.bf16.mxu0 %v3837_v37  ;;  %2157 = vmatprep.subr.bf16.mxu1 %v3839_v38 }
 0xcf7   :  { %2117 = vmatpush1.bf16.msra.mxu0 %v3845_v39  ;;  %2158 = vmatpush1.bf16.msra.mxu1 %v3847_v40 }
 0xcf8   :  { %2213 = vmatprep.subr.bf16.mxu0 %v3755_v45  ;;  %2254 = vmatprep.subr.bf16.mxu1 %v3757_v9 }
 0xdad   :  { %v2025_v44 = vpop.f32.mrb[44].mxu0  ;;  %v2066_v4 = vpop.f32.mrb[52].mxu1 }
 0xdae   :  { %v2073_v52 = vadd.f32 %v2025_v44, %v3861_v2  ;;  %v2027_v55 = vpop.f32.mrb[45].mxu0  ;;  %v2068_v56 = vpop.f32.mrb[53].mxu1  ;;  %v2075_v51 = vadd.f32 %v2066_v4, %v3872_v3 }
 0xdaf   :  { %v2074_v60 = vadd.f32 %v2027_v55, %v3920_v1  ;;  %v2029_v10 = vpop.f32.mrb[46].mxu0  ;;  %v2070_v11 = vpop.f32.mrb[54].mxu1  ;;  %v2076_v62 = vadd.f32 %v2068_v56, %v3866_v42 }
 0xdb0   :  { %v2678_v6 = vmul.f32 -1.442695, %v2073_v52  ;;  %v2030_v7 = vpop.f32.mrb[47].mxu0  ;;  %v2071_v17 = vpop.f32.mrb[55].mxu1 }
 0xdb1   :  { %v2680_v49 = vmul.f32 -1.442695, %v2074_v60  ;;  %v2679_v50 = vmul.f32 -1.442695, %v2076_v62 }
 0xdb2   :  { %2991 = vpow2.f32 %v2678_v6 }
 0xdb3   :  { %2993 = vpow2.f32 %v2680_v49 }
 0xdb4   :  { %2995 = vpow2.f32 %v2679_v50 }
 0xdb5   :  { %2997 = vtanh.f32 %v2075_v51 }
 0xdbc   :  { %v2992_v46 = vpop.eup %2991 }
 0xdbd   :  { %v2994_v43 = vpop.eup %2993  ;;  %v2080_v47 = vadd.f32 1.0, %v2992_v46 }
 0xdbe   :  { %v2093_v41 = vadd.f32 1.0, %v2994_v43  ;;  %v2996_v54 = vpop.eup %2995 }
 0xdbf   :  { %2999 = vrcp.f32 %v2080_v47  ;;  %v2998_v53 = vpop.eup %2997  ;;  %v2087_v14 = vadd.f32 1.0, %v2996_v54 }
 0xdc0   :  { %3001 = vrcp.f32 %v2093_v41 }
 0xdc1   :  { %3003 = vrcp.f32 %v2087_v14 }
 0xdc9   :  { %v3000_v12 = vpop.eup %2999 }
 0xdca   :  { %v3002_v13 = vpop.eup %3001  ;;  %v2097_v15 = vmul.f32 %v3000_v12, %v2998_v53 }
 0xdcb   :  { %v2096_v44 = vmul.f32 %v3002_v13, %v4019_v8  ;;  %v3004_v4 = vpop.eup %3003 }
 0xdcd   :  { %v4064_v52 = vadd.f32 %v2097_v15, %v2096_v44 }
 0xdcf   :  { %3005 = vtanh.f32 %v4064_v52 }
 0xdd9   :  { %v3006_v55 = vpop.eup %3005 }
 0xdda   :  { %v2100_v56 = vmul.f32 %v3006_v55, %v3004_v4 }
 0xddc   :  { %v2101_v60 = vpack.c.bf16 %v2100_v56, %v2100_v56  ;;  %v2444_v10 = vrot.slane %v2100_v56, 4 }
 0xdde   :  { %2135 = vmatmul.mubr.bf16.vlgmr.msra.gmra.mrb[48].mxu0 %v2101_v60  ;;  %v4068_v11 = vsel %vm2461_vm5, %v4023_v16, %v2444_v10  ;;  %2176 = vmatmul.mubr.bf16.vlgmr.msra.gmra.mrb[56].mxu1 %v2101_v60 }
 0xddf   :  { %2214 = vmatpush1.bf16.msra.mxu0 %v3759_v57  ;;  %2255 = vmatpush1.bf16.msra.mxu1 %v3763_v61 }
 0xde0   :  { %2215 = vmatprep.subr.bf16.mxu0 %v3765_v0  ;;  %2256 = vmatprep.subr.bf16.mxu1 %v3767_v18 }
 0xde1   :  { %2245 = vmatprep.mubr.bf16.mxu0 %v3225_v5  ;;  %2286 = vmatprep.mubr.bf16.mxu1 %v3225_v5 }
 0xde3   :  { %2216 = vmatpush1.bf16.msra.mxu0 %v3773_v19  ;;  %2257 = vmatpush1.bf16.msra.mxu1 %v3775_v20 }
 0xde4   :  { %2217 = vmatprep.subr.bf16.mxu0 %v3777_v21  ;;  %2258 = vmatprep.subr.bf16.mxu1 %v3779_v22 }
 0xde7   :  { %2218 = vmatpush1.bf16.msra.mxu0 %v3785_v48  ;;  %2259 = vmatpush1.bf16.msra.mxu1 %v3787_v58 }
 0xde8   :  { %2219 = vmatprep.subr.bf16.mxu0 %v3789_v23  ;;  %2260 = vmatprep.subr.bf16.mxu1 %v3791_v24 }
 0xdeb   :  { %2220 = vmatpush1.bf16.msra.mxu0 %v3797_v25  ;;  %2261 = vmatpush1.bf16.msra.mxu1 %v3799_v26 }
 0xdec   :  { %2221 = vmatprep.subr.bf16.mxu0 %v3801_v27  ;;  %2262 = vmatprep.subr.bf16.mxu1 %v3803_v28 }
 0xdef   :  { %2222 = vmatpush1.bf16.msra.mxu0 %v3809_v59  ;;  %2263 = vmatpush1.bf16.msra.mxu1 %v3811_v29 }
 0xdf0   :  { %2223 = vmatprep.subr.bf16.mxu0 %v3813_v63  ;;  %2264 = vmatprep.subr.bf16.mxu1 %v3815_v30 }
 0xdf3   :  { %2224 = vmatpush1.bf16.msra.mxu0 %v3821_v31  ;;  %2265 = vmatpush1.bf16.msra.mxu1 %v3823_v32 }
 0xdf4   :  { %2225 = vmatprep.subr.bf16.mxu0 %v3825_v33  ;;  %2266 = vmatprep.subr.bf16.mxu1 %v3827_v34 }
 0xdf7   :  { %2226 = vmatpush1.bf16.msra.mxu0 %v3833_v35  ;;  %2267 = vmatpush1.bf16.msra.mxu1 %v3835_v36 }
 0xdf8   :  { %2227 = vmatprep.subr.bf16.mxu0 %v3837_v37  ;;  %2268 = vmatprep.subr.bf16.mxu1 %v3839_v38 }
 0xdfb   :  { %2228 = vmatpush1.bf16.msra.mxu0 %v3845_v39  ;;  %2269 = vmatpush1.bf16.msra.mxu1 %v3847_v40 }
 0xdfc   :  { %2324 = vmatprep.subr.bf16.mxu0 %v3755_v45  ;;  %2365 = vmatprep.subr.bf16.mxu1 %v3757_v9 }
 0xeb1   :  { %v2136_v8 = vpop.f32.mrb[48].mxu0  ;;  %v2177_v16 = vpop.f32.mrb[56].mxu1 }
 0xeb2   :  { %v2184_v6 = vadd.f32 %v2136_v8, %v3861_v2  ;;  %v2138_v7 = vpop.f32.mrb[49].mxu0  ;;  %v2179_v17 = vpop.f32.mrb[57].mxu1  ;;  %v2186_v9 = vadd.f32 %v2177_v16, %v3872_v3 }
 0xeb3   :  { %v2185_v49 = vadd.f32 %v2138_v7, %v3920_v1  ;;  %v2140_v62 = vpop.f32.mrb[50].mxu0  ;;  %v2181_v50 = vpop.f32.mrb[58].mxu1  ;;  %v2187_v45 = vadd.f32 %v2179_v17, %v3866_v42 }
 0xeb4   :  { %v2681_v51 = vmul.f32 -1.442695, %v2184_v6  ;;  %v2141_v46 = vpop.f32.mrb[51].mxu0  ;;  %v2182_v43 = vpop.f32.mrb[59].mxu1 }
 0xeb5   :  { %v2683_v47 = vmul.f32 -1.442695, %v2185_v49  ;;  %v2682_v41 = vmul.f32 -1.442695, %v2187_v45 }
 0xeb6   :  { %3007 = vpow2.f32 %v2681_v51 }
 0xeb7   :  { %3009 = vpow2.f32 %v2683_v47 }
 0xeb8   :  { %3011 = vpow2.f32 %v2682_v41 }
 0xeb9   :  { %3013 = vtanh.f32 %v2186_v9 }
 0xec0   :  { %v3008_v54 = vpop.eup %3007 }
 0xec1   :  { %v3010_v53 = vpop.eup %3009  ;;  %v2191_v12 = vadd.f32 1.0, %v3008_v54 }
 0xec2   :  { %v2204_v13 = vadd.f32 1.0, %v3010_v53  ;;  %v3012_v15 = vpop.eup %3011 }
 0xec3   :  { %3015 = vrcp.f32 %v2191_v12  ;;  %v3014_v14 = vpop.eup %3013  ;;  %v2198_v56 = vadd.f32 1.0, %v3012_v15 }
 0xec4   :  { %3017 = vrcp.f32 %v2204_v13 }
 0xec5   :  { %3019 = vrcp.f32 %v2198_v56 }
 0xecd   :  { %v3016_v44 = vpop.eup %3015 }
 0xece   :  { %v3018_v4 = vpop.eup %3017  ;;  %v2208_v55 = vmul.f32 %v3016_v44, %v3014_v14 }
 0xecf   :  { %v2207_v60 = vmul.f32 %v3018_v4, %v4064_v52  ;;  %v3020_v8 = vpop.eup %3019 }
 0xed1   :  { %v4109_v10 = vadd.f32 %v2208_v55, %v2207_v60 }
 0xed3   :  { %3021 = vtanh.f32 %v4109_v10 }
 0xedd   :  { %v3022_v16 = vpop.eup %3021 }
 0xede   :  { %v2211_v6 = vmul.f32 %v3022_v16, %v3020_v8 }
 0xee0   :  { %v2212_v7 = vpack.c.bf16 %v2211_v6, %v2211_v6  ;;  %v2447_v17 = vrot.slane %v2211_v6, 3 }
 0xee2   :  { %2246 = vmatmul.mubr.bf16.vlgmr.msra.gmra.mrb[52].mxu0 %v2212_v7  ;;  %2287 = vmatmul.mubr.bf16.vlgmr.msra.gmra.mrb[60].mxu1 %v2212_v7  ;;  %v4113_v49 = vsel %vm2463_vm6, %v4068_v11, %v2447_v17 }
 0xee3   :  { %2325 = vmatpush1.bf16.msra.mxu0 %v3759_v57  ;;  %2366 = vmatpush1.bf16.msra.mxu1 %v3763_v61 }
 0xee4   :  { %2326 = vmatprep.subr.bf16.mxu0 %v3765_v0  ;;  %2367 = vmatprep.subr.bf16.mxu1 %v3767_v18 }
 0xee5   :  { %2356 = vmatprep.mubr.bf16.mxu0 %v3225_v5  ;;  %2397 = vmatprep.mubr.bf16.mxu1 %v3225_v5 }
 0xee7   :  { %2327 = vmatpush1.bf16.msra.mxu0 %v3773_v19  ;;  %2368 = vmatpush1.bf16.msra.mxu1 %v3775_v20 }
 0xee8   :  { %2328 = vmatprep.subr.bf16.mxu0 %v3777_v21  ;;  %2369 = vmatprep.subr.bf16.mxu1 %v3779_v22 }
 0xeeb   :  { %2329 = vmatpush1.bf16.msra.mxu0 %v3785_v48  ;;  %2370 = vmatpush1.bf16.msra.mxu1 %v3787_v58 }
 0xeec   :  { %2330 = vmatprep.subr.bf16.mxu0 %v3789_v23  ;;  %2371 = vmatprep.subr.bf16.mxu1 %v3791_v24 }
 0xeef   :  { %2331 = vmatpush1.bf16.msra.mxu0 %v3797_v25  ;;  %2372 = vmatpush1.bf16.msra.mxu1 %v3799_v26 }
 0xef0   :  { %2332 = vmatprep.subr.bf16.mxu0 %v3801_v27  ;;  %2373 = vmatprep.subr.bf16.mxu1 %v3803_v28 }
 0xef3   :  { %2333 = vmatpush1.bf16.msra.mxu0 %v3809_v59  ;;  %2374 = vmatpush1.bf16.msra.mxu1 %v3811_v29 }
 0xef4   :  { %2334 = vmatprep.subr.bf16.mxu0 %v3813_v63  ;;  %2375 = vmatprep.subr.bf16.mxu1 %v3815_v30 }
 0xef7   :  { %2335 = vmatpush1.bf16.msra.mxu0 %v3821_v31  ;;  %2376 = vmatpush1.bf16.msra.mxu1 %v3823_v32 }
 0xef8   :  { %2336 = vmatprep.subr.bf16.mxu0 %v3825_v33  ;;  %2377 = vmatprep.subr.bf16.mxu1 %v3827_v34 }
 0xefb   :  { %2337 = vmatpush1.bf16.msra.mxu0 %v3833_v35  ;;  %2378 = vmatpush1.bf16.msra.mxu1 %v3835_v36 }
 0xefc   :  { %2338 = vmatprep.subr.bf16.mxu0 %v3837_v37  ;;  %2379 = vmatprep.subr.bf16.mxu1 %v3839_v38 }
 0xeff   :  { %2339 = vmatpush1.bf16.msra.mxu0 %v3845_v39  ;;  %2380 = vmatpush1.bf16.msra.mxu1 %v3847_v40 }
 0xfb5   :  { %v2247_v5 = vpop.f32.mrb[52].mxu0  ;;  %v2288_v57 = vpop.f32.mrb[60].mxu1 }
 0xfb6   :  { %v2295_v61 = vadd.f32 %v2247_v5, %v3861_v2  ;;  %v2249_v0 = vpop.f32.mrb[53].mxu0  ;;  %v2290_v18 = vpop.f32.mrb[61].mxu1  ;;  %v2297_v26 = vadd.f32 %v2288_v57, %v3872_v3 }
 0xfb7   :  { %v2296_v19 = vadd.f32 %v2249_v0, %v3920_v1  ;;  %v2251_v20 = vpop.f32.mrb[54].mxu0  ;;  %v2292_v21 = vpop.f32.mrb[62].mxu1  ;;  %v2298_v24 = vadd.f32 %v2290_v18, %v3866_v42 }
 0xfb8   :  { %v2684_v22 = vmul.f32 -1.442695, %v2295_v61  ;;  %v2252_v48 = vpop.f32.mrb[55].mxu0  ;;  %v2293_v58 = vpop.f32.mrb[63].mxu1 }
 0xfb9   :  { %v2686_v23 = vmul.f32 -1.442695, %v2296_v19  ;;  %v2685_v25 = vmul.f32 -1.442695, %v2298_v24 }
 0xfba   :  { %3023 = vpow2.f32 %v2684_v22 }
 0xfbb   :  { %3025 = vpow2.f32 %v2686_v23 }
 0xfbc   :  { %3027 = vpow2.f32 %v2685_v25 }
 0xfbd   :  { %3029 = vtanh.f32 %v2297_v26 }
 0xfc4   :  { %v3024_v27 = vpop.eup %3023 }
 0xfc5   :  { %v3026_v28 = vpop.eup %3025  ;;  %v2302_v59 = vadd.f32 1.0, %v3024_v27 }
 0xfc6   :  { %v2315_v29 = vadd.f32 1.0, %v3026_v28  ;;  %v3028_v63 = vpop.eup %3027 }
 0xfc7   :  { %3031 = vrcp.f32 %v2302_v59  ;;  %v3030_v30 = vpop.eup %3029  ;;  %v2309_v34 = vadd.f32 1.0, %v3028_v63 }
 0xfc8   :  { %3033 = vrcp.f32 %v2315_v29 }
 0xfc9   :  { %3035 = vrcp.f32 %v2309_v34 }
 0xfd1   :  { %v3032_v31 = vpop.eup %3031 }
 0xfd2   :  { %v3034_v32 = vpop.eup %3033  ;;  %v2319_v33 = vmul.f32 %v3032_v31, %v3030_v30 }
 0xfd3   :  { %v2318_v35 = vmul.f32 %v3034_v32, %v4109_v10  ;;  %v3036_v37 = vpop.eup %3035 }
 0xfd5   :  { %v2320_v36 = vadd.f32 %v2319_v33, %v2318_v35 }
 0xfd7   :  { %3037 = vtanh.f32 %v2320_v36 }
 0xfe1   :  { %v3038_v38 = vpop.eup %3037 }
 0xfe2   :  { %v2322_v39 = vmul.f32 %v3038_v38, %v3036_v37 }
 0xfe4   :  { %v2323_v40 = vpack.c.bf16 %v2322_v39, %v2322_v39  ;;  %v2450_v52 = vrot.slane %v2322_v39, 2 }
 0xfe6   :  { %2357 = vmatmul.mubr.bf16.vlgmr.msra.gmra.mrb[56].mxu0 %v2323_v40  ;;  %v2465_v11 = vsel %vm250_vm0, %v4113_v49, %v2450_v52  ;;  %2398 = vmatmul.mubr.bf16.vlgmr.msra.gmra.mrb[64].mxu1 %v2323_v40 }
0x10b9   :  { %v2358_v62 = vpop.f32.mrb[56].mxu0  ;;  %v2399_v50 = vpop.f32.mrb[64].mxu1 }
0x10ba   :  { %v2406_v51 = vadd.f32 %v2358_v62, %v3861_v2  ;;  %v2360_v46 = vpop.f32.mrb[57].mxu0  ;;  %v2401_v43 = vpop.f32.mrb[65].mxu1  ;;  %v2408_v14 = vadd.f32 %v2399_v50, %v3872_v3 }
0x10bb   :  { %v2407_v47 = vadd.f32 %v2360_v46, %v3920_v1  ;;  %v2362_v45 = vpop.f32.mrb[58].mxu0  ;;  %v2403_v41 = vpop.f32.mrb[66].mxu1  ;;  %v2409_v13 = vadd.f32 %v2401_v43, %v3866_v42 }
0x10bc   :  { %v2687_v9 = vmul.f32 -1.442695, %v2406_v51  ;;  %v2363_v54 = vpop.f32.mrb[59].mxu0  ;;  %v2404_v53 = vpop.f32.mrb[67].mxu1 }
0x10bd   :  { %v2689_v12 = vmul.f32 -1.442695, %v2407_v47  ;;  %v2688_v15 = vmul.f32 -1.442695, %v2409_v13 }
0x10be   :  { %3039 = vpow2.f32 %v2687_v9 }
0x10bf   :  { %3041 = vpow2.f32 %v2689_v12 }
0x10c0   :  { %3043 = vpow2.f32 %v2688_v15 }
0x10c1   :  { %3045 = vtanh.f32 %v2408_v14 }
0x10c8   :  { %v3040_v44 = vpop.eup %3039 }
0x10c9   :  { %v3042_v4 = vpop.eup %3041  ;;  %v2413_v2 = vadd.f32 1.0, %v3040_v44 }
0x10ca   :  { %v2426_v55 = vadd.f32 1.0, %v3042_v4  ;;  %v3044_v1 = vpop.eup %3043 }
0x10cb   :  { %3047 = vrcp.f32 %v2413_v2  ;;  %v3046_v56 = vpop.eup %3045  ;;  %v2420_v16 = vadd.f32 1.0, %v3044_v1 }
0x10cc   :  { %3049 = vrcp.f32 %v2426_v55 }
0x10cd   :  { %3051 = vrcp.f32 %v2420_v16 }
0x10d5   :  { %v3048_v60 = vpop.eup %3047 }
0x10d6   :  { %v3050_v10 = vpop.eup %3049  ;;  %v2430_v8 = vmul.f32 %v3048_v60, %v3046_v56 }
0x10d7   :  { %v2429_v6 = vmul.f32 %v3050_v10, %v2320_v36  ;;  %v3052_v42 = vpop.eup %3051 }
0x10d9   :  { %v2431_v7 = vadd.f32 %v2430_v8, %v2429_v6 }
0x10db   :  { %3053 = vtanh.f32 %v2431_v7 }
0x10e5   :  { %v3054_v3 = vpop.eup %3053 }
0x10e6   :  { %v2433_v17 = vmul.f32 %v3054_v3, %v3052_v42 }
0x10e8   :  { %v2453_v49 = vrot.slane %v2433_v17, 1 }
0x10ea   :  { %v2467_v5 = vsel %vm2466_vm7, %v2465_v11, %v2453_v49 }
0x10eb   :  { %3201 = dma.done.wait [#allocation7 + $0x3], 1024 }
0x10ec   :  { %3202 = vsyncadd [#allocation7 + $0x3], 4294966272 }
0x10ed   :  { %3203 = dma.done.wait [#allocation7 + $0x4], 16 }
0x10ee   :  { %3204 = vsyncadd [#allocation7 + $0x4], 4294967280  ;;  %v3226_v57 = vmov 0.0   ;;  %vm3227_vm8 = vmmov 0   ;;  %v2475_v61 = vld [vmem:[#allocation5] sm:$0xff]  ;;  %v2476_v0 = vld [vmem:[#allocation5 + $0x8] sm:$0xff]  ;;  %v2474_v58 = vpack.c.bf16 %v2467_v5, %v2467_v5 }
0x10ef   :  { %2705 = vmatprep.subr.bf16.mxu0 %v3226_v57  ;;  %2721 = vmatprep.mubr.msk.bf16.mxu0 %vm3227_vm8, %v3226_v57  ;;  %v2477_v18 = vld [vmem:[#allocation5 + $0x10] sm:$0xff]  ;;  %v2478_v19 = vld [vmem:[#allocation5 + $0x18] sm:$0xff]  ;;  %v2479_v20 = vld [vmem:[#allocation5 + $0x20] sm:$0xff]  ;;  %s3228_s3 = smov [#allocation14]  }
0x10f0   :  { %2706 = vmatpush3.bf16.msra.mxu0 %v2475_v61  ;;  %v2480_v21 = vld [vmem:[#allocation5 + $0x28] sm:$0xff]  ;;  %v2481_v22 = vld [vmem:[#allocation5 + $0x30] sm:$0xff]  ;;  %v2482_v48 = vld [vmem:[#allocation5 + $0x38] sm:$0xff]  ;;  %s2546_s23 = sshll.u32 %s3228_s3, 4  ;;  %s2547_s23 = int_to_ptr.vmem [resolvable:$true] %s2546_s23 }
0x10f1   :  { %2707 = vmatprep.subr.bf16.mxu0 %v3226_v57  ;;  %v2690_v23 = vld [vmem:[#allocation6] ss:$0 sm:$0xff]  ;;  %s3169_s25 = scalar_lea.vmem %s2547_s23, 128  ;;  %p3174_p13 = scmp.lt.s32.totalorder %s2547_s23, %s2547_s23 }
0x10f2   :  { %p3170_p12 = scmp.ne.s32.totalorder %s2547_s23, %s3169_s25  ;;  %p3175_p0 = scmp.lt.s32.totalorder %s3169_s25, %s3169_s25 }
0x10f4   :  { %2708 = vmatpush3.bf16.msra.mxu0 %v2476_v0  ;;  %p3176_p1 = por %p3175_p0, %p3174_p13 }
0x10f5   :  { %2709 = vmatprep.subr.bf16.mxu0 %v3226_v57 }
0x10f6   :  { %p3177_p2 = pnand %p3176_p1, %p3170_p12 }
0x10f8   :  { %2710 = vmatpush3.bf16.msra.mxu0 %v2477_v18 }
0x10f9   :  { %2711 = vmatprep.subr.bf16.mxu0 %v3226_v57 }
0x10fc   :  { %2712 = vmatpush3.bf16.msra.mxu0 %v2478_v19 }
0x10fd   :  { %2713 = vmatprep.subr.bf16.mxu0 %v3226_v57 }
0x1100   :  { %2714 = vmatpush3.bf16.msra.mxu0 %v2479_v20 }
0x1101   :  { %2715 = vmatprep.subr.bf16.mxu0 %v3226_v57 }
0x1104   :  { %2716 = vmatpush3.bf16.msra.mxu0 %v2480_v21 }
0x1105   :  { %2717 = vmatprep.subr.bf16.mxu0 %v3226_v57 }
0x1108   :  { %2718 = vmatpush3.bf16.msra.mxu0 %v2481_v22 }
0x1109   :  { %2719 = vmatprep.subr.bf16.mxu0 %v3226_v57 }
0x110c   :  { %2720 = vmatpush3.bf16.msra.mxu0 %v2482_v48 }
0x110f   :  { %2722 = vmatmul.mubr.bf16.vlgmr.msra.gmra.mrb[60].mxu0 %v2474_v58 }
0x11e2   :  { %v2524_v24 = vpop.f32.mrb[60].mxu0 }
0x11e3   :  { %v2525_v25 = vadd.f32 %v2690_v23, %v2524_v24  ;;  %v2723_v26 = vpop.f32.mrb[61].mxu0 }
0x11e4   :  { %v2527_v27 = vpop.f32.mrb[62].mxu0 }
0x11e5   :  { %2530 = vmax.xlane.f32.xlu0 %v2525_v25  ;;  %v2724_v28 = vpop.f32.mrb[63].mxu0 }
0x1272   :  { %v2531_v59 = vpop.xlane.xlu0 %2530 }
0x1273   :  { %v2532_v29 = vsub.f32 %v2525_v25, %v2531_v59 }
0x1275   :  { %v2533_v63 = vmul.f32 1.442695, %v2532_v29 }
0x1277   :  { %3055 = vpow2.f32 %v2533_v63 }
0x1281   :  { %v3056_v30 = vpop.eup %3055 }
0x1282   :  { %2535 = vadd.xlane.f32.xlu0 %v3056_v30 }
0x130f   :  { %v2536_v31 = vpop.xlane.xlu0 %2535 }
0x1310   :  { %3057 = vrcp.f32 %v2536_v31 }
0x131a   :  { %v3058_v32 = vpop.eup %3057 }
0x131b   :  { %v2538_v33 = vmul.f32 %v3058_v32, %v3056_v30 }
0x131d   :  { %2539 = vst [vmem:[#allocation14] sm:$0xff] %v2538_v33 }
0x131e   :  { %3180 = shalt.err (!%p3177_p2)
}
0x131f   :  { %s3181_s24 = scalar_lea.hbm %s4179_s9, 128 }
0x1320   :  { %p3182_p3 = scmp.ne.s32.totalorder %s4179_s9, %s3181_s24  ;;  %p3185_p4 = scmp.lt.u32.totalorder %s3181_s24, %s4179_s9 }
0x1322   :  { %p3187_p5 = pnand %p3185_p4, %p3182_p3 }
0x1324   :  { %3190 = shalt.err (!%p3187_p5)
}
0x1325   :  { %2549 = dma.vmem_to_hbm [thread:$0]  %s2547_s23, 128, %s4179_s9, [#allocation10]  }
0x1326   :  { %3205 = dma.done.wait [#allocation10], 128  }
0x1327   :  { %3206 = vsyncadd [#allocation10], 4294967168 }
0x1328   :  { %2553 = vsyncpa [#allocation9], 1 }
0x1329   :  { %2554 = vsyncpa [#allocation12], 1 }
0x132a   :  { %2555 = vsyncpa [#allocation10], 1 }
0x132b   :  { %2556 = vsyncmov [#allocation7] }
0x132e   :  { %s2557_s5 = vpop.sfrf %2556 }
0x132f   :  { %p2691_p6 = scmp.ne.s32.totalorder %s2557_s5, 0 }
0x1331   :  { %2561 = shalt.err (%p2691_p6)  }
0x1332   :  { %2563 = vsyncmov [#allocation7 + $0x1] }
0x1335   :  { %s2564_s12 = vpop.sfrf %2563 }
0x1336   :  { %p2692_p7 = scmp.ne.s32.totalorder %s2564_s12, 0 }
0x1338   :  { %2568 = shalt.err (%p2692_p7)  }
0x1339   :  { %2570 = vsyncmov [#allocation7 + $0x2] }
0x133c   :  { %s2571_s13 = vpop.sfrf %2570 }
0x133d   :  { %p2693_p8 = scmp.ne.s32.totalorder %s2571_s13, 0 }
0x133f   :  { %2575 = shalt.err (%p2693_p8)  }
0x1340   :  { %2577 = vsyncmov [#allocation7 + $0x3] }
0x1343   :  { %s2578_s1 = vpop.sfrf %2577 }
0x1344   :  { %p2694_p9 = scmp.ne.s32.totalorder %s2578_s1, 0 }
0x1346   :  { %2582 = shalt.err (%p2694_p9)  }
0x1347   :  { %2584 = vsyncmov [#allocation7 + $0x4] }
0x134a   :  { %s2585_s9 = vpop.sfrf %2584 }
0x134b   :  { %p2695_p10 = scmp.ne.s32.totalorder %s2585_s9, 0 }
0x134d   :  { %2589 = shalt.err (%p2695_p10)  }

</bundles_post_ra>
